<compile_context>
chip_gen: v7x
topology: tpu7x:2x2x1
jax: 0.10.0
libtpu: 0.0.40
codegen_flags: <defaults>
</compile_context>

<pallas_src>
import functools

import jax
import jax.numpy as jnp
from jax.experimental import pallas as pl
from jax.experimental.pallas import tpu as pltpu


# ----------------------------------------------------------------------------
# Fused whole-network Pallas kernel
# ----------------------------------------------------------------------------
def _dqn_fused_kernel(p1_ref, w1_ref, bias_ref,
                      w2_hbm, w3_hbm, w4_hbm, w5_hbm,
                      out_ref,
                      a1_ref, p2_ref, a3_ref,
                      w2_v, w3_v, w4_v, w5_v, dma_sem,
                      *, N, H1, W1, C1, K2, S2, H2, W2, C2, C3, F4, NOUT,
                      bias_off):
    f32 = jnp.float32

    # Kick off the later-layer weight DMAs immediately so they overlap the
    # conv1 matmul and the conv2 patch assembly below.
    cp2 = pltpu.make_async_copy(w2_hbm, w2_v, dma_sem.at[0]); cp2.start()
    cp3 = pltpu.make_async_copy(w3_hbm, w3_v, dma_sem.at[1]); cp3.start()
    cp4 = pltpu.make_async_copy(w4_hbm, w4_v, dma_sem.at[2]); cp4.start()
    cp5 = pltpu.make_async_copy(w5_hbm, w5_v, dma_sem.at[3]); cp5.start()

    o1, o2, o3, o4, o5 = bias_off
    b1 = bias_ref[:, o1:o1 + C1]
    b2 = bias_ref[:, o2:o2 + C2]
    b3 = bias_ref[:, o3:o3 + C3]
    b4 = bias_ref[:, o4:o4 + F4]
    b5 = bias_ref[:, o5:o5 + NOUT]

    # ---- conv1 (BN scale pre-folded into w1); p1 rows ordered (w1, n, h1) --
    a1 = jnp.dot(p1_ref[...], w1_ref[...], preferred_element_type=f32)
    a1 = jnp.maximum(a1 + b1, 0.0)                        # (W1*N*H1, C1)

    # Scatter into the WIDE layout A1[(n,h1), (w1,c)] with W1 contiguous,
    # sublane-aligned value slices (rows per slice = N*H1, a multiple of 8).
    NH1 = N * H1
    for w1i in range(W1):
        a1_ref[:, pl.ds(w1i * C1, C1)] = a1[w1i * NH1:(w1i + 1) * NH1, :]

    # ---- assemble conv2 im2col patches from the wide A1 ---------------------
    # P2[(n,oh,ow), (ki,kj,c)]: each copy is a (1, K2*C1)=(1,256) slice whose
    # source column S2*ow*C1 and dest column ki*K2*C1 are 128-lane aligned.
    KC = K2 * C1
    for n in range(N):
        for oh in range(H2):
            for ow in range(W2):
                r2 = (n * H2 + oh) * W2 + ow
                src_col = S2 * ow * C1
                for ki in range(K2):
                    src_row = n * H1 + S2 * oh + ki
                    p2_ref[pl.ds(r2, 1), pl.ds(ki * KC, KC)] = \
                        a1_ref[pl.ds(src_row, 1), pl.ds(src_col, KC)]

    # ---- conv2 ---------------------------------------------------------------
    cp2.wait()
    a2 = jnp.dot(p2_ref[...], w2_v[...], preferred_element_type=f32)
    a2 = jnp.maximum(a2 + b2, 0.0)                        # (N*H2*W2, C2)

    # Flatten per sample straight from the matmul value (lane-aligned 128-wide
    # stores; no intermediate a2 scratch round trip).
    P = H2 * W2
    for n in range(N):
        for p in range(P):
            r = n * P + p
            a3_ref[pl.ds(n, 1), pl.ds(p * C2, C2)] = a2[r:r + 1, :]

    # ---- conv3 (1x1 spatial output) + flatten + fc1 + fc2, all on VMEM values
    cp3.wait()
    h3 = jnp.dot(a3_ref[...], w3_v[...], preferred_element_type=f32)
    h3 = jnp.maximum(h3 + b3, 0.0)                        # (N, C3)
    cp4.wait()
    h4 = jnp.dot(h3, w4_v[...], preferred_element_type=f32)
    h4 = jnp.maximum(h4 + b4, 0.0)                        # (N, F4)
    cp5.wait()
    q = jnp.dot(h4, w5_v[...], preferred_element_type=f32) + b5
    out_ref[...] = q.astype(out_ref.dtype)                # (N, 128) lane-dense


# ----------------------------------------------------------------------------
# XLA glue: im2col for conv1 only (valid padding, NCHW input).
# Rows ordered (w1, n, h1) so the kernel can scatter the conv1 matmul result
# into the wide A1 layout with contiguous value slices.
# K columns ordered (c, ki, kj) == torch w.reshape(co, -1) ordering.
# ----------------------------------------------------------------------------
def im2col_conv1(x, k, stride):
    N, C, H, W = x.shape
    Ho = (H - k) // stride + 1
    Wo = (W - k) // stride + 1
    cols = []
    for i in range(k):
        for j in range(k):
            cols.append(x[:, :, i:i + stride * Ho:stride, j:j + stride * Wo:stride])
    p = jnp.stack(cols, axis=2)                # (N, C, k*k, Ho, Wo)
    p = p.reshape(N, C * k * k, Ho, Wo)        # K order (c, ki, kj)
    p = p.transpose(3, 0, 2, 1)                # (Wo, N, Ho, K)
    return p.reshape(Wo * N * Ho, C * k * k), Ho, Wo


# ----------------------------------------------------------------------------
# One-time parameter preparation: fold BN, transpose, pad, pack biases.
# ----------------------------------------------------------------------------
def prepare_fused_params(params, n_actions, pad_lanes=128):
    eps = 1e-5
    convs = params["convs"]
    strides = params["stride"]
    assert len(convs) == 3, "fused kernel is specialized to the 3-conv stack"
    out = {"n_actions": n_actions}

    # conv1: K-order (c_in, ki, kj) == torch w.reshape(co, -1) ordering.
    w, b, gamma, beta, mean, var = convs[0]
    co, ci, k, _ = w.shape
    scale = gamma / jnp.sqrt(var + eps)
    out["w1"] = (w.reshape(co, ci * k * k) * scale[:, None]).T.astype(jnp.float32)
    biases = [(scale * (b - mean) + beta).astype(jnp.float32)]
    out["k1"], out["s1"] = k, strides[0]

    # conv2 / conv3: in-kernel patch K-order (ki, kj, c_in).
    for li, (wname, kname, sname) in enumerate(
            [("w2", "k2", "s2"), ("w3", "k3", "s3")], start=1):
        w, b, gamma, beta, mean, var = convs[li]
        co, ci, k, _ = w.shape
        scale = gamma / jnp.sqrt(var + eps)
        out[wname] = (w.transpose(2, 3, 1, 0).reshape(k * k * ci, co)
                      * scale[None, :]).astype(jnp.float32)
        biases.append((scale * (b - mean) + beta).astype(jnp.float32))
        out[kname], out[sname] = k, strides[li]

    # fc1 / fc2: pre-transpose once; pad fc2 to 128 output lanes (lane-dense).
    out["w4"] = params["fc1_w"].T.astype(jnp.float32)
    biases.append(params["fc1_b"].astype(jnp.float32))
    npad = max(pad_lanes, n_actions)
    w5 = jnp.zeros((params["fc2_w"].shape[1], npad), jnp.float32)
    out["w5"] = w5.at[:, :n_actions].set(params["fc2_w"].T.astype(jnp.float32))
    b5 = jnp.zeros((npad,), jnp.float32).at[:n_actions].set(
        params["fc2_b"].astype(jnp.float32))
    biases.append(b5)

    # Pack the five bias vectors into ONE (1, K) operand with 128-aligned
    # segments (operand count 11 -> 7, fewer DMA descriptors / VMEM buffers).
    segs = [((bv.shape[0] + 127) // 128) * 128 for bv in biases]
    offs = [0]
    for s in segs[:-1]:
        offs.append(offs[-1] + s)
    packed = jnp.zeros((1, offs[-1] + segs[-1]), jnp.float32)
    for off, bv in zip(offs, biases):
        packed = packed.at[0, off:off + bv.shape[0]].set(bv)
    out["bias"] = packed
    out["bias_off"] = tuple(int(o) for o in offs)
    return out


# ----------------------------------------------------------------------------
# Forward pass (== Double_DQN.forward(x, conv=True))
# ----------------------------------------------------------------------------
def double_dqn_forward(fp, x):
    n, cin, h, w = x.shape
    k1, s1 = fp["k1"], fp["s1"]
    k2, s2 = fp["k2"], fp["s2"]
    k3, s3 = fp["k3"], fp["s3"]
    h1, w1 = (h - k1) // s1 + 1, (w - k1) // s1 + 1
    h2, w2 = (h1 - k2) // s2 + 1, (w1 - k2) // s2 + 1
    h3, w3 = (h2 - k3) // s3 + 1, (w2 - k3) // s3 + 1
    c1 = fp["w1"].shape[1]
    c2 = fp["w2"].shape[1]
    c3 = fp["w3"].shape[1]
    f4 = fp["w4"].shape[1]
    n_out = fp["w5"].shape[1]

    # Static shape / coverage checks: the unrolled copy loops fully overwrite
    # every scratch buffer only if these hold (uninitialized-VMEM guard).
    assert fp["w1"].shape[0] == cin * k1 * k1
    assert fp["w2"].shape[0] == k2 * k2 * c1
    # Fused flatten->fc1 assumes conv3 collapses spatial dims to 1x1
    # (true for the module's 8/4/3 stack at its minimal 36x36 input size).
    assert h3 == 1 and w3 == 1 and fp["w3"].shape[0] == k3 * k3 * c2
    assert fp["w4"].shape[0] == c3 * h3 * w3 and fp["w5"].shape[0] == f4
    assert (s2 * c1) % 128 == 0    # conv2 patch-assembly src columns 128-aligned
    assert (k2 * c1) % 128 == 0    # ... and the destination segments too

    patches1, _, _ = im2col_conv1(x.astype(jnp.float32), k1, s1)  # (w1*n*h1, cin*k1*k1)

    kernel = functools.partial(
        _dqn_fused_kernel,
        N=n, H1=h1, W1=w1, C1=c1, K2=k2, S2=s2, H2=h2, W2=w2, C2=c2,
        C3=c3, F4=f4, NOUT=n_out, bias_off=fp["bias_off"])

    def vspec(shape):
        return pl.BlockSpec(shape, lambda i: (0,) * len(shape))

    hbm = pl.BlockSpec(memory_space=pl.ANY)   # kernel DMAs these itself

    q_padded = pl.pallas_call(
        kernel,
        out_shape=jax.ShapeDtypeStruct((n, n_out), jnp.float32),
        grid=(1,),
        in_specs=[vspec(patches1.shape), vspec(fp["w1"].shape),
                  vspec(fp["bias"].shape), hbm, hbm, hbm, hbm],
        out_specs=vspec((n, n_out)),
        scratch_shapes=[
            pltpu.VMEM((n * h1, w1 * c1), jnp.float32),             # A1 (wide)
            pltpu.VMEM((n * h2 * w2, k2 * k2 * c1), jnp.float32),   # P2 patches
            pltpu.VMEM((n, h2 * w2 * c2), jnp.float32),             # conv3 input
            pltpu.VMEM(fp["w2"].shape, jnp.float32),                # w2 landing
            pltpu.VMEM(fp["w3"].shape, jnp.float32),                # w3 landing
            pltpu.VMEM(fp["w4"].shape, jnp.float32),                # w4 landing
            pltpu.VMEM(fp["w5"].shape, jnp.float32),                # w5 landing
            pltpu.SemaphoreType.DMA((4,)),
        ],
        compiler_params=pltpu.CompilerParams(
            dimension_semantics=("arbitrary",)),
    )(patches1, fp["w1"], fp["bias"], fp["w2"], fp["w3"], fp["w4"], fp["w5"])
    return q_padded[:, : fp["n_actions"]]


# ----------------------------------------------------------------------------
# Parameter construction (deterministic, synthetic) — raw PyTorch layouts
# ----------------------------------------------------------------------------
def init_params(key, in_channels, n_actions, H, W,
                depths=(64, 128, 64), ksize=(8, 4, 3), stride=(4, 2, 1),
                hidden=512):
    params = {"convs": [], "stride": list(stride)}
    chans = [in_channels] + list(depths)
    h, w_sp = H, W
    for ci, co, k, s in zip(chans, chans[1:], ksize, stride):
        key, k1, k2, k3, k4, k5, k6 = jax.random.split(key, 7)
        wconv = 0.05 * jax.random.normal(k1, (co, ci, k, k), jnp.float32)
        bconv = 0.05 * jax.random.normal(k2, (co,), jnp.float32)
        gamma = 1.0 + 0.1 * jax.random.normal(k3, (co,), jnp.float32)
        beta = 0.1 * jax.random.normal(k4, (co,), jnp.float32)
        mean = 0.1 * jax.random.normal(k5, (co,), jnp.float32)
        var = 1.0 + 0.1 * jax.random.uniform(k6, (co,), jnp.float32)
        params["convs"].append((wconv, bconv, gamma, beta, mean, var))
        h = (h - k) // s + 1
        w_sp = (w_sp - k) // s + 1
    flat = chans[-1] * h * w_sp
    key, k1, k2, k3, k4 = jax.random.split(key, 5)
    params["fc1_w"] = 0.05 * jax.random.normal(k1, (hidden, flat), jnp.float32)
    params["fc1_b"] = 0.05 * jax.random.normal(k2, (hidden,), jnp.float32)
    params["fc2_w"] = 0.05 * jax.random.normal(k3, (n_actions, hidden), jnp.float32)
    params["fc2_b"] = 0.05 * jax.random.normal(k4, (n_actions,), jnp.float32)
    return params


# ----------------------------------------------------------------------------
# Pure-JAX reference for a sanity check
# ----------------------------------------------------------------------------
def reference_forward(params, x):
    y = x
    for (w, b, gamma, beta, mean, var), s in zip(params["convs"], params["stride"]):
        y = jax.lax.conv_general_dilated(
            y, w, window_strides=(s, s), padding="VALID",
            dimension_numbers=("NCHW", "OIHW", "NCHW"))
        y = y + b[None, :, None, None]
        y = gamma[None, :, None, None] * (y - mean[None, :, None, None]) \
            / jnp.sqrt(var[None, :, None, None] + 1e-5) + beta[None, :, None, None]
        y = jnp.maximum(y, 0.0)
    y = y.reshape(y.shape[0], -1)
    y = jnp.maximum(y @ params["fc1_w"].T + params["fc1_b"], 0.0)
    return y @ params["fc2_w"].T + params["fc2_b"]


if __name__ == "__main__":
    # batch=2, obs channels=4, spatial 36x36 (minimum that survives the 8/4/3
    # conv stack), 6 discrete actions.
    N, C, H, W = 2, 4, 36, 36
    N_ACTIONS = 6

    key = jax.random.PRNGKey(0)
    kx, kp = jax.random.split(key)
    x = jax.random.normal(kx, (N, C, H, W), jnp.float32)
    params = init_params(kp, C, N_ACTIONS, H, W)
    fp = prepare_fused_params(params, N_ACTIONS)

    fwd = jax.jit(functools.partial(double_dqn_forward, fp))
    q = jax.block_until_ready(fwd(x))
    assert q.shape == (N, N_ACTIONS), q.shape

    q_ref = jax.block_until_ready(reference_forward(params, x))
    assert jnp.allclose(q, q_ref, rtol=1e-3, atol=1e-3), \
        float(jnp.max(jnp.abs(q - q_ref)))

    print("KERNEL_OK")
</pallas_src>

<mosaic_0001>
module attributes {stable_mosaic.version = 11 : i64} {
  func.func @_dqn_fused_kernel(%arg0: i32, %arg1: memref<128x256xf32, #tpu.memory_space<vmem>>, %arg2: memref<256x64xf32, #tpu.memory_space<vmem>>, %arg3: memref<1x1024xf32, #tpu.memory_space<vmem>>, %arg4: memref<1024x128xf32, #tpu.memory_space<any>>, %arg5: memref<1152x64xf32, #tpu.memory_space<any>>, %arg6: memref<64x512xf32, #tpu.memory_space<any>>, %arg7: memref<512x128xf32, #tpu.memory_space<any>>, %arg8: memref<2x128xf32, #tpu.memory_space<vmem>>, %arg9: memref<16x512xf32, #tpu.memory_space<vmem>>, %arg10: memref<18x1024xf32, #tpu.memory_space<vmem>>, %arg11: memref<2x1152xf32, #tpu.memory_space<vmem>>, %arg12: memref<1024x128xf32, #tpu.memory_space<vmem>>, %arg13: memref<1152x64xf32, #tpu.memory_space<vmem>>, %arg14: memref<64x512xf32, #tpu.memory_space<vmem>>, %arg15: memref<512x128xf32, #tpu.memory_space<vmem>>, %arg16: memref<4x!tpu.dma_semaphore, #tpu.memory_space<semaphore_mem>>) attributes {dimension_semantics = [#tpu.dimension_semantics<arbitrary>], iteration_bounds = array<i64: 1>, scalar_prefetch = 0 : i64, scratch_operands = 8 : i64, tpu.core_type = #tpu.core_type<tc>, window_params = [{pipeline_mode = #tpu.pipeline_mode<synchronous>, transform_indices = @transform_0, window_bounds = array<i64: 128, 256>}, {pipeline_mode = #tpu.pipeline_mode<synchronous>, transform_indices = @transform_1, window_bounds = array<i64: 256, 64>}, {pipeline_mode = #tpu.pipeline_mode<synchronous>, transform_indices = @transform_2, window_bounds = array<i64: 1, 1024>}, {}, {}, {}, {}, {pipeline_mode = #tpu.pipeline_mode<synchronous>, transform_indices = @transform_7, window_bounds = array<i64: 2, 128>}]} {
    %c0_i32 = arith.constant 0 : i32
    %0 = tpu.memref_slice %arg16[%c0_i32] : memref<4x!tpu.dma_semaphore, #tpu.memory_space<semaphore_mem>> -> memref<1x!tpu.dma_semaphore, #tpu.memory_space<semaphore_mem>>
    %1 = tpu.memref_squeeze %0 : memref<1x!tpu.dma_semaphore, #tpu.memory_space<semaphore_mem>> -> memref<!tpu.dma_semaphore, #tpu.memory_space<semaphore_mem>>
    tpu.enqueue_dma source(%arg4 : memref<1024x128xf32, #tpu.memory_space<any>>) target(%arg12 : memref<1024x128xf32, #tpu.memory_space<vmem>>) target_semaphore(%1 : memref<!tpu.dma_semaphore, #tpu.memory_space<semaphore_mem>>)
    %c1_i32 = arith.constant 1 : i32
    %2 = tpu.memref_slice %arg16[%c1_i32] : memref<4x!tpu.dma_semaphore, #tpu.memory_space<semaphore_mem>> -> memref<1x!tpu.dma_semaphore, #tpu.memory_space<semaphore_mem>>
    %3 = tpu.memref_squeeze %2 : memref<1x!tpu.dma_semaphore, #tpu.memory_space<semaphore_mem>> -> memref<!tpu.dma_semaphore, #tpu.memory_space<semaphore_mem>>
    tpu.enqueue_dma source(%arg5 : memref<1152x64xf32, #tpu.memory_space<any>>) target(%arg13 : memref<1152x64xf32, #tpu.memory_space<vmem>>) target_semaphore(%3 : memref<!tpu.dma_semaphore, #tpu.memory_space<semaphore_mem>>)
    %c2_i32 = arith.constant 2 : i32
    %4 = tpu.memref_slice %arg16[%c2_i32] : memref<4x!tpu.dma_semaphore, #tpu.memory_space<semaphore_mem>> -> memref<1x!tpu.dma_semaphore, #tpu.memory_space<semaphore_mem>>
    %5 = tpu.memref_squeeze %4 : memref<1x!tpu.dma_semaphore, #tpu.memory_space<semaphore_mem>> -> memref<!tpu.dma_semaphore, #tpu.memory_space<semaphore_mem>>
    tpu.enqueue_dma source(%arg6 : memref<64x512xf32, #tpu.memory_space<any>>) target(%arg14 : memref<64x512xf32, #tpu.memory_space<vmem>>) target_semaphore(%5 : memref<!tpu.dma_semaphore, #tpu.memory_space<semaphore_mem>>)
    %c3_i32 = arith.constant 3 : i32
    %6 = tpu.memref_slice %arg16[%c3_i32] : memref<4x!tpu.dma_semaphore, #tpu.memory_space<semaphore_mem>> -> memref<1x!tpu.dma_semaphore, #tpu.memory_space<semaphore_mem>>
    %7 = tpu.memref_squeeze %6 : memref<1x!tpu.dma_semaphore, #tpu.memory_space<semaphore_mem>> -> memref<!tpu.dma_semaphore, #tpu.memory_space<semaphore_mem>>
    tpu.enqueue_dma source(%arg7 : memref<512x128xf32, #tpu.memory_space<any>>) target(%arg15 : memref<512x128xf32, #tpu.memory_space<vmem>>) target_semaphore(%7 : memref<!tpu.dma_semaphore, #tpu.memory_space<semaphore_mem>>)
    %c0 = arith.constant 0 : index
    %c0_0 = arith.constant 0 : index
    %8 = vector.load %arg3[%c0, %c0_0] : memref<1x1024xf32, #tpu.memory_space<vmem>>, vector<1x64xf32>
    %c0_1 = arith.constant 0 : index
    %c128 = arith.constant 128 : index
    %9 = vector.load %arg3[%c0_1, %c128] : memref<1x1024xf32, #tpu.memory_space<vmem>>, vector<1x128xf32>
    %c0_2 = arith.constant 0 : index
    %c256 = arith.constant 256 : index
    %10 = vector.load %arg3[%c0_2, %c256] : memref<1x1024xf32, #tpu.memory_space<vmem>>, vector<1x64xf32>
    %c0_3 = arith.constant 0 : index
    %c384 = arith.constant 384 : index
    %11 = vector.load %arg3[%c0_3, %c384] : memref<1x1024xf32, #tpu.memory_space<vmem>>, vector<1x512xf32>
    %c0_4 = arith.constant 0 : index
    %c896 = arith.constant 896 : index
    %12 = vector.load %arg3[%c0_4, %c896] : memref<1x1024xf32, #tpu.memory_space<vmem>>, vector<1x128xf32>
    %c0_5 = arith.constant 0 : index
    %c0_6 = arith.constant 0 : index
    %13 = vector.load %arg1[%c0_5, %c0_6] : memref<128x256xf32, #tpu.memory_space<vmem>>, vector<128x256xf32>
    %c0_7 = arith.constant 0 : index
    %c0_8 = arith.constant 0 : index
    %14 = vector.load %arg2[%c0_7, %c0_8] : memref<256x64xf32, #tpu.memory_space<vmem>>, vector<256x64xf32>
    %cst = arith.constant dense<0.000000e+00> : vector<128x64xf32>
    %15 = tpu.matmul %13, %14, %cst {dimension_numbers = #tpu.dot_dimension_numbers<[1], [0], [0], [1], [0, 0, 1, 1], [], []>} : vector<128x256xf32>, vector<256x64xf32>, vector<128x64xf32> -> vector<128x64xf32>
    %16 = vector.broadcast %8 : vector<1x64xf32> to vector<128x64xf32>
    %17 = arith.addf %15, %16 : vector<128x64xf32>
    %cst_9 = arith.constant 0.000000e+00 : f32
    %18 = vector.broadcast %cst_9 : f32 to vector<128x64xf32>
    %19 = arith.maximumf %17, %18 : vector<128x64xf32>
    %20 = vector.extract_strided_slice %19 {offsets = [0, 0], sizes = [16, 64], strides = [1, 1]} : vector<128x64xf32> to vector<16x64xf32>
    %c0_10 = arith.constant 0 : index
    %c0_11 = arith.constant 0 : index
    %21 = vector.load %arg9[%c0_10, %c0_11] : memref<16x512xf32, #tpu.memory_space<vmem>>, vector<16x64xf32>
    tpu.vector_store %arg9[%c0_10, %c0_11], %20 {strides = array<i32>} : memref<16x512xf32, #tpu.memory_space<vmem>>, vector<16x64xf32>,
    %22 = vector.extract_strided_slice %19 {offsets = [16, 0], sizes = [16, 64], strides = [1, 1]} : vector<128x64xf32> to vector<16x64xf32>
    %c0_12 = arith.constant 0 : index
    %c64 = arith.constant 64 : index
    %23 = vector.load %arg9[%c0_12, %c64] : memref<16x512xf32, #tpu.memory_space<vmem>>, vector<16x64xf32>
    tpu.vector_store %arg9[%c0_12, %c64], %22 {strides = array<i32>} : memref<16x512xf32, #tpu.memory_space<vmem>>, vector<16x64xf32>,
    %24 = vector.extract_strided_slice %19 {offsets = [32, 0], sizes = [16, 64], strides = [1, 1]} : vector<128x64xf32> to vector<16x64xf32>
    %c0_13 = arith.constant 0 : index
    %c128_14 = arith.constant 128 : index
    %25 = vector.load %arg9[%c0_13, %c128_14] : memref<16x512xf32, #tpu.memory_space<vmem>>, vector<16x64xf32>
    tpu.vector_store %arg9[%c0_13, %c128_14], %24 {strides = array<i32>} : memref<16x512xf32, #tpu.memory_space<vmem>>, vector<16x64xf32>,
    %26 = vector.extract_strided_slice %19 {offsets = [48, 0], sizes = [16, 64], strides = [1, 1]} : vector<128x64xf32> to vector<16x64xf32>
    %c0_15 = arith.constant 0 : index
    %c192 = arith.constant 192 : index
    %27 = vector.load %arg9[%c0_15, %c192] : memref<16x512xf32, #tpu.memory_space<vmem>>, vector<16x64xf32>
    tpu.vector_store %arg9[%c0_15, %c192], %26 {strides = array<i32>} : memref<16x512xf32, #tpu.memory_space<vmem>>, vector<16x64xf32>,
    %28 = vector.extract_strided_slice %19 {offsets = [64, 0], sizes = [16, 64], strides = [1, 1]} : vector<128x64xf32> to vector<16x64xf32>
    %c0_16 = arith.constant 0 : index
    %c256_17 = arith.constant 256 : index
    %29 = vector.load %arg9[%c0_16, %c256_17] : memref<16x512xf32, #tpu.memory_space<vmem>>, vector<16x64xf32>
    tpu.vector_store %arg9[%c0_16, %c256_17], %28 {strides = array<i32>} : memref<16x512xf32, #tpu.memory_space<vmem>>, vector<16x64xf32>,
    %30 = vector.extract_strided_slice %19 {offsets = [80, 0], sizes = [16, 64], strides = [1, 1]} : vector<128x64xf32> to vector<16x64xf32>
    %c0_18 = arith.constant 0 : index
    %c320 = arith.constant 320 : index
    %31 = vector.load %arg9[%c0_18, %c320] : memref<16x512xf32, #tpu.memory_space<vmem>>, vector<16x64xf32>
    tpu.vector_store %arg9[%c0_18, %c320], %30 {strides = array<i32>} : memref<16x512xf32, #tpu.memory_space<vmem>>, vector<16x64xf32>,
    %32 = vector.extract_strided_slice %19 {offsets = [96, 0], sizes = [16, 64], strides = [1, 1]} : vector<128x64xf32> to vector<16x64xf32>
    %c0_19 = arith.constant 0 : index
    %c384_20 = arith.constant 384 : index
    %33 = vector.load %arg9[%c0_19, %c384_20] : memref<16x512xf32, #tpu.memory_space<vmem>>, vector<16x64xf32>
    tpu.vector_store %arg9[%c0_19, %c384_20], %32 {strides = array<i32>} : memref<16x512xf32, #tpu.memory_space<vmem>>, vector<16x64xf32>,
    %34 = vector.extract_strided_slice %19 {offsets = [112, 0], sizes = [16, 64], strides = [1, 1]} : vector<128x64xf32> to vector<16x64xf32>
    %c0_21 = arith.constant 0 : index
    %c448 = arith.constant 448 : index
    %35 = vector.load %arg9[%c0_21, %c448] : memref<16x512xf32, #tpu.memory_space<vmem>>, vector<16x64xf32>
    tpu.vector_store %arg9[%c0_21, %c448], %34 {strides = array<i32>} : memref<16x512xf32, #tpu.memory_space<vmem>>, vector<16x64xf32>,
    %c0_22 = arith.constant 0 : index
    %c0_23 = arith.constant 0 : index
    %36 = vector.load %arg9[%c0_22, %c0_23] : memref<16x512xf32, #tpu.memory_space<vmem>>, vector<1x256xf32>
    %c0_24 = arith.constant 0 : index
    %c0_25 = arith.constant 0 : index
    %37 = vector.load %arg10[%c0_24, %c0_25] : memref<18x1024xf32, #tpu.memory_space<vmem>>, vector<1x256xf32>
    tpu.vector_store %arg10[%c0_24, %c0_25], %36 {strides = array<i32>} : memref<18x1024xf32, #tpu.memory_space<vmem>>, vector<1x256xf32>,
    %c1 = arith.constant 1 : index
    %c0_26 = arith.constant 0 : index
    %38 = vector.load %arg9[%c1, %c0_26] : memref<16x512xf32, #tpu.memory_space<vmem>>, vector<1x256xf32>
    %c0_27 = arith.constant 0 : index
    %c256_28 = arith.constant 256 : index
    %39 = vector.load %arg10[%c0_27, %c256_28] : memref<18x1024xf32, #tpu.memory_space<vmem>>, vector<1x256xf32>
    tpu.vector_store %arg10[%c0_27, %c256_28], %38 {strides = array<i32>} : memref<18x1024xf32, #tpu.memory_space<vmem>>, vector<1x256xf32>,
    %c2 = arith.constant 2 : index
    %c0_29 = arith.constant 0 : index
    %40 = vector.load %arg9[%c2, %c0_29] : memref<16x512xf32, #tpu.memory_space<vmem>>, vector<1x256xf32>
    %c0_30 = arith.constant 0 : index
    %c512 = arith.constant 512 : index
    %41 = vector.load %arg10[%c0_30, %c512] : memref<18x1024xf32, #tpu.memory_space<vmem>>, vector<1x256xf32>
    tpu.vector_store %arg10[%c0_30, %c512], %40 {strides = array<i32>} : memref<18x1024xf32, #tpu.memory_space<vmem>>, vector<1x256xf32>,
    %c3 = arith.constant 3 : index
    %c0_31 = arith.constant 0 : index
    %42 = vector.load %arg9[%c3, %c0_31] : memref<16x512xf32, #tpu.memory_space<vmem>>, vector<1x256xf32>
    %c0_32 = arith.constant 0 : index
    %c768 = arith.constant 768 : index
    %43 = vector.load %arg10[%c0_32, %c768] : memref<18x1024xf32, #tpu.memory_space<vmem>>, vector<1x256xf32>
    tpu.vector_store %arg10[%c0_32, %c768], %42 {strides = array<i32>} : memref<18x1024xf32, #tpu.memory_space<vmem>>, vector<1x256xf32>,
    %c0_33 = arith.constant 0 : index
    %c128_34 = arith.constant 128 : index
    %44 = vector.load %arg9[%c0_33, %c128_34] : memref<16x512xf32, #tpu.memory_space<vmem>>, vector<1x256xf32>
    %c1_35 = arith.constant 1 : index
    %c0_36 = arith.constant 0 : index
    %45 = vector.load %arg10[%c1_35, %c0_36] : memref<18x1024xf32, #tpu.memory_space<vmem>>, vector<1x256xf32>
    tpu.vector_store %arg10[%c1_35, %c0_36], %44 {strides = array<i32>} : memref<18x1024xf32, #tpu.memory_space<vmem>>, vector<1x256xf32>,
    %c1_37 = arith.constant 1 : index
    %c128_38 = arith.constant 128 : index
    %46 = vector.load %arg9[%c1_37, %c128_38] : memref<16x512xf32, #tpu.memory_space<vmem>>, vector<1x256xf32>
    %c1_39 = arith.constant 1 : index
    %c256_40 = arith.constant 256 : index
    %47 = vector.load %arg10[%c1_39, %c256_40] : memref<18x1024xf32, #tpu.memory_space<vmem>>, vector<1x256xf32>
    tpu.vector_store %arg10[%c1_39, %c256_40], %46 {strides = array<i32>} : memref<18x1024xf32, #tpu.memory_space<vmem>>, vector<1x256xf32>,
    %c2_41 = arith.constant 2 : index
    %c128_42 = arith.constant 128 : index
    %48 = vector.load %arg9[%c2_41, %c128_42] : memref<16x512xf32, #tpu.memory_space<vmem>>, vector<1x256xf32>
    %c1_43 = arith.constant 1 : index
    %c512_44 = arith.constant 512 : index
    %49 = vector.load %arg10[%c1_43, %c512_44] : memref<18x1024xf32, #tpu.memory_space<vmem>>, vector<1x256xf32>
    tpu.vector_store %arg10[%c1_43, %c512_44], %48 {strides = array<i32>} : memref<18x1024xf32, #tpu.memory_space<vmem>>, vector<1x256xf32>,
    %c3_45 = arith.constant 3 : index
    %c128_46 = arith.constant 128 : index
    %50 = vector.load %arg9[%c3_45, %c128_46] : memref<16x512xf32, #tpu.memory_space<vmem>>, vector<1x256xf32>
    %c1_47 = arith.constant 1 : index
    %c768_48 = arith.constant 768 : index
    %51 = vector.load %arg10[%c1_47, %c768_48] : memref<18x1024xf32, #tpu.memory_space<vmem>>, vector<1x256xf32>
    tpu.vector_store %arg10[%c1_47, %c768_48], %50 {strides = array<i32>} : memref<18x1024xf32, #tpu.memory_space<vmem>>, vector<1x256xf32>,
    %c0_49 = arith.constant 0 : index
    %c256_50 = arith.constant 256 : index
    %52 = vector.load %arg9[%c0_49, %c256_50] : memref<16x512xf32, #tpu.memory_space<vmem>>, vector<1x256xf32>
    %c2_51 = arith.constant 2 : index
    %c0_52 = arith.constant 0 : index
    %53 = vector.load %arg10[%c2_51, %c0_52] : memref<18x1024xf32, #tpu.memory_space<vmem>>, vector<1x256xf32>
    tpu.vector_store %arg10[%c2_51, %c0_52], %52 {strides = array<i32>} : memref<18x1024xf32, #tpu.memory_space<vmem>>, vector<1x256xf32>,
    %c1_53 = arith.constant 1 : index
    %c256_54 = arith.constant 256 : index
    %54 = vector.load %arg9[%c1_53, %c256_54] : memref<16x512xf32, #tpu.memory_space<vmem>>, vector<1x256xf32>
    %c2_55 = arith.constant 2 : index
    %c256_56 = arith.constant 256 : index
    %55 = vector.load %arg10[%c2_55, %c256_56] : memref<18x1024xf32, #tpu.memory_space<vmem>>, vector<1x256xf32>
    tpu.vector_store %arg10[%c2_55, %c256_56], %54 {strides = array<i32>} : memref<18x1024xf32, #tpu.memory_space<vmem>>, vector<1x256xf32>,
    %c2_57 = arith.constant 2 : index
    %c256_58 = arith.constant 256 : index
    %56 = vector.load %arg9[%c2_57, %c256_58] : memref<16x512xf32, #tpu.memory_space<vmem>>, vector<1x256xf32>
    %c2_59 = arith.constant 2 : index
    %c512_60 = arith.constant 512 : index
    %57 = vector.load %arg10[%c2_59, %c512_60] : memref<18x1024xf32, #tpu.memory_space<vmem>>, vector<1x256xf32>
    tpu.vector_store %arg10[%c2_59, %c512_60], %56 {strides = array<i32>} : memref<18x1024xf32, #tpu.memory_space<vmem>>, vector<1x256xf32>,
    %c3_61 = arith.constant 3 : index
    %c256_62 = arith.constant 256 : index
    %58 = vector.load %arg9[%c3_61, %c256_62] : memref<16x512xf32, #tpu.memory_space<vmem>>, vector<1x256xf32>
    %c2_63 = arith.constant 2 : index
    %c768_64 = arith.constant 768 : index
    %59 = vector.load %arg10[%c2_63, %c768_64] : memref<18x1024xf32, #tpu.memory_space<vmem>>, vector<1x256xf32>
    tpu.vector_store %arg10[%c2_63, %c768_64], %58 {strides = array<i32>} : memref<18x1024xf32, #tpu.memory_space<vmem>>, vector<1x256xf32>,
    %c2_65 = arith.constant 2 : index
    %c0_66 = arith.constant 0 : index
    %60 = vector.load %arg9[%c2_65, %c0_66] : memref<16x512xf32, #tpu.memory_space<vmem>>, vector<1x256xf32>
    %c3_67 = arith.constant 3 : index
    %c0_68 = arith.constant 0 : index
    %61 = vector.load %arg10[%c3_67, %c0_68] : memref<18x1024xf32, #tpu.memory_space<vmem>>, vector<1x256xf32>
    tpu.vector_store %arg10[%c3_67, %c0_68], %60 {strides = array<i32>} : memref<18x1024xf32, #tpu.memory_space<vmem>>, vector<1x256xf32>,
    %c3_69 = arith.constant 3 : index
    %c0_70 = arith.constant 0 : index
    %62 = vector.load %arg9[%c3_69, %c0_70] : memref<16x512xf32, #tpu.memory_space<vmem>>, vector<1x256xf32>
    %c3_71 = arith.constant 3 : index
    %c256_72 = arith.constant 256 : index
    %63 = vector.load %arg10[%c3_71, %c256_72] : memref<18x1024xf32, #tpu.memory_space<vmem>>, vector<1x256xf32>
    tpu.vector_store %arg10[%c3_71, %c256_72], %62 {strides = array<i32>} : memref<18x1024xf32, #tpu.memory_space<vmem>>, vector<1x256xf32>,
    %c4 = arith.constant 4 : index
    %c0_73 = arith.constant 0 : index
    %64 = vector.load %arg9[%c4, %c0_73] : memref<16x512xf32, #tpu.memory_space<vmem>>, vector<1x256xf32>
    %c3_74 = arith.constant 3 : index
    %c512_75 = arith.constant 512 : index
    %65 = vector.load %arg10[%c3_74, %c512_75] : memref<18x1024xf32, #tpu.memory_space<vmem>>, vector<1x256xf32>
    tpu.vector_store %arg10[%c3_74, %c512_75], %64 {strides = array<i32>} : memref<18x1024xf32, #tpu.memory_space<vmem>>, vector<1x256xf32>,
    %c5 = arith.constant 5 : index
    %c0_76 = arith.constant 0 : index
    %66 = vector.load %arg9[%c5, %c0_76] : memref<16x512xf32, #tpu.memory_space<vmem>>, vector<1x256xf32>
    %c3_77 = arith.constant 3 : index
    %c768_78 = arith.constant 768 : index
    %67 = vector.load %arg10[%c3_77, %c768_78] : memref<18x1024xf32, #tpu.memory_space<vmem>>, vector<1x256xf32>
    tpu.vector_store %arg10[%c3_77, %c768_78], %66 {strides = array<i32>} : memref<18x1024xf32, #tpu.memory_space<vmem>>, vector<1x256xf32>,
    %c2_79 = arith.constant 2 : index
    %c128_80 = arith.constant 128 : index
    %68 = vector.load %arg9[%c2_79, %c128_80] : memref<16x512xf32, #tpu.memory_space<vmem>>, vector<1x256xf32>
    %c4_81 = arith.constant 4 : index
    %c0_82 = arith.constant 0 : index
    %69 = vector.load %arg10[%c4_81, %c0_82] : memref<18x1024xf32, #tpu.memory_space<vmem>>, vector<1x256xf32>
    tpu.vector_store %arg10[%c4_81, %c0_82], %68 {strides = array<i32>} : memref<18x1024xf32, #tpu.memory_space<vmem>>, vector<1x256xf32>,
    %c3_83 = arith.constant 3 : index
    %c128_84 = arith.constant 128 : index
    %70 = vector.load %arg9[%c3_83, %c128_84] : memref<16x512xf32, #tpu.memory_space<vmem>>, vector<1x256xf32>
    %c4_85 = arith.constant 4 : index
    %c256_86 = arith.constant 256 : index
    %71 = vector.load %arg10[%c4_85, %c256_86] : memref<18x1024xf32, #tpu.memory_space<vmem>>, vector<1x256xf32>
    tpu.vector_store %arg10[%c4_85, %c256_86], %70 {strides = array<i32>} : memref<18x1024xf32, #tpu.memory_space<vmem>>, vector<1x256xf32>,
    %c4_87 = arith.constant 4 : index
    %c128_88 = arith.constant 128 : index
    %72 = vector.load %arg9[%c4_87, %c128_88] : memref<16x512xf32, #tpu.memory_space<vmem>>, vector<1x256xf32>
    %c4_89 = arith.constant 4 : index
    %c512_90 = arith.constant 512 : index
    %73 = vector.load %arg10[%c4_89, %c512_90] : memref<18x1024xf32, #tpu.memory_space<vmem>>, vector<1x256xf32>
    tpu.vector_store %arg10[%c4_89, %c512_90], %72 {strides = array<i32>} : memref<18x1024xf32, #tpu.memory_space<vmem>>, vector<1x256xf32>,
    %c5_91 = arith.constant 5 : index
    %c128_92 = arith.constant 128 : index
    %74 = vector.load %arg9[%c5_91, %c128_92] : memref<16x512xf32, #tpu.memory_space<vmem>>, vector<1x256xf32>
    %c4_93 = arith.constant 4 : index
    %c768_94 = arith.constant 768 : index
    %75 = vector.load %arg10[%c4_93, %c768_94] : memref<18x1024xf32, #tpu.memory_space<vmem>>, vector<1x256xf32>
    tpu.vector_store %arg10[%c4_93, %c768_94], %74 {strides = array<i32>} : memref<18x1024xf32, #tpu.memory_space<vmem>>, vector<1x256xf32>,
    %c2_95 = arith.constant 2 : index
    %c256_96 = arith.constant 256 : index
    %76 = vector.load %arg9[%c2_95, %c256_96] : memref<16x512xf32, #tpu.memory_space<vmem>>, vector<1x256xf32>
    %c5_97 = arith.constant 5 : index
    %c0_98 = arith.constant 0 : index
    %77 = vector.load %arg10[%c5_97, %c0_98] : memref<18x1024xf32, #tpu.memory_space<vmem>>, vector<1x256xf32>
    tpu.vector_store %arg10[%c5_97, %c0_98], %76 {strides = array<i32>} : memref<18x1024xf32, #tpu.memory_space<vmem>>, vector<1x256xf32>,
    %c3_99 = arith.constant 3 : index
    %c256_100 = arith.constant 256 : index
    %78 = vector.load %arg9[%c3_99, %c256_100] : memref<16x512xf32, #tpu.memory_space<vmem>>, vector<1x256xf32>
    %c5_101 = arith.constant 5 : index
    %c256_102 = arith.constant 256 : index
    %79 = vector.load %arg10[%c5_101, %c256_102] : memref<18x1024xf32, #tpu.memory_space<vmem>>, vector<1x256xf32>
    tpu.vector_store %arg10[%c5_101, %c256_102], %78 {strides = array<i32>} : memref<18x1024xf32, #tpu.memory_space<vmem>>, vector<1x256xf32>,
    %c4_103 = arith.constant 4 : index
    %c256_104 = arith.constant 256 : index
    %80 = vector.load %arg9[%c4_103, %c256_104] : memref<16x512xf32, #tpu.memory_space<vmem>>, vector<1x256xf32>
    %c5_105 = arith.constant 5 : index
    %c512_106 = arith.constant 512 : index
    %81 = vector.load %arg10[%c5_105, %c512_106] : memref<18x1024xf32, #tpu.memory_space<vmem>>, vector<1x256xf32>
    tpu.vector_store %arg10[%c5_105, %c512_106], %80 {strides = array<i32>} : memref<18x1024xf32, #tpu.memory_space<vmem>>, vector<1x256xf32>,
    %c5_107 = arith.constant 5 : index
    %c256_108 = arith.constant 256 : index
    %82 = vector.load %arg9[%c5_107, %c256_108] : memref<16x512xf32, #tpu.memory_space<vmem>>, vector<1x256xf32>
    %c5_109 = arith.constant 5 : index
    %c768_110 = arith.constant 768 : index
    %83 = vector.load %arg10[%c5_109, %c768_110] : memref<18x1024xf32, #tpu.memory_space<vmem>>, vector<1x256xf32>
    tpu.vector_store %arg10[%c5_109, %c768_110], %82 {strides = array<i32>} : memref<18x1024xf32, #tpu.memory_space<vmem>>, vector<1x256xf32>,
    %c4_111 = arith.constant 4 : index
    %c0_112 = arith.constant 0 : index
    %84 = vector.load %arg9[%c4_111, %c0_112] : memref<16x512xf32, #tpu.memory_space<vmem>>, vector<1x256xf32>
    %c6 = arith.constant 6 : index
    %c0_113 = arith.constant 0 : index
    %85 = vector.load %arg10[%c6, %c0_113] : memref<18x1024xf32, #tpu.memory_space<vmem>>, vector<1x256xf32>
    tpu.vector_store %arg10[%c6, %c0_113], %84 {strides = array<i32>} : memref<18x1024xf32, #tpu.memory_space<vmem>>, vector<1x256xf32>,
    %c5_114 = arith.constant 5 : index
    %c0_115 = arith.constant 0 : index
    %86 = vector.load %arg9[%c5_114, %c0_115] : memref<16x512xf32, #tpu.memory_space<vmem>>, vector<1x256xf32>
    %c6_116 = arith.constant 6 : index
    %c256_117 = arith.constant 256 : index
    %87 = vector.load %arg10[%c6_116, %c256_117] : memref<18x1024xf32, #tpu.memory_space<vmem>>, vector<1x256xf32>
    tpu.vector_store %arg10[%c6_116, %c256_117], %86 {strides = array<i32>} : memref<18x1024xf32, #tpu.memory_space<vmem>>, vector<1x256xf32>,
    %c6_118 = arith.constant 6 : index
    %c0_119 = arith.constant 0 : index
    %88 = vector.load %arg9[%c6_118, %c0_119] : memref<16x512xf32, #tpu.memory_space<vmem>>, vector<1x256xf32>
    %c6_120 = arith.constant 6 : index
    %c512_121 = arith.constant 512 : index
    %89 = vector.load %arg10[%c6_120, %c512_121] : memref<18x1024xf32, #tpu.memory_space<vmem>>, vector<1x256xf32>
    tpu.vector_store %arg10[%c6_120, %c512_121], %88 {strides = array<i32>} : memref<18x1024xf32, #tpu.memory_space<vmem>>, vector<1x256xf32>,
    %c7 = arith.constant 7 : index
    %c0_122 = arith.constant 0 : index
    %90 = vector.load %arg9[%c7, %c0_122] : memref<16x512xf32, #tpu.memory_space<vmem>>, vector<1x256xf32>
    %c6_123 = arith.constant 6 : index
    %c768_124 = arith.constant 768 : index
    %91 = vector.load %arg10[%c6_123, %c768_124] : memref<18x1024xf32, #tpu.memory_space<vmem>>, vector<1x256xf32>
    tpu.vector_store %arg10[%c6_123, %c768_124], %90 {strides = array<i32>} : memref<18x1024xf32, #tpu.memory_space<vmem>>, vector<1x256xf32>,
    %c4_125 = arith.constant 4 : index
    %c128_126 = arith.constant 128 : index
    %92 = vector.load %arg9[%c4_125, %c128_126] : memref<16x512xf32, #tpu.memory_space<vmem>>, vector<1x256xf32>
    %c7_127 = arith.constant 7 : index
    %c0_128 = arith.constant 0 : index
    %93 = vector.load %arg10[%c7_127, %c0_128] : memref<18x1024xf32, #tpu.memory_space<vmem>>, vector<1x256xf32>
    tpu.vector_store %arg10[%c7_127, %c0_128], %92 {strides = array<i32>} : memref<18x1024xf32, #tpu.memory_space<vmem>>, vector<1x256xf32>,
    %c5_129 = arith.constant 5 : index
    %c128_130 = arith.constant 128 : index
    %94 = vector.load %arg9[%c5_129, %c128_130] : memref<16x512xf32, #tpu.memory_space<vmem>>, vector<1x256xf32>
    %c7_131 = arith.constant 7 : index
    %c256_132 = arith.constant 256 : index
    %95 = vector.load %arg10[%c7_131, %c256_132] : memref<18x1024xf32, #tpu.memory_space<vmem>>, vector<1x256xf32>
    tpu.vector_store %arg10[%c7_131, %c256_132], %94 {strides = array<i32>} : memref<18x1024xf32, #tpu.memory_space<vmem>>, vector<1x256xf32>,
    %c6_133 = arith.constant 6 : index
    %c128_134 = arith.constant 128 : index
    %96 = vector.load %arg9[%c6_133, %c128_134] : memref<16x512xf32, #tpu.memory_space<vmem>>, vector<1x256xf32>
    %c7_135 = arith.constant 7 : index
    %c512_136 = arith.constant 512 : index
    %97 = vector.load %arg10[%c7_135, %c512_136] : memref<18x1024xf32, #tpu.memory_space<vmem>>, vector<1x256xf32>
    tpu.vector_store %arg10[%c7_135, %c512_136], %96 {strides = array<i32>} : memref<18x1024xf32, #tpu.memory_space<vmem>>, vector<1x256xf32>,
    %c7_137 = arith.constant 7 : index
    %c128_138 = arith.constant 128 : index
    %98 = vector.load %arg9[%c7_137, %c128_138] : memref<16x512xf32, #tpu.memory_space<vmem>>, vector<1x256xf32>
    %c7_139 = arith.constant 7 : index
    %c768_140 = arith.constant 768 : index
    %99 = vector.load %arg10[%c7_139, %c768_140] : memref<18x1024xf32, #tpu.memory_space<vmem>>, vector<1x256xf32>
    tpu.vector_store %arg10[%c7_139, %c768_140], %98 {strides = array<i32>} : memref<18x1024xf32, #tpu.memory_space<vmem>>, vector<1x256xf32>,
    %c4_141 = arith.constant 4 : index
    %c256_142 = arith.constant 256 : index
    %100 = vector.load %arg9[%c4_141, %c256_142] : memref<16x512xf32, #tpu.memory_space<vmem>>, vector<1x256xf32>
    %c8 = arith.constant 8 : index
    %c0_143 = arith.constant 0 : index
    %101 = vector.load %arg10[%c8, %c0_143] : memref<18x1024xf32, #tpu.memory_space<vmem>>, vector<1x256xf32>
    tpu.vector_store %arg10[%c8, %c0_143], %100 {strides = array<i32>} : memref<18x1024xf32, #tpu.memory_space<vmem>>, vector<1x256xf32>,
    %c5_144 = arith.constant 5 : index
    %c256_145 = arith.constant 256 : index
    %102 = vector.load %arg9[%c5_144, %c256_145] : memref<16x512xf32, #tpu.memory_space<vmem>>, vector<1x256xf32>
    %c8_146 = arith.constant 8 : index
    %c256_147 = arith.constant 256 : index
    %103 = vector.load %arg10[%c8_146, %c256_147] : memref<18x1024xf32, #tpu.memory_space<vmem>>, vector<1x256xf32>
    tpu.vector_store %arg10[%c8_146, %c256_147], %102 {strides = array<i32>} : memref<18x1024xf32, #tpu.memory_space<vmem>>, vector<1x256xf32>,
    %c6_148 = arith.constant 6 : index
    %c256_149 = arith.constant 256 : index
    %104 = vector.load %arg9[%c6_148, %c256_149] : memref<16x512xf32, #tpu.memory_space<vmem>>, vector<1x256xf32>
    %c8_150 = arith.constant 8 : index
    %c512_151 = arith.constant 512 : index
    %105 = vector.load %arg10[%c8_150, %c512_151] : memref<18x1024xf32, #tpu.memory_space<vmem>>, vector<1x256xf32>
    tpu.vector_store %arg10[%c8_150, %c512_151], %104 {strides = array<i32>} : memref<18x1024xf32, #tpu.memory_space<vmem>>, vector<1x256xf32>,
    %c7_152 = arith.constant 7 : index
    %c256_153 = arith.constant 256 : index
    %106 = vector.load %arg9[%c7_152, %c256_153] : memref<16x512xf32, #tpu.memory_space<vmem>>, vector<1x256xf32>
    %c8_154 = arith.constant 8 : index
    %c768_155 = arith.constant 768 : index
    %107 = vector.load %arg10[%c8_154, %c768_155] : memref<18x1024xf32, #tpu.memory_space<vmem>>, vector<1x256xf32>
    tpu.vector_store %arg10[%c8_154, %c768_155], %106 {strides = array<i32>} : memref<18x1024xf32, #tpu.memory_space<vmem>>, vector<1x256xf32>,
    %c8_156 = arith.constant 8 : index
    %c0_157 = arith.constant 0 : index
    %108 = vector.load %arg9[%c8_156, %c0_157] : memref<16x512xf32, #tpu.memory_space<vmem>>, vector<1x256xf32>
    %c9 = arith.constant 9 : index
    %c0_158 = arith.constant 0 : index
    %109 = vector.load %arg10[%c9, %c0_158] : memref<18x1024xf32, #tpu.memory_space<vmem>>, vector<1x256xf32>
    tpu.vector_store %arg10[%c9, %c0_158], %108 {strides = array<i32>} : memref<18x1024xf32, #tpu.memory_space<vmem>>, vector<1x256xf32>,
    %c9_159 = arith.constant 9 : index
    %c0_160 = arith.constant 0 : index
    %110 = vector.load %arg9[%c9_159, %c0_160] : memref<16x512xf32, #tpu.memory_space<vmem>>, vector<1x256xf32>
    %c9_161 = arith.constant 9 : index
    %c256_162 = arith.constant 256 : index
    %111 = vector.load %arg10[%c9_161, %c256_162] : memref<18x1024xf32, #tpu.memory_space<vmem>>, vector<1x256xf32>
    tpu.vector_store %arg10[%c9_161, %c256_162], %110 {strides = array<i32>} : memref<18x1024xf32, #tpu.memory_space<vmem>>, vector<1x256xf32>,
    %c10 = arith.constant 10 : index
    %c0_163 = arith.constant 0 : index
    %112 = vector.load %arg9[%c10, %c0_163] : memref<16x512xf32, #tpu.memory_space<vmem>>, vector<1x256xf32>
    %c9_164 = arith.constant 9 : index
    %c512_165 = arith.constant 512 : index
    %113 = vector.load %arg10[%c9_164, %c512_165] : memref<18x1024xf32, #tpu.memory_space<vmem>>, vector<1x256xf32>
    tpu.vector_store %arg10[%c9_164, %c512_165], %112 {strides = array<i32>} : memref<18x1024xf32, #tpu.memory_space<vmem>>, vector<1x256xf32>,
    %c11 = arith.constant 11 : index
    %c0_166 = arith.constant 0 : index
    %114 = vector.load %arg9[%c11, %c0_166] : memref<16x512xf32, #tpu.memory_space<vmem>>, vector<1x256xf32>
    %c9_167 = arith.constant 9 : index
    %c768_168 = arith.constant 768 : index
    %115 = vector.load %arg10[%c9_167, %c768_168] : memref<18x1024xf32, #tpu.memory_space<vmem>>, vector<1x256xf32>
    tpu.vector_store %arg10[%c9_167, %c768_168], %114 {strides = array<i32>} : memref<18x1024xf32, #tpu.memory_space<vmem>>, vector<1x256xf32>,
    %c8_169 = arith.constant 8 : index
    %c128_170 = arith.constant 128 : index
    %116 = vector.load %arg9[%c8_169, %c128_170] : memref<16x512xf32, #tpu.memory_space<vmem>>, vector<1x256xf32>
    %c10_171 = arith.constant 10 : index
    %c0_172 = arith.constant 0 : index
    %117 = vector.load %arg10[%c10_171, %c0_172] : memref<18x1024xf32, #tpu.memory_space<vmem>>, vector<1x256xf32>
    tpu.vector_store %arg10[%c10_171, %c0_172], %116 {strides = array<i32>} : memref<18x1024xf32, #tpu.memory_space<vmem>>, vector<1x256xf32>,
    %c9_173 = arith.constant 9 : index
    %c128_174 = arith.constant 128 : index
    %118 = vector.load %arg9[%c9_173, %c128_174] : memref<16x512xf32, #tpu.memory_space<vmem>>, vector<1x256xf32>
    %c10_175 = arith.constant 10 : index
    %c256_176 = arith.constant 256 : index
    %119 = vector.load %arg10[%c10_175, %c256_176] : memref<18x1024xf32, #tpu.memory_space<vmem>>, vector<1x256xf32>
    tpu.vector_store %arg10[%c10_175, %c256_176], %118 {strides = array<i32>} : memref<18x1024xf32, #tpu.memory_space<vmem>>, vector<1x256xf32>,
    %c10_177 = arith.constant 10 : index
    %c128_178 = arith.constant 128 : index
    %120 = vector.load %arg9[%c10_177, %c128_178] : memref<16x512xf32, #tpu.memory_space<vmem>>, vector<1x256xf32>
    %c10_179 = arith.constant 10 : index
    %c512_180 = arith.constant 512 : index
    %121 = vector.load %arg10[%c10_179, %c512_180] : memref<18x1024xf32, #tpu.memory_space<vmem>>, vector<1x256xf32>
    tpu.vector_store %arg10[%c10_179, %c512_180], %120 {strides = array<i32>} : memref<18x1024xf32, #tpu.memory_space<vmem>>, vector<1x256xf32>,
    %c11_181 = arith.constant 11 : index
    %c128_182 = arith.constant 128 : index
    %122 = vector.load %arg9[%c11_181, %c128_182] : memref<16x512xf32, #tpu.memory_space<vmem>>, vector<1x256xf32>
    %c10_183 = arith.constant 10 : index
    %c768_184 = arith.constant 768 : index
    %123 = vector.load %arg10[%c10_183, %c768_184] : memref<18x1024xf32, #tpu.memory_space<vmem>>, vector<1x256xf32>
    tpu.vector_store %arg10[%c10_183, %c768_184], %122 {strides = array<i32>} : memref<18x1024xf32, #tpu.memory_space<vmem>>, vector<1x256xf32>,
    %c8_185 = arith.constant 8 : index
    %c256_186 = arith.constant 256 : index
    %124 = vector.load %arg9[%c8_185, %c256_186] : memref<16x512xf32, #tpu.memory_space<vmem>>, vector<1x256xf32>
    %c11_187 = arith.constant 11 : index
    %c0_188 = arith.constant 0 : index
    %125 = vector.load %arg10[%c11_187, %c0_188] : memref<18x1024xf32, #tpu.memory_space<vmem>>, vector<1x256xf32>
    tpu.vector_store %arg10[%c11_187, %c0_188], %124 {strides = array<i32>} : memref<18x1024xf32, #tpu.memory_space<vmem>>, vector<1x256xf32>,
    %c9_189 = arith.constant 9 : index
    %c256_190 = arith.constant 256 : index
    %126 = vector.load %arg9[%c9_189, %c256_190] : memref<16x512xf32, #tpu.memory_space<vmem>>, vector<1x256xf32>
    %c11_191 = arith.constant 11 : index
    %c256_192 = arith.constant 256 : index
    %127 = vector.load %arg10[%c11_191, %c256_192] : memref<18x1024xf32, #tpu.memory_space<vmem>>, vector<1x256xf32>
    tpu.vector_store %arg10[%c11_191, %c256_192], %126 {strides = array<i32>} : memref<18x1024xf32, #tpu.memory_space<vmem>>, vector<1x256xf32>,
    %c10_193 = arith.constant 10 : index
    %c256_194 = arith.constant 256 : index
    %128 = vector.load %arg9[%c10_193, %c256_194] : memref<16x512xf32, #tpu.memory_space<vmem>>, vector<1x256xf32>
    %c11_195 = arith.constant 11 : index
    %c512_196 = arith.constant 512 : index
    %129 = vector.load %arg10[%c11_195, %c512_196] : memref<18x1024xf32, #tpu.memory_space<vmem>>, vector<1x256xf32>
    tpu.vector_store %arg10[%c11_195, %c512_196], %128 {strides = array<i32>} : memref<18x1024xf32, #tpu.memory_space<vmem>>, vector<1x256xf32>,
    %c11_197 = arith.constant 11 : index
    %c256_198 = arith.constant 256 : index
    %130 = vector.load %arg9[%c11_197, %c256_198] : memref<16x512xf32, #tpu.memory_space<vmem>>, vector<1x256xf32>
    %c11_199 = arith.constant 11 : index
    %c768_200 = arith.constant 768 : index
    %131 = vector.load %arg10[%c11_199, %c768_200] : memref<18x1024xf32, #tpu.memory_space<vmem>>, vector<1x256xf32>
    tpu.vector_store %arg10[%c11_199, %c768_200], %130 {strides = array<i32>} : memref<18x1024xf32, #tpu.memory_space<vmem>>, vector<1x256xf32>,
    %c10_201 = arith.constant 10 : index
    %c0_202 = arith.constant 0 : index
    %132 = vector.load %arg9[%c10_201, %c0_202] : memref<16x512xf32, #tpu.memory_space<vmem>>, vector<1x256xf32>
    %c12 = arith.constant 12 : index
    %c0_203 = arith.constant 0 : index
    %133 = vector.load %arg10[%c12, %c0_203] : memref<18x1024xf32, #tpu.memory_space<vmem>>, vector<1x256xf32>
    tpu.vector_store %arg10[%c12, %c0_203], %132 {strides = array<i32>} : memref<18x1024xf32, #tpu.memory_space<vmem>>, vector<1x256xf32>,
    %c11_204 = arith.constant 11 : index
    %c0_205 = arith.constant 0 : index
    %134 = vector.load %arg9[%c11_204, %c0_205] : memref<16x512xf32, #tpu.memory_space<vmem>>, vector<1x256xf32>
    %c12_206 = arith.constant 12 : index
    %c256_207 = arith.constant 256 : index
    %135 = vector.load %arg10[%c12_206, %c256_207] : memref<18x1024xf32, #tpu.memory_space<vmem>>, vector<1x256xf32>
    tpu.vector_store %arg10[%c12_206, %c256_207], %134 {strides = array<i32>} : memref<18x1024xf32, #tpu.memory_space<vmem>>, vector<1x256xf32>,
    %c12_208 = arith.constant 12 : index
    %c0_209 = arith.constant 0 : index
    %136 = vector.load %arg9[%c12_208, %c0_209] : memref<16x512xf32, #tpu.memory_space<vmem>>, vector<1x256xf32>
    %c12_210 = arith.constant 12 : index
    %c512_211 = arith.constant 512 : index
    %137 = vector.load %arg10[%c12_210, %c512_211] : memref<18x1024xf32, #tpu.memory_space<vmem>>, vector<1x256xf32>
    tpu.vector_store %arg10[%c12_210, %c512_211], %136 {strides = array<i32>} : memref<18x1024xf32, #tpu.memory_space<vmem>>, vector<1x256xf32>,
    %c13 = arith.constant 13 : index
    %c0_212 = arith.constant 0 : index
    %138 = vector.load %arg9[%c13, %c0_212] : memref<16x512xf32, #tpu.memory_space<vmem>>, vector<1x256xf32>
    %c12_213 = arith.constant 12 : index
    %c768_214 = arith.constant 768 : index
    %139 = vector.load %arg10[%c12_213, %c768_214] : memref<18x1024xf32, #tpu.memory_space<vmem>>, vector<1x256xf32>
    tpu.vector_store %arg10[%c12_213, %c768_214], %138 {strides = array<i32>} : memref<18x1024xf32, #tpu.memory_space<vmem>>, vector<1x256xf32>,
    %c10_215 = arith.constant 10 : index
    %c128_216 = arith.constant 128 : index
    %140 = vector.load %arg9[%c10_215, %c128_216] : memref<16x512xf32, #tpu.memory_space<vmem>>, vector<1x256xf32>
    %c13_217 = arith.constant 13 : index
    %c0_218 = arith.constant 0 : index
    %141 = vector.load %arg10[%c13_217, %c0_218] : memref<18x1024xf32, #tpu.memory_space<vmem>>, vector<1x256xf32>
    tpu.vector_store %arg10[%c13_217, %c0_218], %140 {strides = array<i32>} : memref<18x1024xf32, #tpu.memory_space<vmem>>, vector<1x256xf32>,
    %c11_219 = arith.constant 11 : index
    %c128_220 = arith.constant 128 : index
    %142 = vector.load %arg9[%c11_219, %c128_220] : memref<16x512xf32, #tpu.memory_space<vmem>>, vector<1x256xf32>
    %c13_221 = arith.constant 13 : index
    %c256_222 = arith.constant 256 : index
    %143 = vector.load %arg10[%c13_221, %c256_222] : memref<18x1024xf32, #tpu.memory_space<vmem>>, vector<1x256xf32>
    tpu.vector_store %arg10[%c13_221, %c256_222], %142 {strides = array<i32>} : memref<18x1024xf32, #tpu.memory_space<vmem>>, vector<1x256xf32>,
    %c12_223 = arith.constant 12 : index
    %c128_224 = arith.constant 128 : index
    %144 = vector.load %arg9[%c12_223, %c128_224] : memref<16x512xf32, #tpu.memory_space<vmem>>, vector<1x256xf32>
    %c13_225 = arith.constant 13 : index
    %c512_226 = arith.constant 512 : index
    %145 = vector.load %arg10[%c13_225, %c512_226] : memref<18x1024xf32, #tpu.memory_space<vmem>>, vector<1x256xf32>
    tpu.vector_store %arg10[%c13_225, %c512_226], %144 {strides = array<i32>} : memref<18x1024xf32, #tpu.memory_space<vmem>>, vector<1x256xf32>,
    %c13_227 = arith.constant 13 : index
    %c128_228 = arith.constant 128 : index
    %146 = vector.load %arg9[%c13_227, %c128_228] : memref<16x512xf32, #tpu.memory_space<vmem>>, vector<1x256xf32>
    %c13_229 = arith.constant 13 : index
    %c768_230 = arith.constant 768 : index
    %147 = vector.load %arg10[%c13_229, %c768_230] : memref<18x1024xf32, #tpu.memory_space<vmem>>, vector<1x256xf32>
    tpu.vector_store %arg10[%c13_229, %c768_230], %146 {strides = array<i32>} : memref<18x1024xf32, #tpu.memory_space<vmem>>, vector<1x256xf32>,
    %c10_231 = arith.constant 10 : index
    %c256_232 = arith.constant 256 : index
    %148 = vector.load %arg9[%c10_231, %c256_232] : memref<16x512xf32, #tpu.memory_space<vmem>>, vector<1x256xf32>
    %c14 = arith.constant 14 : index
    %c0_233 = arith.constant 0 : index
    %149 = vector.load %arg10[%c14, %c0_233] : memref<18x1024xf32, #tpu.memory_space<vmem>>, vector<1x256xf32>
    tpu.vector_store %arg10[%c14, %c0_233], %148 {strides = array<i32>} : memref<18x1024xf32, #tpu.memory_space<vmem>>, vector<1x256xf32>,
    %c11_234 = arith.constant 11 : index
    %c256_235 = arith.constant 256 : index
    %150 = vector.load %arg9[%c11_234, %c256_235] : memref<16x512xf32, #tpu.memory_space<vmem>>, vector<1x256xf32>
    %c14_236 = arith.constant 14 : index
    %c256_237 = arith.constant 256 : index
    %151 = vector.load %arg10[%c14_236, %c256_237] : memref<18x1024xf32, #tpu.memory_space<vmem>>, vector<1x256xf32>
    tpu.vector_store %arg10[%c14_236, %c256_237], %150 {strides = array<i32>} : memref<18x1024xf32, #tpu.memory_space<vmem>>, vector<1x256xf32>,
    %c12_238 = arith.constant 12 : index
    %c256_239 = arith.constant 256 : index
    %152 = vector.load %arg9[%c12_238, %c256_239] : memref<16x512xf32, #tpu.memory_space<vmem>>, vector<1x256xf32>
    %c14_240 = arith.constant 14 : index
    %c512_241 = arith.constant 512 : index
    %153 = vector.load %arg10[%c14_240, %c512_241] : memref<18x1024xf32, #tpu.memory_space<vmem>>, vector<1x256xf32>
    tpu.vector_store %arg10[%c14_240, %c512_241], %152 {strides = array<i32>} : memref<18x1024xf32, #tpu.memory_space<vmem>>, vector<1x256xf32>,
    %c13_242 = arith.constant 13 : index
    %c256_243 = arith.constant 256 : index
    %154 = vector.load %arg9[%c13_242, %c256_243] : memref<16x512xf32, #tpu.memory_space<vmem>>, vector<1x256xf32>
    %c14_244 = arith.constant 14 : index
    %c768_245 = arith.constant 768 : index
    %155 = vector.load %arg10[%c14_244, %c768_245] : memref<18x1024xf32, #tpu.memory_space<vmem>>, vector<1x256xf32>
    tpu.vector_store %arg10[%c14_244, %c768_245], %154 {strides = array<i32>} : memref<18x1024xf32, #tpu.memory_space<vmem>>, vector<1x256xf32>,
    %c12_246 = arith.constant 12 : index
    %c0_247 = arith.constant 0 : index
    %156 = vector.load %arg9[%c12_246, %c0_247] : memref<16x512xf32, #tpu.memory_space<vmem>>, vector<1x256xf32>
    %c15 = arith.constant 15 : index
    %c0_248 = arith.constant 0 : index
    %157 = vector.load %arg10[%c15, %c0_248] : memref<18x1024xf32, #tpu.memory_space<vmem>>, vector<1x256xf32>
    tpu.vector_store %arg10[%c15, %c0_248], %156 {strides = array<i32>} : memref<18x1024xf32, #tpu.memory_space<vmem>>, vector<1x256xf32>,
    %c13_249 = arith.constant 13 : index
    %c0_250 = arith.constant 0 : index
    %158 = vector.load %arg9[%c13_249, %c0_250] : memref<16x512xf32, #tpu.memory_space<vmem>>, vector<1x256xf32>
    %c15_251 = arith.constant 15 : index
    %c256_252 = arith.constant 256 : index
    %159 = vector.load %arg10[%c15_251, %c256_252] : memref<18x1024xf32, #tpu.memory_space<vmem>>, vector<1x256xf32>
    tpu.vector_store %arg10[%c15_251, %c256_252], %158 {strides = array<i32>} : memref<18x1024xf32, #tpu.memory_space<vmem>>, vector<1x256xf32>,
    %c14_253 = arith.constant 14 : index
    %c0_254 = arith.constant 0 : index
    %160 = vector.load %arg9[%c14_253, %c0_254] : memref<16x512xf32, #tpu.memory_space<vmem>>, vector<1x256xf32>
    %c15_255 = arith.constant 15 : index
    %c512_256 = arith.constant 512 : index
    %161 = vector.load %arg10[%c15_255, %c512_256] : memref<18x1024xf32, #tpu.memory_space<vmem>>, vector<1x256xf32>
    tpu.vector_store %arg10[%c15_255, %c512_256], %160 {strides = array<i32>} : memref<18x1024xf32, #tpu.memory_space<vmem>>, vector<1x256xf32>,
    %c15_257 = arith.constant 15 : index
    %c0_258 = arith.constant 0 : index
    %162 = vector.load %arg9[%c15_257, %c0_258] : memref<16x512xf32, #tpu.memory_space<vmem>>, vector<1x256xf32>
    %c15_259 = arith.constant 15 : index
    %c768_260 = arith.constant 768 : index
    %163 = vector.load %arg10[%c15_259, %c768_260] : memref<18x1024xf32, #tpu.memory_space<vmem>>, vector<1x256xf32>
    tpu.vector_store %arg10[%c15_259, %c768_260], %162 {strides = array<i32>} : memref<18x1024xf32, #tpu.memory_space<vmem>>, vector<1x256xf32>,
    %c12_261 = arith.constant 12 : index
    %c128_262 = arith.constant 128 : index
    %164 = vector.load %arg9[%c12_261, %c128_262] : memref<16x512xf32, #tpu.memory_space<vmem>>, vector<1x256xf32>
    %c16 = arith.constant 16 : index
    %c0_263 = arith.constant 0 : index
    %165 = vector.load %arg10[%c16, %c0_263] : memref<18x1024xf32, #tpu.memory_space<vmem>>, vector<1x256xf32>
    tpu.vector_store %arg10[%c16, %c0_263], %164 {strides = array<i32>} : memref<18x1024xf32, #tpu.memory_space<vmem>>, vector<1x256xf32>,
    %c13_264 = arith.constant 13 : index
    %c128_265 = arith.constant 128 : index
    %166 = vector.load %arg9[%c13_264, %c128_265] : memref<16x512xf32, #tpu.memory_space<vmem>>, vector<1x256xf32>
    %c16_266 = arith.constant 16 : index
    %c256_267 = arith.constant 256 : index
    %167 = vector.load %arg10[%c16_266, %c256_267] : memref<18x1024xf32, #tpu.memory_space<vmem>>, vector<1x256xf32>
    tpu.vector_store %arg10[%c16_266, %c256_267], %166 {strides = array<i32>} : memref<18x1024xf32, #tpu.memory_space<vmem>>, vector<1x256xf32>,
    %c14_268 = arith.constant 14 : index
    %c128_269 = arith.constant 128 : index
    %168 = vector.load %arg9[%c14_268, %c128_269] : memref<16x512xf32, #tpu.memory_space<vmem>>, vector<1x256xf32>
    %c16_270 = arith.constant 16 : index
    %c512_271 = arith.constant 512 : index
    %169 = vector.load %arg10[%c16_270, %c512_271] : memref<18x1024xf32, #tpu.memory_space<vmem>>, vector<1x256xf32>
    tpu.vector_store %arg10[%c16_270, %c512_271], %168 {strides = array<i32>} : memref<18x1024xf32, #tpu.memory_space<vmem>>, vector<1x256xf32>,
    %c15_272 = arith.constant 15 : index
    %c128_273 = arith.constant 128 : index
    %170 = vector.load %arg9[%c15_272, %c128_273] : memref<16x512xf32, #tpu.memory_space<vmem>>, vector<1x256xf32>
    %c16_274 = arith.constant 16 : index
    %c768_275 = arith.constant 768 : index
    %171 = vector.load %arg10[%c16_274, %c768_275] : memref<18x1024xf32, #tpu.memory_space<vmem>>, vector<1x256xf32>
    tpu.vector_store %arg10[%c16_274, %c768_275], %170 {strides = array<i32>} : memref<18x1024xf32, #tpu.memory_space<vmem>>, vector<1x256xf32>,
    %c12_276 = arith.constant 12 : index
    %c256_277 = arith.constant 256 : index
    %172 = vector.load %arg9[%c12_276, %c256_277] : memref<16x512xf32, #tpu.memory_space<vmem>>, vector<1x256xf32>
    %c17 = arith.constant 17 : index
    %c0_278 = arith.constant 0 : index
    %173 = vector.load %arg10[%c17, %c0_278] : memref<18x1024xf32, #tpu.memory_space<vmem>>, vector<1x256xf32>
    tpu.vector_store %arg10[%c17, %c0_278], %172 {strides = array<i32>} : memref<18x1024xf32, #tpu.memory_space<vmem>>, vector<1x256xf32>,
    %c13_279 = arith.constant 13 : index
    %c256_280 = arith.constant 256 : index
    %174 = vector.load %arg9[%c13_279, %c256_280] : memref<16x512xf32, #tpu.memory_space<vmem>>, vector<1x256xf32>
    %c17_281 = arith.constant 17 : index
    %c256_282 = arith.constant 256 : index
    %175 = vector.load %arg10[%c17_281, %c256_282] : memref<18x1024xf32, #tpu.memory_space<vmem>>, vector<1x256xf32>
    tpu.vector_store %arg10[%c17_281, %c256_282], %174 {strides = array<i32>} : memref<18x1024xf32, #tpu.memory_space<vmem>>, vector<1x256xf32>,
    %c14_283 = arith.constant 14 : index
    %c256_284 = arith.constant 256 : index
    %176 = vector.load %arg9[%c14_283, %c256_284] : memref<16x512xf32, #tpu.memory_space<vmem>>, vector<1x256xf32>
    %c17_285 = arith.constant 17 : index
    %c512_286 = arith.constant 512 : index
    %177 = vector.load %arg10[%c17_285, %c512_286] : memref<18x1024xf32, #tpu.memory_space<vmem>>, vector<1x256xf32>
    tpu.vector_store %arg10[%c17_285, %c512_286], %176 {strides = array<i32>} : memref<18x1024xf32, #tpu.memory_space<vmem>>, vector<1x256xf32>,
    %c15_287 = arith.constant 15 : index
    %c256_288 = arith.constant 256 : index
    %178 = vector.load %arg9[%c15_287, %c256_288] : memref<16x512xf32, #tpu.memory_space<vmem>>, vector<1x256xf32>
    %c17_289 = arith.constant 17 : index
    %c768_290 = arith.constant 768 : index
    %179 = vector.load %arg10[%c17_289, %c768_290] : memref<18x1024xf32, #tpu.memory_space<vmem>>, vector<1x256xf32>
    tpu.vector_store %arg10[%c17_289, %c768_290], %178 {strides = array<i32>} : memref<18x1024xf32, #tpu.memory_space<vmem>>, vector<1x256xf32>,
    %c0_i32_291 = arith.constant 0 : i32
    %180 = tpu.memref_slice %arg16[%c0_i32_291] : memref<4x!tpu.dma_semaphore, #tpu.memory_space<semaphore_mem>> -> memref<1x!tpu.dma_semaphore, #tpu.memory_space<semaphore_mem>>
    %181 = tpu.memref_squeeze %180 : memref<1x!tpu.dma_semaphore, #tpu.memory_space<semaphore_mem>> -> memref<!tpu.dma_semaphore, #tpu.memory_space<semaphore_mem>>
    tpu.wait_dma2 semaphore(%181 : memref<!tpu.dma_semaphore, #tpu.memory_space<semaphore_mem>>) src(%arg4 : memref<1024x128xf32, #tpu.memory_space<any>>) dst(%arg12 : memref<1024x128xf32, #tpu.memory_space<vmem>>)
    %c0_292 = arith.constant 0 : index
    %c0_293 = arith.constant 0 : index
    %182 = vector.load %arg10[%c0_292, %c0_293] : memref<18x1024xf32, #tpu.memory_space<vmem>>, vector<18x1024xf32>
    %c0_294 = arith.constant 0 : index
    %c0_295 = arith.constant 0 : index
    %183 = vector.load %arg12[%c0_294, %c0_295] : memref<1024x128xf32, #tpu.memory_space<vmem>>, vector<1024x128xf32>
    %cst_296 = arith.constant dense<0.000000e+00> : vector<18x128xf32>
    %184 = tpu.matmul %182, %183, %cst_296 {dimension_numbers = #tpu.dot_dimension_numbers<[1], [0], [0], [1], [0, 0, 1, 1], [], []>} : vector<18x1024xf32>, vector<1024x128xf32>, vector<18x128xf32> -> vector<18x128xf32>
    %185 = vector.broadcast %9 : vector<1x128xf32> to vector<18x128xf32>
    %186 = arith.addf %184, %185 : vector<18x128xf32>
    %cst_297 = arith.constant 0.000000e+00 : f32
    %187 = vector.broadcast %cst_297 : f32 to vector<18x128xf32>
    %188 = arith.maximumf %186, %187 : vector<18x128xf32>
    %189 = vector.extract_strided_slice %188 {offsets = [0, 0], sizes = [1, 128], strides = [1, 1]} : vector<18x128xf32> to vector<1x128xf32>
    %c0_298 = arith.constant 0 : index
    %c0_299 = arith.constant 0 : index
    %190 = vector.load %arg11[%c0_298, %c0_299] : memref<2x1152xf32, #tpu.memory_space<vmem>>, vector<1x128xf32>
    tpu.vector_store %arg11[%c0_298, %c0_299], %189 {strides = array<i32>} : memref<2x1152xf32, #tpu.memory_space<vmem>>, vector<1x128xf32>,
    %191 = vector.extract_strided_slice %188 {offsets = [1, 0], sizes = [1, 128], strides = [1, 1]} : vector<18x128xf32> to vector<1x128xf32>
    %c0_300 = arith.constant 0 : index
    %c128_301 = arith.constant 128 : index
    %192 = vector.load %arg11[%c0_300, %c128_301] : memref<2x1152xf32, #tpu.memory_space<vmem>>, vector<1x128xf32>
    tpu.vector_store %arg11[%c0_300, %c128_301], %191 {strides = array<i32>} : memref<2x1152xf32, #tpu.memory_space<vmem>>, vector<1x128xf32>,
    %193 = vector.extract_strided_slice %188 {offsets = [2, 0], sizes = [1, 128], strides = [1, 1]} : vector<18x128xf32> to vector<1x128xf32>
    %c0_302 = arith.constant 0 : index
    %c256_303 = arith.constant 256 : index
    %194 = vector.load %arg11[%c0_302, %c256_303] : memref<2x1152xf32, #tpu.memory_space<vmem>>, vector<1x128xf32>
    tpu.vector_store %arg11[%c0_302, %c256_303], %193 {strides = array<i32>} : memref<2x1152xf32, #tpu.memory_space<vmem>>, vector<1x128xf32>,
    %195 = vector.extract_strided_slice %188 {offsets = [3, 0], sizes = [1, 128], strides = [1, 1]} : vector<18x128xf32> to vector<1x128xf32>
    %c0_304 = arith.constant 0 : index
    %c384_305 = arith.constant 384 : index
    %196 = vector.load %arg11[%c0_304, %c384_305] : memref<2x1152xf32, #tpu.memory_space<vmem>>, vector<1x128xf32>
    tpu.vector_store %arg11[%c0_304, %c384_305], %195 {strides = array<i32>} : memref<2x1152xf32, #tpu.memory_space<vmem>>, vector<1x128xf32>,
    %197 = vector.extract_strided_slice %188 {offsets = [4, 0], sizes = [1, 128], strides = [1, 1]} : vector<18x128xf32> to vector<1x128xf32>
    %c0_306 = arith.constant 0 : index
    %c512_307 = arith.constant 512 : index
    %198 = vector.load %arg11[%c0_306, %c512_307] : memref<2x1152xf32, #tpu.memory_space<vmem>>, vector<1x128xf32>
    tpu.vector_store %arg11[%c0_306, %c512_307], %197 {strides = array<i32>} : memref<2x1152xf32, #tpu.memory_space<vmem>>, vector<1x128xf32>,
    %199 = vector.extract_strided_slice %188 {offsets = [5, 0], sizes = [1, 128], strides = [1, 1]} : vector<18x128xf32> to vector<1x128xf32>
    %c0_308 = arith.constant 0 : index
    %c640 = arith.constant 640 : index
    %200 = vector.load %arg11[%c0_308, %c640] : memref<2x1152xf32, #tpu.memory_space<vmem>>, vector<1x128xf32>
    tpu.vector_store %arg11[%c0_308, %c640], %199 {strides = array<i32>} : memref<2x1152xf32, #tpu.memory_space<vmem>>, vector<1x128xf32>,
    %201 = vector.extract_strided_slice %188 {offsets = [6, 0], sizes = [1, 128], strides = [1, 1]} : vector<18x128xf32> to vector<1x128xf32>
    %c0_309 = arith.constant 0 : index
    %c768_310 = arith.constant 768 : index
    %202 = vector.load %arg11[%c0_309, %c768_310] : memref<2x1152xf32, #tpu.memory_space<vmem>>, vector<1x128xf32>
    tpu.vector_store %arg11[%c0_309, %c768_310], %201 {strides = array<i32>} : memref<2x1152xf32, #tpu.memory_space<vmem>>, vector<1x128xf32>,
    %203 = vector.extract_strided_slice %188 {offsets = [7, 0], sizes = [1, 128], strides = [1, 1]} : vector<18x128xf32> to vector<1x128xf32>
    %c0_311 = arith.constant 0 : index
    %c896_312 = arith.constant 896 : index
    %204 = vector.load %arg11[%c0_311, %c896_312] : memref<2x1152xf32, #tpu.memory_space<vmem>>, vector<1x128xf32>
    tpu.vector_store %arg11[%c0_311, %c896_312], %203 {strides = array<i32>} : memref<2x1152xf32, #tpu.memory_space<vmem>>, vector<1x128xf32>,
    %205 = vector.extract_strided_slice %188 {offsets = [8, 0], sizes = [1, 128], strides = [1, 1]} : vector<18x128xf32> to vector<1x128xf32>
    %c0_313 = arith.constant 0 : index
    %c1024 = arith.constant 1024 : index
    %206 = vector.load %arg11[%c0_313, %c1024] : memref<2x1152xf32, #tpu.memory_space<vmem>>, vector<1x128xf32>
    tpu.vector_store %arg11[%c0_313, %c1024], %205 {strides = array<i32>} : memref<2x1152xf32, #tpu.memory_space<vmem>>, vector<1x128xf32>,
    %207 = vector.extract_strided_slice %188 {offsets = [9, 0], sizes = [1, 128], strides = [1, 1]} : vector<18x128xf32> to vector<1x128xf32>
    %c1_314 = arith.constant 1 : index
    %c0_315 = arith.constant 0 : index
    %208 = vector.load %arg11[%c1_314, %c0_315] : memref<2x1152xf32, #tpu.memory_space<vmem>>, vector<1x128xf32>
    tpu.vector_store %arg11[%c1_314, %c0_315], %207 {strides = array<i32>} : memref<2x1152xf32, #tpu.memory_space<vmem>>, vector<1x128xf32>,
    %209 = vector.extract_strided_slice %188 {offsets = [10, 0], sizes = [1, 128], strides = [1, 1]} : vector<18x128xf32> to vector<1x128xf32>
    %c1_316 = arith.constant 1 : index
    %c128_317 = arith.constant 128 : index
    %210 = vector.load %arg11[%c1_316, %c128_317] : memref<2x1152xf32, #tpu.memory_space<vmem>>, vector<1x128xf32>
    tpu.vector_store %arg11[%c1_316, %c128_317], %209 {strides = array<i32>} : memref<2x1152xf32, #tpu.memory_space<vmem>>, vector<1x128xf32>,
    %211 = vector.extract_strided_slice %188 {offsets = [11, 0], sizes = [1, 128], strides = [1, 1]} : vector<18x128xf32> to vector<1x128xf32>
    %c1_318 = arith.constant 1 : index
    %c256_319 = arith.constant 256 : index
    %212 = vector.load %arg11[%c1_318, %c256_319] : memref<2x1152xf32, #tpu.memory_space<vmem>>, vector<1x128xf32>
    tpu.vector_store %arg11[%c1_318, %c256_319], %211 {strides = array<i32>} : memref<2x1152xf32, #tpu.memory_space<vmem>>, vector<1x128xf32>,
    %213 = vector.extract_strided_slice %188 {offsets = [12, 0], sizes = [1, 128], strides = [1, 1]} : vector<18x128xf32> to vector<1x128xf32>
    %c1_320 = arith.constant 1 : index
    %c384_321 = arith.constant 384 : index
    %214 = vector.load %arg11[%c1_320, %c384_321] : memref<2x1152xf32, #tpu.memory_space<vmem>>, vector<1x128xf32>
    tpu.vector_store %arg11[%c1_320, %c384_321], %213 {strides = array<i32>} : memref<2x1152xf32, #tpu.memory_space<vmem>>, vector<1x128xf32>,
    %215 = vector.extract_strided_slice %188 {offsets = [13, 0], sizes = [1, 128], strides = [1, 1]} : vector<18x128xf32> to vector<1x128xf32>
    %c1_322 = arith.constant 1 : index
    %c512_323 = arith.constant 512 : index
    %216 = vector.load %arg11[%c1_322, %c512_323] : memref<2x1152xf32, #tpu.memory_space<vmem>>, vector<1x128xf32>
    tpu.vector_store %arg11[%c1_322, %c512_323], %215 {strides = array<i32>} : memref<2x1152xf32, #tpu.memory_space<vmem>>, vector<1x128xf32>,
    %217 = vector.extract_strided_slice %188 {offsets = [14, 0], sizes = [1, 128], strides = [1, 1]} : vector<18x128xf32> to vector<1x128xf32>
    %c1_324 = arith.constant 1 : index
    %c640_325 = arith.constant 640 : index
    %218 = vector.load %arg11[%c1_324, %c640_325] : memref<2x1152xf32, #tpu.memory_space<vmem>>, vector<1x128xf32>
    tpu.vector_store %arg11[%c1_324, %c640_325], %217 {strides = array<i32>} : memref<2x1152xf32, #tpu.memory_space<vmem>>, vector<1x128xf32>,
    %219 = vector.extract_strided_slice %188 {offsets = [15, 0], sizes = [1, 128], strides = [1, 1]} : vector<18x128xf32> to vector<1x128xf32>
    %c1_326 = arith.constant 1 : index
    %c768_327 = arith.constant 768 : index
    %220 = vector.load %arg11[%c1_326, %c768_327] : memref<2x1152xf32, #tpu.memory_space<vmem>>, vector<1x128xf32>
    tpu.vector_store %arg11[%c1_326, %c768_327], %219 {strides = array<i32>} : memref<2x1152xf32, #tpu.memory_space<vmem>>, vector<1x128xf32>,
    %221 = vector.extract_strided_slice %188 {offsets = [16, 0], sizes = [1, 128], strides = [1, 1]} : vector<18x128xf32> to vector<1x128xf32>
    %c1_328 = arith.constant 1 : index
    %c896_329 = arith.constant 896 : index
    %222 = vector.load %arg11[%c1_328, %c896_329] : memref<2x1152xf32, #tpu.memory_space<vmem>>, vector<1x128xf32>
    tpu.vector_store %arg11[%c1_328, %c896_329], %221 {strides = array<i32>} : memref<2x1152xf32, #tpu.memory_space<vmem>>, vector<1x128xf32>,
    %223 = vector.extract_strided_slice %188 {offsets = [17, 0], sizes = [1, 128], strides = [1, 1]} : vector<18x128xf32> to vector<1x128xf32>
    %c1_330 = arith.constant 1 : index
    %c1024_331 = arith.constant 1024 : index
    %224 = vector.load %arg11[%c1_330, %c1024_331] : memref<2x1152xf32, #tpu.memory_space<vmem>>, vector<1x128xf32>
    tpu.vector_store %arg11[%c1_330, %c1024_331], %223 {strides = array<i32>} : memref<2x1152xf32, #tpu.memory_space<vmem>>, vector<1x128xf32>,
    %c1_i32_332 = arith.constant 1 : i32
    %225 = tpu.memref_slice %arg16[%c1_i32_332] : memref<4x!tpu.dma_semaphore, #tpu.memory_space<semaphore_mem>> -> memref<1x!tpu.dma_semaphore, #tpu.memory_space<semaphore_mem>>
    %226 = tpu.memref_squeeze %225 : memref<1x!tpu.dma_semaphore, #tpu.memory_space<semaphore_mem>> -> memref<!tpu.dma_semaphore, #tpu.memory_space<semaphore_mem>>
    tpu.wait_dma2 semaphore(%226 : memref<!tpu.dma_semaphore, #tpu.memory_space<semaphore_mem>>) src(%arg5 : memref<1152x64xf32, #tpu.memory_space<any>>) dst(%arg13 : memref<1152x64xf32, #tpu.memory_space<vmem>>)
    %c0_333 = arith.constant 0 : index
    %c0_334 = arith.constant 0 : index
    %227 = vector.load %arg11[%c0_333, %c0_334] : memref<2x1152xf32, #tpu.memory_space<vmem>>, vector<2x1152xf32>
    %c0_335 = arith.constant 0 : index
    %c0_336 = arith.constant 0 : index
    %228 = vector.load %arg13[%c0_335, %c0_336] : memref<1152x64xf32, #tpu.memory_space<vmem>>, vector<1152x64xf32>
    %cst_337 = arith.constant dense<0.000000e+00> : vector<2x64xf32>
    %229 = tpu.matmul %227, %228, %cst_337 {dimension_numbers = #tpu.dot_dimension_numbers<[1], [0], [0], [1], [0, 0, 1, 1], [], []>} : vector<2x1152xf32>, vector<1152x64xf32>, vector<2x64xf32> -> vector<2x64xf32>
    %230 = vector.broadcast %10 : vector<1x64xf32> to vector<2x64xf32>
    %231 = arith.addf %229, %230 : vector<2x64xf32>
    %cst_338 = arith.constant 0.000000e+00 : f32
    %232 = vector.broadcast %cst_338 : f32 to vector<2x64xf32>
    %233 = arith.maximumf %231, %232 : vector<2x64xf32>
    %c2_i32_339 = arith.constant 2 : i32
    %234 = tpu.memref_slice %arg16[%c2_i32_339] : memref<4x!tpu.dma_semaphore, #tpu.memory_space<semaphore_mem>> -> memref<1x!tpu.dma_semaphore, #tpu.memory_space<semaphore_mem>>
    %235 = tpu.memref_squeeze %234 : memref<1x!tpu.dma_semaphore, #tpu.memory_space<semaphore_mem>> -> memref<!tpu.dma_semaphore, #tpu.memory_space<semaphore_mem>>
    tpu.wait_dma2 semaphore(%235 : memref<!tpu.dma_semaphore, #tpu.memory_space<semaphore_mem>>) src(%arg6 : memref<64x512xf32, #tpu.memory_space<any>>) dst(%arg14 : memref<64x512xf32, #tpu.memory_space<vmem>>)
    %c0_340 = arith.constant 0 : index
    %c0_341 = arith.constant 0 : index
    %236 = vector.load %arg14[%c0_340, %c0_341] : memref<64x512xf32, #tpu.memory_space<vmem>>, vector<64x512xf32>
    %cst_342 = arith.constant dense<0.000000e+00> : vector<2x512xf32>
    %237 = tpu.matmul %233, %236, %cst_342 {dimension_numbers = #tpu.dot_dimension_numbers<[1], [0], [0], [1], [0, 0, 1, 1], [], []>} : vector<2x64xf32>, vector<64x512xf32>, vector<2x512xf32> -> vector<2x512xf32>
    %238 = vector.broadcast %11 : vector<1x512xf32> to vector<2x512xf32>
    %239 = arith.addf %237, %238 : vector<2x512xf32>
    %cst_343 = arith.constant 0.000000e+00 : f32
    %240 = vector.broadcast %cst_343 : f32 to vector<2x512xf32>
    %241 = arith.maximumf %239, %240 : vector<2x512xf32>
    %c3_i32_344 = arith.constant 3 : i32
    %242 = tpu.memref_slice %arg16[%c3_i32_344] : memref<4x!tpu.dma_semaphore, #tpu.memory_space<semaphore_mem>> -> memref<1x!tpu.dma_semaphore, #tpu.memory_space<semaphore_mem>>
    %243 = tpu.memref_squeeze %242 : memref<1x!tpu.dma_semaphore, #tpu.memory_space<semaphore_mem>> -> memref<!tpu.dma_semaphore, #tpu.memory_space<semaphore_mem>>
    tpu.wait_dma2 semaphore(%243 : memref<!tpu.dma_semaphore, #tpu.memory_space<semaphore_mem>>) src(%arg7 : memref<512x128xf32, #tpu.memory_space<any>>) dst(%arg15 : memref<512x128xf32, #tpu.memory_space<vmem>>)
    %c0_345 = arith.constant 0 : index
    %c0_346 = arith.constant 0 : index
    %244 = vector.load %arg15[%c0_345, %c0_346] : memref<512x128xf32, #tpu.memory_space<vmem>>, vector<512x128xf32>
    %cst_347 = arith.constant dense<0.000000e+00> : vector<2x128xf32>
    %245 = tpu.matmul %241, %244, %cst_347 {dimension_numbers = #tpu.dot_dimension_numbers<[1], [0], [0], [1], [0, 0, 1, 1], [], []>} : vector<2x512xf32>, vector<512x128xf32>, vector<2x128xf32> -> vector<2x128xf32>
    %246 = vector.broadcast %12 : vector<1x128xf32> to vector<2x128xf32>
    %247 = arith.addf %245, %246 : vector<2x128xf32>
    %c0_348 = arith.constant 0 : index
    %c0_349 = arith.constant 0 : index
    %248 = vector.load %arg8[%c0_348, %c0_349] : memref<2x128xf32, #tpu.memory_space<vmem>>, vector<2x128xf32>
    tpu.vector_store %arg8[%c0_348, %c0_349], %247 {strides = array<i32>} : memref<2x128xf32, #tpu.memory_space<vmem>>, vector<2x128xf32>,
    return
  }
  func.func @transform_0(%arg0: i32) -> (i32, i32) {
    %c0_i32 = arith.constant 0 : i32
    %c0_i32_0 = arith.constant 0 : i32
    %c0_i32_1 = arith.constant 0 : i32
    return %c0_i32, %c0_i32_0 : i32, i32
  }
  func.func @transform_1(%arg0: i32) -> (i32, i32) {
    %c0_i32 = arith.constant 0 : i32
    %c0_i32_0 = arith.constant 0 : i32
    %c0_i32_1 = arith.constant 0 : i32
    return %c0_i32, %c0_i32_0 : i32, i32
  }
  func.func @transform_2(%arg0: i32) -> (i32, i32) {
    %c0_i32 = arith.constant 0 : i32
    %c0_i32_0 = arith.constant 0 : i32
    %c0_i32_1 = arith.constant 0 : i32
    return %c0_i32, %c0_i32_0 : i32, i32
  }
  func.func @transform_7(%arg0: i32) -> (i32, i32) {
    %c0_i32 = arith.constant 0 : i32
    %c0_i32_0 = arith.constant 0 : i32
    %c0_i32_1 = arith.constant 0 : i32
    return %c0_i32, %c0_i32_0 : i32, i32
  }
}

</mosaic_0001>

<bundles_post_ra>
// kernel: double_dqn_forward.1
= control target key start
LH: loop header
LB: loop body
LE: loop exit
PB: predicated region body
PF: predicated region fallthrough
CT: control target
= control target key end

     0   :  { %12 = vsyncpa [#allocation11], 0  ;;  %s6875_s0 = inlined_call_operand.vmem [shape: f32[128,256], index: 0, kind: input, shape index: {}]   ;;  %s6876_s1 = inlined_call_operand.vmem [shape: f32[256,64], index: 1, kind: input, shape index: {}]   ;;  %s6877_s2 = inlined_call_operand.vmem [shape: f32[1,1024], index: 2, kind: input, shape index: {}]   ;;  %s6878_s3 = inlined_call_operand.vmem [shape: f32[1024,128], index: 3, kind: input, shape index: {}]   ;;  %s6879_s4 = inlined_call_operand.vmem [shape: f32[1152,64], index: 4, kind: input, shape index: {}]   ;;  %s6880_s5 = inlined_call_operand.vmem [shape: f32[64,512], index: 5, kind: input, shape index: {}]   ;;  %s6881_s6 = inlined_call_operand.vmem [shape: f32[512,128], index: 6, kind: input, shape index: {}]   ;;  %s6882_s7 = inlined_call_operand.hbm [shape: f32[2,128], index: 7, kind: output, shape index: {}]  }
   0x1   :  { %v4199_v0 = vld [vmem:[%s6878_s3] sm:$0xff]  ;;  %v4204_v1 = vld [vmem:[%s6878_s3 + $0x8] sm:$0xff]  ;;  %v4209_v2 = vld [vmem:[%s6878_s3 + $0x10] sm:$0xff] }
   0x2   :  { %v4214_v3 = vld [vmem:[%s6878_s3 + $0x18] sm:$0xff]  ;;  %v4219_v4 = vld [vmem:[%s6878_s3 + $0x20] sm:$0xff]  ;;  %v4224_v5 = vld [vmem:[%s6878_s3 + $0x28] sm:$0xff] }
   0x3   :  { %v4229_v6 = vld [vmem:[%s6878_s3 + $0x30] sm:$0xff]  ;;  %v4234_v7 = vld [vmem:[%s6878_s3 + $0x38] sm:$0xff]  ;;  %v4239_v8 = vld [vmem:[%s6878_s3 + $0x40] sm:$0xff] }
   0x4   :  { %v4244_v9 = vld [vmem:[%s6878_s3 + $0x48] sm:$0xff]  ;;  %v4249_v10 = vld [vmem:[%s6878_s3 + $0x50] sm:$0xff]  ;;  %v4254_v11 = vld [vmem:[%s6878_s3 + $0x58] sm:$0xff] }
   0x5   :  { %v4259_v12 = vld [vmem:[%s6878_s3 + $0x60] sm:$0xff]  ;;  %v4264_v13 = vld [vmem:[%s6878_s3 + $0x68] sm:$0xff]  ;;  %v4269_v14 = vld [vmem:[%s6878_s3 + $0x70] sm:$0xff] }
   0x6   :  { %6885 = vst [vmem:[#allocation21_spill] sm:$0xff] %v4259_v12  ;;  %6886 = vst [vmem:[#allocation22_spill] sm:$0xff] %v4264_v13  ;;  %v4274_v15 = vld [vmem:[%s6878_s3 + $0x78] sm:$0xff]  ;;  %v4279_v16 = vld [vmem:[%s6878_s3 + $0x80] sm:$0xff] }
   0x7   :  { %6887 = vst [vmem:[#allocation23_spill] sm:$0xff] %v4269_v14  ;;  %6888 = vst [vmem:[#allocation24_spill] sm:$0xff] %v4274_v15  ;;  %v4284_v17 = vld [vmem:[%s6878_s3 + $0x88] sm:$0xff]  ;;  %v4289_v18 = vld [vmem:[%s6878_s3 + $0x90] sm:$0xff] }
   0x8   :  { %v4294_v19 = vld [vmem:[%s6878_s3 + $0x98] sm:$0xff]  ;;  %v4299_v20 = vld [vmem:[%s6878_s3 + $0xa0] sm:$0xff]  ;;  %v4304_v21 = vld [vmem:[%s6878_s3 + $0xa8] sm:$0xff] }
   0x9   :  { %v4309_v22 = vld [vmem:[%s6878_s3 + $0xb0] sm:$0xff]  ;;  %v4314_v23 = vld [vmem:[%s6878_s3 + $0xb8] sm:$0xff]  ;;  %v4319_v24 = vld [vmem:[%s6878_s3 + $0xc0] sm:$0xff] }
   0xa   :  { %v4324_v25 = vld [vmem:[%s6878_s3 + $0xc8] sm:$0xff]  ;;  %v4329_v26 = vld [vmem:[%s6878_s3 + $0xd0] sm:$0xff]  ;;  %v4334_v27 = vld [vmem:[%s6878_s3 + $0xd8] sm:$0xff] }
   0xb   :  { %v4339_v28 = vld [vmem:[%s6878_s3 + $0xe0] sm:$0xff]  ;;  %v4344_v29 = vld [vmem:[%s6878_s3 + $0xe8] sm:$0xff]  ;;  %v4349_v30 = vld [vmem:[%s6878_s3 + $0xf0] sm:$0xff] }
   0xc   :  { %6889 = vst [vmem:[#allocation25_spill] sm:$0xff] %v4349_v30  ;;  %v4354_v31 = vld [vmem:[%s6878_s3 + $0xf8] sm:$0xff]  ;;  %v4359_v32 = vld [vmem:[%s6878_s3 + $0x100] sm:$0xff]  ;;  %v4364_v33 = vld [vmem:[%s6878_s3 + $0x108] sm:$0xff] }
   0xd   :  { %6890 = vst [vmem:[#allocation26_spill] sm:$0xff] %v4354_v31  ;;  %6891 = vst [vmem:[#allocation27_spill] sm:$0xff] %v4359_v32  ;;  %v4369_v34 = vld [vmem:[%s6878_s3 + $0x110] sm:$0xff]  ;;  %v4374_v35 = vld [vmem:[%s6878_s3 + $0x118] sm:$0xff] }
   0xe   :  { %6892 = vst [vmem:[#allocation28_spill] sm:$0xff] %v4364_v33  ;;  %6893 = vst [vmem:[#allocation29_spill] sm:$0xff] %v4369_v34  ;;  %v4379_v36 = vld [vmem:[%s6878_s3 + $0x120] sm:$0xff]  ;;  %v4384_v37 = vld [vmem:[%s6878_s3 + $0x128] sm:$0xff] }
   0xf   :  { %6894 = vst [vmem:[#allocation30_spill] sm:$0xff] %v4374_v35  ;;  %6895 = vst [vmem:[#allocation31_spill] sm:$0xff] %v4379_v36  ;;  %v4389_v38 = vld [vmem:[%s6878_s3 + $0x130] sm:$0xff]  ;;  %v4394_v39 = vld [vmem:[%s6878_s3 + $0x138] sm:$0xff] }
  0x10   :  { %6896 = vst [vmem:[#allocation32_spill] sm:$0xff] %v4384_v37  ;;  %6897 = vst [vmem:[#allocation33_spill] sm:$0xff] %v4389_v38  ;;  %v4399_v40 = vld [vmem:[%s6878_s3 + $0x140] sm:$0xff]  ;;  %v4404_v41 = vld [vmem:[%s6878_s3 + $0x148] sm:$0xff] }
  0x11   :  { %6898 = vst [vmem:[#allocation34_spill] sm:$0xff] %v4394_v39  ;;  %6899 = vst [vmem:[#allocation35_spill] sm:$0xff] %v4399_v40  ;;  %v4409_v42 = vld [vmem:[%s6878_s3 + $0x150] sm:$0xff]  ;;  %v4414_v43 = vld [vmem:[%s6878_s3 + $0x158] sm:$0xff] }
  0x12   :  { %6900 = vst [vmem:[#allocation36_spill] sm:$0xff] %v4404_v41  ;;  %6901 = vst [vmem:[#allocation37_spill] sm:$0xff] %v4409_v42  ;;  %v4419_v44 = vld [vmem:[%s6878_s3 + $0x160] sm:$0xff]  ;;  %v4424_v45 = vld [vmem:[%s6878_s3 + $0x168] sm:$0xff] }
  0x13   :  { %6902 = vst [vmem:[#allocation38_spill] sm:$0xff] %v4414_v43  ;;  %6903 = vst [vmem:[#allocation39_spill] sm:$0xff] %v4419_v44  ;;  %v4429_v46 = vld [vmem:[%s6878_s3 + $0x170] sm:$0xff]  ;;  %v4434_v47 = vld [vmem:[%s6878_s3 + $0x178] sm:$0xff] }
  0x14   :  { %6904 = vst [vmem:[#allocation40_spill] sm:$0xff] %v4424_v45  ;;  %6905 = vst [vmem:[#allocation41_spill] sm:$0xff] %v4429_v46  ;;  %v4439_v48 = vld [vmem:[%s6878_s3 + $0x180] sm:$0xff]  ;;  %v4444_v49 = vld [vmem:[%s6878_s3 + $0x188] sm:$0xff] }
  0x15   :  { %6906 = vst [vmem:[#allocation42_spill] sm:$0xff] %v4434_v47  ;;  %6907 = vst [vmem:[#allocation43_spill] sm:$0xff] %v4439_v48  ;;  %v4449_v50 = vld [vmem:[%s6878_s3 + $0x190] sm:$0xff]  ;;  %v4454_v51 = vld [vmem:[%s6878_s3 + $0x198] sm:$0xff] }
  0x16   :  { %6908 = vst [vmem:[#allocation44_spill] sm:$0xff] %v4444_v49  ;;  %6909 = vst [vmem:[#allocation45_spill] sm:$0xff] %v4449_v50  ;;  %v4459_v52 = vld [vmem:[%s6878_s3 + $0x1a0] sm:$0xff]  ;;  %v4464_v53 = vld [vmem:[%s6878_s3 + $0x1a8] sm:$0xff] }
  0x17   :  { %6910 = vst [vmem:[#allocation46_spill] sm:$0xff] %v4454_v51  ;;  %6911 = vst [vmem:[#allocation47_spill] sm:$0xff] %v4459_v52  ;;  %v4469_v54 = vld [vmem:[%s6878_s3 + $0x1b0] sm:$0xff]  ;;  %v4474_v55 = vld [vmem:[%s6878_s3 + $0x1b8] sm:$0xff] }
  0x18   :  { %6912 = vst [vmem:[#allocation48_spill] sm:$0xff] %v4464_v53  ;;  %6913 = vst [vmem:[#allocation49_spill] sm:$0xff] %v4469_v54  ;;  %v4479_v56 = vld [vmem:[%s6878_s3 + $0x1c0] sm:$0xff]  ;;  %v4484_v57 = vld [vmem:[%s6878_s3 + $0x1c8] sm:$0xff] }
  0x19   :  { %6914 = vst [vmem:[#allocation50_spill] sm:$0xff] %v4474_v55  ;;  %6915 = vst [vmem:[#allocation51_spill] sm:$0xff] %v4479_v56  ;;  %v4489_v58 = vld [vmem:[%s6878_s3 + $0x1d0] sm:$0xff]  ;;  %v4494_v59 = vld [vmem:[%s6878_s3 + $0x1d8] sm:$0xff] }
  0x1a   :  { %6916 = vst [vmem:[#allocation52_spill] sm:$0xff] %v4484_v57  ;;  %6917 = vst [vmem:[#allocation53_spill] sm:$0xff] %v4489_v58  ;;  %v4499_v60 = vld [vmem:[%s6878_s3 + $0x1e0] sm:$0xff]  ;;  %v4504_v61 = vld [vmem:[%s6878_s3 + $0x1e8] sm:$0xff] }
  0x1b   :  { %6918 = vst [vmem:[#allocation54_spill] sm:$0xff] %v4494_v59  ;;  %6919 = vst [vmem:[#allocation55_spill] sm:$0xff] %v4499_v60  ;;  %v4509_v62 = vld [vmem:[%s6878_s3 + $0x1f0] sm:$0xff]  ;;  %v4514_v63 = vld [vmem:[%s6878_s3 + $0x1f8] sm:$0xff] }
  0x1c   :  { %6920 = vst [vmem:[#allocation56_spill] sm:$0xff] %v4504_v61  ;;  %6921 = vst [vmem:[#allocation57_spill] sm:$0xff] %v4509_v62  ;;  %v4519_v47 = vld [vmem:[%s6878_s3 + $0x200] sm:$0xff]  ;;  %v4524_v46 = vld [vmem:[%s6878_s3 + $0x208] sm:$0xff] }
  0x1d   :  { %6922 = vst [vmem:[#allocation58_spill] sm:$0xff] %v4514_v63  ;;  %v4529_v45 = vld [vmem:[%s6878_s3 + $0x210] sm:$0xff]  ;;  %v4534_v62 = vld [vmem:[%s6878_s3 + $0x218] sm:$0xff]  ;;  %v4539_v63 = vld [vmem:[%s6878_s3 + $0x220] sm:$0xff] }
  0x1e   :  { %v4544_v44 = vld [vmem:[%s6878_s3 + $0x228] sm:$0xff]  ;;  %v4549_v61 = vld [vmem:[%s6878_s3 + $0x230] sm:$0xff]  ;;  %v4554_v60 = vld [vmem:[%s6878_s3 + $0x238] sm:$0xff] }
  0x1f   :  { %v4559_v43 = vld [vmem:[%s6878_s3 + $0x240] sm:$0xff]  ;;  %v4564_v42 = vld [vmem:[%s6878_s3 + $0x248] sm:$0xff]  ;;  %v4569_v59 = vld [vmem:[%s6878_s3 + $0x250] sm:$0xff] }
  0x20   :  { %6923 = vst [vmem:[#allocation59_spill] sm:$0xff] %v4569_v59  ;;  %v4574_v58 = vld [vmem:[%s6878_s3 + $0x258] sm:$0xff]  ;;  %v4579_v41 = vld [vmem:[%s6878_s3 + $0x260] sm:$0xff]  ;;  %v4584_v40 = vld [vmem:[%s6878_s3 + $0x268] sm:$0xff] }
  0x21   :  { %6924 = vst [vmem:[#allocation60_spill] sm:$0xff] %v4574_v58  ;;  %6925 = vst [vmem:[#allocation61_spill] sm:$0xff] %v4579_v41  ;;  %v4589_v57 = vld [vmem:[%s6878_s3 + $0x270] sm:$0xff]  ;;  %v4594_v56 = vld [vmem:[%s6878_s3 + $0x278] sm:$0xff] }
  0x22   :  { %6926 = vst [vmem:[#allocation62_spill] sm:$0xff] %v4584_v40  ;;  %6927 = vst [vmem:[#allocation63_spill] sm:$0xff] %v4589_v57  ;;  %v4599_v39 = vld [vmem:[%s6878_s3 + $0x280] sm:$0xff]  ;;  %v4604_v38 = vld [vmem:[%s6878_s3 + $0x288] sm:$0xff] }
  0x23   :  { %6928 = vst [vmem:[#allocation64_spill] sm:$0xff] %v4594_v56  ;;  %v4609_v55 = vld [vmem:[%s6878_s3 + $0x290] sm:$0xff]  ;;  %v4614_v54 = vld [vmem:[%s6878_s3 + $0x298] sm:$0xff]  ;;  %v4619_v37 = vld [vmem:[%s6878_s3 + $0x2a0] sm:$0xff] }
  0x24   :  { %v4624_v36 = vld [vmem:[%s6878_s3 + $0x2a8] sm:$0xff]  ;;  %v4629_v53 = vld [vmem:[%s6878_s3 + $0x2b0] sm:$0xff]  ;;  %v4634_v52 = vld [vmem:[%s6878_s3 + $0x2b8] sm:$0xff] }
  0x25   :  { %v4639_v35 = vld [vmem:[%s6878_s3 + $0x2c0] sm:$0xff]  ;;  %v4644_v34 = vld [vmem:[%s6878_s3 + $0x2c8] sm:$0xff]  ;;  %v4649_v56 = vld [vmem:[%s6878_s3 + $0x2d0] sm:$0xff] }
  0x26   :  { %v4654_v57 = vld [vmem:[%s6878_s3 + $0x2d8] sm:$0xff]  ;;  %v4659_v51 = vld [vmem:[%s6878_s3 + $0x2e0] sm:$0xff]  ;;  %v4664_v50 = vld [vmem:[%s6878_s3 + $0x2e8] sm:$0xff] }
  0x27   :  { %6929 = vst [vmem:[#allocation65_spill] sm:$0xff] %v4654_v57  ;;  %6930 = vst [vmem:[#allocation66_spill] sm:$0xff] %v4659_v51  ;;  %v4669_v33 = vld [vmem:[%s6878_s3 + $0x2f0] sm:$0xff]  ;;  %v4674_v32 = vld [vmem:[%s6878_s3 + $0x2f8] sm:$0xff] }
  0x28   :  { %6931 = vst [vmem:[#allocation67_spill] sm:$0xff] %v4664_v50  ;;  %6932 = vst [vmem:[#allocation68_spill] sm:$0xff] %v4669_v33  ;;  %v4679_v49 = vld [vmem:[%s6878_s3 + $0x300] sm:$0xff]  ;;  %v4684_v48 = vld [vmem:[%s6878_s3 + $0x308] sm:$0xff] }
  0x29   :  { %6933 = vst [vmem:[#allocation69_spill] sm:$0xff] %v4674_v32  ;;  %6934 = vst [vmem:[#allocation70_spill] sm:$0xff] %v4679_v49  ;;  %v4689_v40 = vld [vmem:[%s6878_s3 + $0x310] sm:$0xff]  ;;  %v4694_v33 = vld [vmem:[%s6878_s3 + $0x318] sm:$0xff] }
  0x2a   :  { %6935 = vst [vmem:[#allocation71_spill] sm:$0xff] %v4684_v48  ;;  %6936 = vst [vmem:[#allocation72_spill] sm:$0xff] %v4689_v40  ;;  %v4699_v32 = vld [vmem:[%s6878_s3 + $0x320] sm:$0xff]  ;;  %v4704_v49 = vld [vmem:[%s6878_s3 + $0x328] sm:$0xff] }
  0x2b   :  { %6937 = vst [vmem:[#allocation73_spill] sm:$0xff] %v4694_v33  ;;  %6938 = vst [vmem:[#allocation74_spill] sm:$0xff] %v4699_v32  ;;  %v4709_v48 = vld [vmem:[%s6878_s3 + $0x330] sm:$0xff]  ;;  %v4714_v40 = vld [vmem:[%s6878_s3 + $0x338] sm:$0xff] }
  0x2c   :  { %6939 = vst [vmem:[#allocation75_spill] sm:$0xff] %v4704_v49  ;;  %6940 = vst [vmem:[#allocation76_spill] sm:$0xff] %v4709_v48  ;;  %v4719_v33 = vld [vmem:[%s6878_s3 + $0x340] sm:$0xff]  ;;  %v4724_v32 = vld [vmem:[%s6878_s3 + $0x348] sm:$0xff] }
  0x2d   :  { %6941 = vst [vmem:[#allocation77_spill] sm:$0xff] %v4714_v40  ;;  %6942 = vst [vmem:[#allocation78_spill] sm:$0xff] %v4719_v33  ;;  %v4729_v49 = vld [vmem:[%s6878_s3 + $0x350] sm:$0xff]  ;;  %v4734_v48 = vld [vmem:[%s6878_s3 + $0x358] sm:$0xff] }
  0x2e   :  { %6943 = vst [vmem:[#allocation79_spill] sm:$0xff] %v4724_v32  ;;  %6944 = vst [vmem:[#allocation80_spill] sm:$0xff] %v4729_v49  ;;  %v4739_v40 = vld [vmem:[%s6878_s3 + $0x360] sm:$0xff]  ;;  %v4744_v33 = vld [vmem:[%s6878_s3 + $0x368] sm:$0xff] }
  0x2f   :  { %6945 = vst [vmem:[#allocation81_spill] sm:$0xff] %v4734_v48  ;;  %6946 = vst [vmem:[#allocation82_spill] sm:$0xff] %v4739_v40  ;;  %v4749_v32 = vld [vmem:[%s6878_s3 + $0x370] sm:$0xff]  ;;  %v4754_v49 = vld [vmem:[%s6878_s3 + $0x378] sm:$0xff] }
  0x30   :  { %6947 = vst [vmem:[#allocation83_spill] sm:$0xff] %v4744_v33  ;;  %6948 = vst [vmem:[#allocation84_spill] sm:$0xff] %v4749_v32  ;;  %v4759_v48 = vld [vmem:[%s6878_s3 + $0x380] sm:$0xff]  ;;  %v4764_v40 = vld [vmem:[%s6878_s3 + $0x388] sm:$0xff] }
  0x31   :  { %6949 = vst [vmem:[#allocation85_spill] sm:$0xff] %v4754_v49  ;;  %6950 = vst [vmem:[#allocation86_spill] sm:$0xff] %v4759_v48  ;;  %v4769_v33 = vld [vmem:[%s6878_s3 + $0x390] sm:$0xff]  ;;  %v4774_v32 = vld [vmem:[%s6878_s3 + $0x398] sm:$0xff] }
  0x32   :  { %6951 = vst [vmem:[#allocation87_spill] sm:$0xff] %v4764_v40  ;;  %6952 = vst [vmem:[#allocation88_spill] sm:$0xff] %v4769_v33  ;;  %v4779_v49 = vld [vmem:[%s6878_s3 + $0x3a0] sm:$0xff]  ;;  %v4784_v48 = vld [vmem:[%s6878_s3 + $0x3a8] sm:$0xff] }
  0x33   :  { %6953 = vst [vmem:[#allocation89_spill] sm:$0xff] %v4774_v32  ;;  %6954 = vst [vmem:[#allocation90_spill] sm:$0xff] %v4779_v49  ;;  %v4789_v40 = vld [vmem:[%s6878_s3 + $0x3b0] sm:$0xff]  ;;  %v4794_v33 = vld [vmem:[%s6878_s3 + $0x3b8] sm:$0xff] }
  0x34   :  { %6955 = vst [vmem:[#allocation91_spill] sm:$0xff] %v4784_v48  ;;  %6956 = vst [vmem:[#allocation92_spill] sm:$0xff] %v4789_v40  ;;  %v4799_v32 = vld [vmem:[%s6878_s3 + $0x3c0] sm:$0xff]  ;;  %v4804_v49 = vld [vmem:[%s6878_s3 + $0x3c8] sm:$0xff] }
  0x35   :  { %6957 = vst [vmem:[#allocation93_spill] sm:$0xff] %v4794_v33  ;;  %6958 = vst [vmem:[#allocation94_spill] sm:$0xff] %v4799_v32  ;;  %v4809_v48 = vld [vmem:[%s6878_s3 + $0x3d0] sm:$0xff]  ;;  %v4814_v40 = vld [vmem:[%s6878_s3 + $0x3d8] sm:$0xff] }
  0x36   :  { %6959 = vst [vmem:[#allocation95_spill] sm:$0xff] %v4804_v49  ;;  %6960 = vst [vmem:[#allocation96_spill] sm:$0xff] %v4809_v48  ;;  %v4819_v33 = vld [vmem:[%s6878_s3 + $0x3e0] sm:$0xff]  ;;  %v4824_v32 = vld [vmem:[%s6878_s3 + $0x3e8] sm:$0xff] }
  0x37   :  { %6961 = vst [vmem:[#allocation97_spill] sm:$0xff] %v4814_v40  ;;  %6962 = vst [vmem:[#allocation98_spill] sm:$0xff] %v4819_v33  ;;  %v4829_v49 = vld [vmem:[%s6878_s3 + $0x3f0] sm:$0xff]  ;;  %v4834_v48 = vld [vmem:[%s6878_s3 + $0x3f8] sm:$0xff] }
  0x38   :  { %6963 = vst [vmem:[#allocation99_spill] sm:$0xff] %v4824_v32  ;;  %6964 = vst [vmem:[#allocation100_spill] sm:$0xff] %v4829_v49 }
  0x39   :  { %6965 = vst [vmem:[#allocation101_spill] sm:$0xff] %v4834_v48 }
  0x3a   :  { %314 = vsyncadd [#allocation9], 16384  ;;  %v4839_v33 = vld [vmem:[%s6879_s4] sm:$0xff]  ;;  %v4844_v32 = vld [vmem:[%s6879_s4 + $0x8] sm:$0xff] }
  0x3b   :  { %6966 = vst [vmem:[#allocation102_spill] sm:$0xff] %v4839_v33  ;;  %6967 = vst [vmem:[#allocation103_spill] sm:$0xff] %v4844_v32  ;;  %v4849_v49 = vld [vmem:[%s6879_s4 + $0x10] sm:$0xff]  ;;  %v4854_v48 = vld [vmem:[%s6879_s4 + $0x18] sm:$0xff] }
  0x3c   :  { %6968 = vst [vmem:[#allocation104_spill] sm:$0xff] %v4849_v49  ;;  %6969 = vst [vmem:[#allocation105_spill] sm:$0xff] %v4854_v48  ;;  %v4859_v40 = vld [vmem:[%s6879_s4 + $0x20] sm:$0xff]  ;;  %v4864_v33 = vld [vmem:[%s6879_s4 + $0x28] sm:$0xff] }
  0x3d   :  { %6970 = vst [vmem:[#allocation106_spill] sm:$0xff] %v4859_v40  ;;  %6971 = vst [vmem:[#allocation107_spill] sm:$0xff] %v4864_v33  ;;  %v4869_v32 = vld [vmem:[%s6879_s4 + $0x30] sm:$0xff]  ;;  %v4874_v49 = vld [vmem:[%s6879_s4 + $0x38] sm:$0xff] }
  0x3e   :  { %6972 = vst [vmem:[#allocation108_spill] sm:$0xff] %v4869_v32  ;;  %6973 = vst [vmem:[#allocation109_spill] sm:$0xff] %v4874_v49  ;;  %v4879_v48 = vld [vmem:[%s6879_s4 + $0x40] sm:$0xff]  ;;  %v4884_v40 = vld [vmem:[%s6879_s4 + $0x48] sm:$0xff] }
  0x3f   :  { %6974 = vst [vmem:[#allocation110_spill] sm:$0xff] %v4879_v48  ;;  %6975 = vst [vmem:[#allocation111_spill] sm:$0xff] %v4884_v40  ;;  %v4889_v33 = vld [vmem:[%s6879_s4 + $0x50] sm:$0xff]  ;;  %v4894_v32 = vld [vmem:[%s6879_s4 + $0x58] sm:$0xff] }
  0x40   :  { %6976 = vst [vmem:[#allocation112_spill] sm:$0xff] %v4889_v33  ;;  %6977 = vst [vmem:[#allocation113_spill] sm:$0xff] %v4894_v32  ;;  %v4899_v49 = vld [vmem:[%s6879_s4 + $0x60] sm:$0xff]  ;;  %v4904_v48 = vld [vmem:[%s6879_s4 + $0x68] sm:$0xff] }
  0x41   :  { %6978 = vst [vmem:[#allocation114_spill] sm:$0xff] %v4899_v49  ;;  %6979 = vst [vmem:[#allocation115_spill] sm:$0xff] %v4904_v48  ;;  %v4909_v40 = vld [vmem:[%s6879_s4 + $0x70] sm:$0xff]  ;;  %v4914_v33 = vld [vmem:[%s6879_s4 + $0x78] sm:$0xff] }
  0x42   :  { %6980 = vst [vmem:[#allocation116_spill] sm:$0xff] %v4909_v40  ;;  %6981 = vst [vmem:[#allocation117_spill] sm:$0xff] %v4914_v33  ;;  %v4919_v32 = vld [vmem:[%s6879_s4 + $0x80] sm:$0xff]  ;;  %v4924_v49 = vld [vmem:[%s6879_s4 + $0x88] sm:$0xff] }
  0x43   :  { %6982 = vst [vmem:[#allocation118_spill] sm:$0xff] %v4919_v32  ;;  %6983 = vst [vmem:[#allocation119_spill] sm:$0xff] %v4924_v49  ;;  %v4929_v48 = vld [vmem:[%s6879_s4 + $0x90] sm:$0xff]  ;;  %v4934_v40 = vld [vmem:[%s6879_s4 + $0x98] sm:$0xff] }
  0x44   :  { %6984 = vst [vmem:[#allocation120_spill] sm:$0xff] %v4929_v48  ;;  %6985 = vst [vmem:[#allocation121_spill] sm:$0xff] %v4934_v40  ;;  %v4939_v33 = vld [vmem:[%s6879_s4 + $0xa0] sm:$0xff]  ;;  %v4944_v32 = vld [vmem:[%s6879_s4 + $0xa8] sm:$0xff] }
  0x45   :  { %6986 = vst [vmem:[#allocation122_spill] sm:$0xff] %v4939_v33  ;;  %6987 = vst [vmem:[#allocation123_spill] sm:$0xff] %v4944_v32  ;;  %v4949_v49 = vld [vmem:[%s6879_s4 + $0xb0] sm:$0xff]  ;;  %v4954_v48 = vld [vmem:[%s6879_s4 + $0xb8] sm:$0xff] }
  0x46   :  { %6988 = vst [vmem:[#allocation124_spill] sm:$0xff] %v4949_v49  ;;  %6989 = vst [vmem:[#allocation125_spill] sm:$0xff] %v4954_v48  ;;  %v4959_v40 = vld [vmem:[%s6879_s4 + $0xc0] sm:$0xff]  ;;  %v4964_v33 = vld [vmem:[%s6879_s4 + $0xc8] sm:$0xff] }
  0x47   :  { %6990 = vst [vmem:[#allocation126_spill] sm:$0xff] %v4959_v40  ;;  %6991 = vst [vmem:[#allocation127_spill] sm:$0xff] %v4964_v33  ;;  %v4969_v32 = vld [vmem:[%s6879_s4 + $0xd0] sm:$0xff]  ;;  %v4974_v49 = vld [vmem:[%s6879_s4 + $0xd8] sm:$0xff] }
  0x48   :  { %6992 = vst [vmem:[#allocation128_spill] sm:$0xff] %v4969_v32  ;;  %6993 = vst [vmem:[#allocation129_spill] sm:$0xff] %v4974_v49  ;;  %v4979_v48 = vld [vmem:[%s6879_s4 + $0xe0] sm:$0xff]  ;;  %v4984_v40 = vld [vmem:[%s6879_s4 + $0xe8] sm:$0xff] }
  0x49   :  { %6994 = vst [vmem:[#allocation130_spill] sm:$0xff] %v4979_v48  ;;  %6995 = vst [vmem:[#allocation131_spill] sm:$0xff] %v4984_v40  ;;  %v4989_v33 = vld [vmem:[%s6879_s4 + $0xf0] sm:$0xff]  ;;  %v4994_v32 = vld [vmem:[%s6879_s4 + $0xf8] sm:$0xff] }
  0x4a   :  { %6996 = vst [vmem:[#allocation132_spill] sm:$0xff] %v4989_v33  ;;  %6997 = vst [vmem:[#allocation133_spill] sm:$0xff] %v4994_v32  ;;  %v4999_v49 = vld [vmem:[%s6879_s4 + $0x100] sm:$0xff]  ;;  %v5004_v48 = vld [vmem:[%s6879_s4 + $0x108] sm:$0xff] }
  0x4b   :  { %6998 = vst [vmem:[#allocation134_spill] sm:$0xff] %v4999_v49  ;;  %6999 = vst [vmem:[#allocation135_spill] sm:$0xff] %v5004_v48  ;;  %v5009_v40 = vld [vmem:[%s6879_s4 + $0x110] sm:$0xff]  ;;  %v5014_v33 = vld [vmem:[%s6879_s4 + $0x118] sm:$0xff] }
  0x4c   :  { %7000 = vst [vmem:[#allocation136_spill] sm:$0xff] %v5009_v40  ;;  %7001 = vst [vmem:[#allocation137_spill] sm:$0xff] %v5014_v33  ;;  %v5019_v32 = vld [vmem:[%s6879_s4 + $0x120] sm:$0xff]  ;;  %v5024_v49 = vld [vmem:[%s6879_s4 + $0x128] sm:$0xff] }
  0x4d   :  { %7002 = vst [vmem:[#allocation138_spill] sm:$0xff] %v5019_v32  ;;  %7003 = vst [vmem:[#allocation139_spill] sm:$0xff] %v5024_v49  ;;  %v5029_v48 = vld [vmem:[%s6879_s4 + $0x130] sm:$0xff]  ;;  %v5034_v40 = vld [vmem:[%s6879_s4 + $0x138] sm:$0xff] }
  0x4e   :  { %7004 = vst [vmem:[#allocation140_spill] sm:$0xff] %v5029_v48  ;;  %7005 = vst [vmem:[#allocation141_spill] sm:$0xff] %v5034_v40  ;;  %v5039_v33 = vld [vmem:[%s6879_s4 + $0x140] sm:$0xff]  ;;  %v5044_v32 = vld [vmem:[%s6879_s4 + $0x148] sm:$0xff] }
  0x4f   :  { %7006 = vst [vmem:[#allocation142_spill] sm:$0xff] %v5039_v33  ;;  %7007 = vst [vmem:[#allocation143_spill] sm:$0xff] %v5044_v32  ;;  %v5049_v49 = vld [vmem:[%s6879_s4 + $0x150] sm:$0xff]  ;;  %v5054_v48 = vld [vmem:[%s6879_s4 + $0x158] sm:$0xff] }
  0x50   :  { %7008 = vst [vmem:[#allocation144_spill] sm:$0xff] %v5049_v49  ;;  %7009 = vst [vmem:[#allocation145_spill] sm:$0xff] %v5054_v48  ;;  %v5059_v40 = vld [vmem:[%s6879_s4 + $0x160] sm:$0xff]  ;;  %v5064_v33 = vld [vmem:[%s6879_s4 + $0x168] sm:$0xff] }
  0x51   :  { %7010 = vst [vmem:[#allocation146_spill] sm:$0xff] %v5059_v40  ;;  %7011 = vst [vmem:[#allocation147_spill] sm:$0xff] %v5064_v33  ;;  %v5069_v32 = vld [vmem:[%s6879_s4 + $0x170] sm:$0xff]  ;;  %v5074_v49 = vld [vmem:[%s6879_s4 + $0x178] sm:$0xff] }
  0x52   :  { %7012 = vst [vmem:[#allocation148_spill] sm:$0xff] %v5069_v32  ;;  %7013 = vst [vmem:[#allocation149_spill] sm:$0xff] %v5074_v49  ;;  %v5079_v48 = vld [vmem:[%s6879_s4 + $0x180] sm:$0xff]  ;;  %v5084_v40 = vld [vmem:[%s6879_s4 + $0x188] sm:$0xff] }
  0x53   :  { %7014 = vst [vmem:[#allocation150_spill] sm:$0xff] %v5079_v48  ;;  %7015 = vst [vmem:[#allocation151_spill] sm:$0xff] %v5084_v40  ;;  %v5089_v33 = vld [vmem:[%s6879_s4 + $0x190] sm:$0xff]  ;;  %v5094_v32 = vld [vmem:[%s6879_s4 + $0x198] sm:$0xff] }
  0x54   :  { %7016 = vst [vmem:[#allocation152_spill] sm:$0xff] %v5089_v33  ;;  %7017 = vst [vmem:[#allocation153_spill] sm:$0xff] %v5094_v32  ;;  %v5099_v49 = vld [vmem:[%s6879_s4 + $0x1a0] sm:$0xff]  ;;  %v5104_v48 = vld [vmem:[%s6879_s4 + $0x1a8] sm:$0xff] }
  0x55   :  { %7018 = vst [vmem:[#allocation154_spill] sm:$0xff] %v5099_v49  ;;  %7019 = vst [vmem:[#allocation155_spill] sm:$0xff] %v5104_v48  ;;  %v5109_v40 = vld [vmem:[%s6879_s4 + $0x1b0] sm:$0xff]  ;;  %v5114_v33 = vld [vmem:[%s6879_s4 + $0x1b8] sm:$0xff] }
  0x56   :  { %7020 = vst [vmem:[#allocation156_spill] sm:$0xff] %v5109_v40  ;;  %7021 = vst [vmem:[#allocation157_spill] sm:$0xff] %v5114_v33  ;;  %v5119_v32 = vld [vmem:[%s6879_s4 + $0x1c0] sm:$0xff]  ;;  %v5124_v49 = vld [vmem:[%s6879_s4 + $0x1c8] sm:$0xff] }
  0x57   :  { %7022 = vst [vmem:[#allocation158_spill] sm:$0xff] %v5119_v32  ;;  %7023 = vst [vmem:[#allocation159_spill] sm:$0xff] %v5124_v49  ;;  %v5129_v48 = vld [vmem:[%s6879_s4 + $0x1d0] sm:$0xff]  ;;  %v5134_v40 = vld [vmem:[%s6879_s4 + $0x1d8] sm:$0xff] }
  0x58   :  { %7024 = vst [vmem:[#allocation160_spill] sm:$0xff] %v5129_v48  ;;  %7025 = vst [vmem:[#allocation161_spill] sm:$0xff] %v5134_v40  ;;  %v5139_v33 = vld [vmem:[%s6879_s4 + $0x1e0] sm:$0xff]  ;;  %v5144_v32 = vld [vmem:[%s6879_s4 + $0x1e8] sm:$0xff] }
  0x59   :  { %7026 = vst [vmem:[#allocation162_spill] sm:$0xff] %v5139_v33  ;;  %7027 = vst [vmem:[#allocation163_spill] sm:$0xff] %v5144_v32  ;;  %v5149_v49 = vld [vmem:[%s6879_s4 + $0x1f0] sm:$0xff]  ;;  %v5154_v48 = vld [vmem:[%s6879_s4 + $0x1f8] sm:$0xff] }
  0x5a   :  { %7028 = vst [vmem:[#allocation164_spill] sm:$0xff] %v5149_v49  ;;  %7029 = vst [vmem:[#allocation165_spill] sm:$0xff] %v5154_v48  ;;  %v5159_v40 = vld [vmem:[%s6879_s4 + $0x200] sm:$0xff]  ;;  %v5164_v33 = vld [vmem:[%s6879_s4 + $0x208] sm:$0xff] }
  0x5b   :  { %7030 = vst [vmem:[#allocation166_spill] sm:$0xff] %v5159_v40  ;;  %7031 = vst [vmem:[#allocation167_spill] sm:$0xff] %v5164_v33  ;;  %v5169_v32 = vld [vmem:[%s6879_s4 + $0x210] sm:$0xff]  ;;  %v5174_v49 = vld [vmem:[%s6879_s4 + $0x218] sm:$0xff] }
  0x5c   :  { %7032 = vst [vmem:[#allocation168_spill] sm:$0xff] %v5169_v32  ;;  %7033 = vst [vmem:[#allocation169_spill] sm:$0xff] %v5174_v49  ;;  %v5179_v48 = vld [vmem:[%s6879_s4 + $0x220] sm:$0xff]  ;;  %v5184_v40 = vld [vmem:[%s6879_s4 + $0x228] sm:$0xff] }
  0x5d   :  { %7034 = vst [vmem:[#allocation170_spill] sm:$0xff] %v5179_v48  ;;  %7035 = vst [vmem:[#allocation171_spill] sm:$0xff] %v5184_v40  ;;  %v5189_v33 = vld [vmem:[%s6879_s4 + $0x230] sm:$0xff]  ;;  %v5194_v32 = vld [vmem:[%s6879_s4 + $0x238] sm:$0xff] }
  0x5e   :  { %7036 = vst [vmem:[#allocation172_spill] sm:$0xff] %v5189_v33  ;;  %7037 = vst [vmem:[#allocation173_spill] sm:$0xff] %v5194_v32  ;;  %v5199_v49 = vld [vmem:[%s6879_s4 + $0x240] sm:$0xff]  ;;  %v5204_v48 = vld [vmem:[%s6879_s4 + $0x248] sm:$0xff] }
  0x5f   :  { %7038 = vst [vmem:[#allocation174_spill] sm:$0xff] %v5199_v49  ;;  %7039 = vst [vmem:[#allocation175_spill] sm:$0xff] %v5204_v48  ;;  %v5209_v40 = vld [vmem:[%s6879_s4 + $0x250] sm:$0xff]  ;;  %v5214_v33 = vld [vmem:[%s6879_s4 + $0x258] sm:$0xff] }
  0x60   :  { %7040 = vst [vmem:[#allocation176_spill] sm:$0xff] %v5209_v40  ;;  %7041 = vst [vmem:[#allocation177_spill] sm:$0xff] %v5214_v33  ;;  %v5219_v32 = vld [vmem:[%s6879_s4 + $0x260] sm:$0xff]  ;;  %v5224_v49 = vld [vmem:[%s6879_s4 + $0x268] sm:$0xff] }
  0x61   :  { %7042 = vst [vmem:[#allocation178_spill] sm:$0xff] %v5219_v32  ;;  %7043 = vst [vmem:[#allocation179_spill] sm:$0xff] %v5224_v49  ;;  %v5229_v48 = vld [vmem:[%s6879_s4 + $0x270] sm:$0xff]  ;;  %v5234_v40 = vld [vmem:[%s6879_s4 + $0x278] sm:$0xff] }
  0x62   :  { %7044 = vst [vmem:[#allocation180_spill] sm:$0xff] %v5229_v48  ;;  %7045 = vst [vmem:[#allocation181_spill] sm:$0xff] %v5234_v40  ;;  %v5239_v33 = vld [vmem:[%s6879_s4 + $0x280] sm:$0xff]  ;;  %v5244_v32 = vld [vmem:[%s6879_s4 + $0x288] sm:$0xff] }
  0x63   :  { %7046 = vst [vmem:[#allocation182_spill] sm:$0xff] %v5239_v33  ;;  %7047 = vst [vmem:[#allocation183_spill] sm:$0xff] %v5244_v32  ;;  %v5249_v49 = vld [vmem:[%s6879_s4 + $0x290] sm:$0xff]  ;;  %v5254_v48 = vld [vmem:[%s6879_s4 + $0x298] sm:$0xff] }
  0x64   :  { %7048 = vst [vmem:[#allocation184_spill] sm:$0xff] %v5249_v49  ;;  %7049 = vst [vmem:[#allocation185_spill] sm:$0xff] %v5254_v48  ;;  %v5259_v40 = vld [vmem:[%s6879_s4 + $0x2a0] sm:$0xff]  ;;  %v5264_v33 = vld [vmem:[%s6879_s4 + $0x2a8] sm:$0xff] }
  0x65   :  { %7050 = vst [vmem:[#allocation186_spill] sm:$0xff] %v5259_v40  ;;  %7051 = vst [vmem:[#allocation187_spill] sm:$0xff] %v5264_v33  ;;  %v5269_v32 = vld [vmem:[%s6879_s4 + $0x2b0] sm:$0xff]  ;;  %v5274_v49 = vld [vmem:[%s6879_s4 + $0x2b8] sm:$0xff] }
  0x66   :  { %7052 = vst [vmem:[#allocation188_spill] sm:$0xff] %v5269_v32  ;;  %7053 = vst [vmem:[#allocation189_spill] sm:$0xff] %v5274_v49  ;;  %v5279_v48 = vld [vmem:[%s6879_s4 + $0x2c0] sm:$0xff]  ;;  %v5284_v40 = vld [vmem:[%s6879_s4 + $0x2c8] sm:$0xff] }
  0x67   :  { %7054 = vst [vmem:[#allocation190_spill] sm:$0xff] %v5279_v48  ;;  %7055 = vst [vmem:[#allocation191_spill] sm:$0xff] %v5284_v40  ;;  %v5289_v33 = vld [vmem:[%s6879_s4 + $0x2d0] sm:$0xff]  ;;  %v5294_v32 = vld [vmem:[%s6879_s4 + $0x2d8] sm:$0xff] }
  0x68   :  { %7056 = vst [vmem:[#allocation192_spill] sm:$0xff] %v5289_v33  ;;  %7057 = vst [vmem:[#allocation193_spill] sm:$0xff] %v5294_v32  ;;  %v5299_v49 = vld [vmem:[%s6879_s4 + $0x2e0] sm:$0xff]  ;;  %v5304_v48 = vld [vmem:[%s6879_s4 + $0x2e8] sm:$0xff] }
  0x69   :  { %7058 = vst [vmem:[#allocation194_spill] sm:$0xff] %v5299_v49  ;;  %7059 = vst [vmem:[#allocation195_spill] sm:$0xff] %v5304_v48  ;;  %v5309_v40 = vld [vmem:[%s6879_s4 + $0x2f0] sm:$0xff]  ;;  %v5314_v33 = vld [vmem:[%s6879_s4 + $0x2f8] sm:$0xff] }
  0x6a   :  { %7060 = vst [vmem:[#allocation196_spill] sm:$0xff] %v5309_v40  ;;  %7061 = vst [vmem:[#allocation197_spill] sm:$0xff] %v5314_v33  ;;  %v5319_v32 = vld [vmem:[%s6879_s4 + $0x300] sm:$0xff]  ;;  %v5324_v49 = vld [vmem:[%s6879_s4 + $0x308] sm:$0xff] }
  0x6b   :  { %7062 = vst [vmem:[#allocation198_spill] sm:$0xff] %v5319_v32  ;;  %7063 = vst [vmem:[#allocation199_spill] sm:$0xff] %v5324_v49  ;;  %v5329_v48 = vld [vmem:[%s6879_s4 + $0x310] sm:$0xff]  ;;  %v5334_v40 = vld [vmem:[%s6879_s4 + $0x318] sm:$0xff] }
  0x6c   :  { %7064 = vst [vmem:[#allocation200_spill] sm:$0xff] %v5329_v48  ;;  %7065 = vst [vmem:[#allocation201_spill] sm:$0xff] %v5334_v40  ;;  %v5339_v33 = vld [vmem:[%s6879_s4 + $0x320] sm:$0xff]  ;;  %v5344_v32 = vld [vmem:[%s6879_s4 + $0x328] sm:$0xff] }
  0x6d   :  { %7066 = vst [vmem:[#allocation202_spill] sm:$0xff] %v5339_v33  ;;  %7067 = vst [vmem:[#allocation203_spill] sm:$0xff] %v5344_v32  ;;  %v5349_v49 = vld [vmem:[%s6879_s4 + $0x330] sm:$0xff]  ;;  %v5354_v48 = vld [vmem:[%s6879_s4 + $0x338] sm:$0xff] }
  0x6e   :  { %7068 = vst [vmem:[#allocation204_spill] sm:$0xff] %v5349_v49  ;;  %7069 = vst [vmem:[#allocation205_spill] sm:$0xff] %v5354_v48  ;;  %v5359_v40 = vld [vmem:[%s6879_s4 + $0x340] sm:$0xff]  ;;  %v5364_v33 = vld [vmem:[%s6879_s4 + $0x348] sm:$0xff] }
  0x6f   :  { %7070 = vst [vmem:[#allocation206_spill] sm:$0xff] %v5359_v40  ;;  %7071 = vst [vmem:[#allocation207_spill] sm:$0xff] %v5364_v33  ;;  %v5369_v32 = vld [vmem:[%s6879_s4 + $0x350] sm:$0xff]  ;;  %v5374_v49 = vld [vmem:[%s6879_s4 + $0x358] sm:$0xff] }
  0x70   :  { %7072 = vst [vmem:[#allocation208_spill] sm:$0xff] %v5369_v32  ;;  %7073 = vst [vmem:[#allocation209_spill] sm:$0xff] %v5374_v49  ;;  %v5379_v48 = vld [vmem:[%s6879_s4 + $0x360] sm:$0xff]  ;;  %v5384_v40 = vld [vmem:[%s6879_s4 + $0x368] sm:$0xff] }
  0x71   :  { %7074 = vst [vmem:[#allocation210_spill] sm:$0xff] %v5379_v48  ;;  %7075 = vst [vmem:[#allocation211_spill] sm:$0xff] %v5384_v40  ;;  %v5389_v33 = vld [vmem:[%s6879_s4 + $0x370] sm:$0xff]  ;;  %v5394_v32 = vld [vmem:[%s6879_s4 + $0x378] sm:$0xff] }
  0x72   :  { %7076 = vst [vmem:[#allocation212_spill] sm:$0xff] %v5389_v33  ;;  %7077 = vst [vmem:[#allocation213_spill] sm:$0xff] %v5394_v32  ;;  %v5399_v49 = vld [vmem:[%s6879_s4 + $0x380] sm:$0xff]  ;;  %v5404_v48 = vld [vmem:[%s6879_s4 + $0x388] sm:$0xff] }
  0x73   :  { %7078 = vst [vmem:[#allocation214_spill] sm:$0xff] %v5399_v49  ;;  %7079 = vst [vmem:[#allocation215_spill] sm:$0xff] %v5404_v48  ;;  %v5409_v40 = vld [vmem:[%s6879_s4 + $0x390] sm:$0xff]  ;;  %v5414_v33 = vld [vmem:[%s6879_s4 + $0x398] sm:$0xff] }
  0x74   :  { %7080 = vst [vmem:[#allocation216_spill] sm:$0xff] %v5409_v40  ;;  %7081 = vst [vmem:[#allocation217_spill] sm:$0xff] %v5414_v33  ;;  %v5419_v32 = vld [vmem:[%s6879_s4 + $0x3a0] sm:$0xff]  ;;  %v5424_v49 = vld [vmem:[%s6879_s4 + $0x3a8] sm:$0xff] }
  0x75   :  { %7082 = vst [vmem:[#allocation218_spill] sm:$0xff] %v5419_v32  ;;  %7083 = vst [vmem:[#allocation219_spill] sm:$0xff] %v5424_v49  ;;  %v5429_v48 = vld [vmem:[%s6879_s4 + $0x3b0] sm:$0xff]  ;;  %v5434_v40 = vld [vmem:[%s6879_s4 + $0x3b8] sm:$0xff] }
  0x76   :  { %7084 = vst [vmem:[#allocation220_spill] sm:$0xff] %v5429_v48  ;;  %7085 = vst [vmem:[#allocation221_spill] sm:$0xff] %v5434_v40  ;;  %v5439_v33 = vld [vmem:[%s6879_s4 + $0x3c0] sm:$0xff]  ;;  %v5444_v32 = vld [vmem:[%s6879_s4 + $0x3c8] sm:$0xff] }
  0x77   :  { %7086 = vst [vmem:[#allocation222_spill] sm:$0xff] %v5439_v33  ;;  %7087 = vst [vmem:[#allocation223_spill] sm:$0xff] %v5444_v32  ;;  %v5449_v49 = vld [vmem:[%s6879_s4 + $0x3d0] sm:$0xff]  ;;  %v5454_v48 = vld [vmem:[%s6879_s4 + $0x3d8] sm:$0xff] }
  0x78   :  { %7088 = vst [vmem:[#allocation224_spill] sm:$0xff] %v5449_v49  ;;  %7089 = vst [vmem:[#allocation225_spill] sm:$0xff] %v5454_v48  ;;  %v5459_v40 = vld [vmem:[%s6879_s4 + $0x3e0] sm:$0xff]  ;;  %v5464_v33 = vld [vmem:[%s6879_s4 + $0x3e8] sm:$0xff] }
  0x79   :  { %7090 = vst [vmem:[#allocation226_spill] sm:$0xff] %v5459_v40  ;;  %7091 = vst [vmem:[#allocation227_spill] sm:$0xff] %v5464_v33  ;;  %v5469_v32 = vld [vmem:[%s6879_s4 + $0x3f0] sm:$0xff]  ;;  %v5474_v49 = vld [vmem:[%s6879_s4 + $0x3f8] sm:$0xff] }
  0x7a   :  { %7092 = vst [vmem:[#allocation228_spill] sm:$0xff] %v5469_v32  ;;  %7093 = vst [vmem:[#allocation229_spill] sm:$0xff] %v5474_v49  ;;  %v5479_v48 = vld [vmem:[%s6879_s4 + $0x400] sm:$0xff]  ;;  %v5484_v40 = vld [vmem:[%s6879_s4 + $0x408] sm:$0xff] }
  0x7b   :  { %7094 = vst [vmem:[#allocation230_spill] sm:$0xff] %v5479_v48  ;;  %7095 = vst [vmem:[#allocation231_spill] sm:$0xff] %v5484_v40  ;;  %v5489_v33 = vld [vmem:[%s6879_s4 + $0x410] sm:$0xff]  ;;  %v5494_v32 = vld [vmem:[%s6879_s4 + $0x418] sm:$0xff] }
  0x7c   :  { %7096 = vst [vmem:[#allocation232_spill] sm:$0xff] %v5489_v33  ;;  %7097 = vst [vmem:[#allocation233_spill] sm:$0xff] %v5494_v32  ;;  %v5499_v49 = vld [vmem:[%s6879_s4 + $0x420] sm:$0xff]  ;;  %v5504_v48 = vld [vmem:[%s6879_s4 + $0x428] sm:$0xff] }
  0x7d   :  { %7098 = vst [vmem:[#allocation234_spill] sm:$0xff] %v5499_v49  ;;  %7099 = vst [vmem:[#allocation235_spill] sm:$0xff] %v5504_v48  ;;  %v5509_v40 = vld [vmem:[%s6879_s4 + $0x430] sm:$0xff]  ;;  %v5514_v33 = vld [vmem:[%s6879_s4 + $0x438] sm:$0xff] }
  0x7e   :  { %7100 = vst [vmem:[#allocation236_spill] sm:$0xff] %v5509_v40  ;;  %7101 = vst [vmem:[#allocation237_spill] sm:$0xff] %v5514_v33  ;;  %v5519_v32 = vld [vmem:[%s6879_s4 + $0x440] sm:$0xff]  ;;  %v5524_v49 = vld [vmem:[%s6879_s4 + $0x448] sm:$0xff] }
  0x7f   :  { %7102 = vst [vmem:[#allocation238_spill] sm:$0xff] %v5519_v32  ;;  %7103 = vst [vmem:[#allocation239_spill] sm:$0xff] %v5524_v49  ;;  %v5529_v48 = vld [vmem:[%s6879_s4 + $0x450] sm:$0xff]  ;;  %v5534_v40 = vld [vmem:[%s6879_s4 + $0x458] sm:$0xff] }
  0x80   :  { %7104 = vst [vmem:[#allocation240_spill] sm:$0xff] %v5529_v48  ;;  %7105 = vst [vmem:[#allocation241_spill] sm:$0xff] %v5534_v40  ;;  %v5539_v33 = vld [vmem:[%s6879_s4 + $0x460] sm:$0xff]  ;;  %v5544_v32 = vld [vmem:[%s6879_s4 + $0x468] sm:$0xff] }
  0x81   :  { %7106 = vst [vmem:[#allocation242_spill] sm:$0xff] %v5539_v33  ;;  %7107 = vst [vmem:[#allocation243_spill] sm:$0xff] %v5544_v32  ;;  %v5549_v49 = vld [vmem:[%s6879_s4 + $0x470] sm:$0xff]  ;;  %v5554_v48 = vld [vmem:[%s6879_s4 + $0x478] sm:$0xff] }
  0x82   :  { %7108 = vst [vmem:[#allocation244_spill] sm:$0xff] %v5549_v49  ;;  %7109 = vst [vmem:[#allocation245_spill] sm:$0xff] %v5554_v48 }
  0x83   :  { %643 = vsyncadd [#allocation9 + $0x1], 18432  ;;  %v5559_v33 = vld [vmem:[%s6880_s5] sm:$0xff]  ;;  %v5564_v32 = vld [vmem:[%s6880_s5 + $0x8] sm:$0xff] }
  0x84   :  { %7110 = vst [vmem:[#allocation246_spill] sm:$0xff] %v5559_v33  ;;  %7111 = vst [vmem:[#allocation247_spill] sm:$0xff] %v5564_v32  ;;  %v5569_v49 = vld [vmem:[%s6880_s5 + $0x10] sm:$0xff]  ;;  %v5574_v48 = vld [vmem:[%s6880_s5 + $0x18] sm:$0xff] }
  0x85   :  { %7112 = vst [vmem:[#allocation248_spill] sm:$0xff] %v5569_v49  ;;  %7113 = vst [vmem:[#allocation249_spill] sm:$0xff] %v5574_v48  ;;  %v5579_v40 = vld [vmem:[%s6880_s5 + $0x20] sm:$0xff]  ;;  %v5584_v33 = vld [vmem:[%s6880_s5 + $0x28] sm:$0xff] }
  0x86   :  { %7114 = vst [vmem:[#allocation250_spill] sm:$0xff] %v5579_v40  ;;  %7115 = vst [vmem:[#allocation251_spill] sm:$0xff] %v5584_v33  ;;  %v5589_v32 = vld [vmem:[%s6880_s5 + $0x30] sm:$0xff]  ;;  %v5594_v49 = vld [vmem:[%s6880_s5 + $0x38] sm:$0xff] }
  0x87   :  { %7116 = vst [vmem:[#allocation252_spill] sm:$0xff] %v5589_v32  ;;  %7117 = vst [vmem:[#allocation253_spill] sm:$0xff] %v5594_v49  ;;  %v5599_v48 = vld [vmem:[%s6880_s5 + $0x40] sm:$0xff]  ;;  %v5604_v40 = vld [vmem:[%s6880_s5 + $0x48] sm:$0xff] }
  0x88   :  { %7118 = vst [vmem:[#allocation254_spill] sm:$0xff] %v5599_v48  ;;  %7119 = vst [vmem:[#allocation255_spill] sm:$0xff] %v5604_v40  ;;  %v5609_v33 = vld [vmem:[%s6880_s5 + $0x50] sm:$0xff]  ;;  %v5614_v32 = vld [vmem:[%s6880_s5 + $0x58] sm:$0xff] }
  0x89   :  { %7120 = vst [vmem:[#allocation256_spill] sm:$0xff] %v5609_v33  ;;  %7121 = vst [vmem:[#allocation257_spill] sm:$0xff] %v5614_v32  ;;  %v5619_v49 = vld [vmem:[%s6880_s5 + $0x60] sm:$0xff]  ;;  %v5624_v48 = vld [vmem:[%s6880_s5 + $0x68] sm:$0xff] }
  0x8a   :  { %7122 = vst [vmem:[#allocation258_spill] sm:$0xff] %v5619_v49  ;;  %7123 = vst [vmem:[#allocation259_spill] sm:$0xff] %v5624_v48  ;;  %v5629_v40 = vld [vmem:[%s6880_s5 + $0x70] sm:$0xff]  ;;  %v5634_v33 = vld [vmem:[%s6880_s5 + $0x78] sm:$0xff] }
  0x8b   :  { %7124 = vst [vmem:[#allocation260_spill] sm:$0xff] %v5629_v40  ;;  %7125 = vst [vmem:[#allocation261_spill] sm:$0xff] %v5634_v33  ;;  %v5639_v32 = vld [vmem:[%s6880_s5 + $0x80] sm:$0xff]  ;;  %v5644_v49 = vld [vmem:[%s6880_s5 + $0x88] sm:$0xff] }
  0x8c   :  { %7126 = vst [vmem:[#allocation262_spill] sm:$0xff] %v5639_v32  ;;  %7127 = vst [vmem:[#allocation263_spill] sm:$0xff] %v5644_v49  ;;  %v5649_v48 = vld [vmem:[%s6880_s5 + $0x90] sm:$0xff]  ;;  %v5654_v40 = vld [vmem:[%s6880_s5 + $0x98] sm:$0xff] }
  0x8d   :  { %7128 = vst [vmem:[#allocation264_spill] sm:$0xff] %v5649_v48  ;;  %7129 = vst [vmem:[#allocation265_spill] sm:$0xff] %v5654_v40  ;;  %v5659_v33 = vld [vmem:[%s6880_s5 + $0xa0] sm:$0xff]  ;;  %v5664_v32 = vld [vmem:[%s6880_s5 + $0xa8] sm:$0xff] }
  0x8e   :  { %7130 = vst [vmem:[#allocation266_spill] sm:$0xff] %v5659_v33  ;;  %7131 = vst [vmem:[#allocation267_spill] sm:$0xff] %v5664_v32  ;;  %v5669_v49 = vld [vmem:[%s6880_s5 + $0xb0] sm:$0xff]  ;;  %v5674_v48 = vld [vmem:[%s6880_s5 + $0xb8] sm:$0xff] }
  0x8f   :  { %7132 = vst [vmem:[#allocation268_spill] sm:$0xff] %v5669_v49  ;;  %7133 = vst [vmem:[#allocation269_spill] sm:$0xff] %v5674_v48  ;;  %v5679_v40 = vld [vmem:[%s6880_s5 + $0xc0] sm:$0xff]  ;;  %v5684_v33 = vld [vmem:[%s6880_s5 + $0xc8] sm:$0xff] }
  0x90   :  { %7134 = vst [vmem:[#allocation270_spill] sm:$0xff] %v5679_v40  ;;  %7135 = vst [vmem:[#allocation271_spill] sm:$0xff] %v5684_v33  ;;  %v5689_v32 = vld [vmem:[%s6880_s5 + $0xd0] sm:$0xff]  ;;  %v5694_v49 = vld [vmem:[%s6880_s5 + $0xd8] sm:$0xff] }
  0x91   :  { %7136 = vst [vmem:[#allocation272_spill] sm:$0xff] %v5689_v32  ;;  %7137 = vst [vmem:[#allocation273_spill] sm:$0xff] %v5694_v49  ;;  %v5699_v48 = vld [vmem:[%s6880_s5 + $0xe0] sm:$0xff]  ;;  %v5704_v40 = vld [vmem:[%s6880_s5 + $0xe8] sm:$0xff] }
  0x92   :  { %7138 = vst [vmem:[#allocation274_spill] sm:$0xff] %v5699_v48  ;;  %7139 = vst [vmem:[#allocation275_spill] sm:$0xff] %v5704_v40  ;;  %v5709_v33 = vld [vmem:[%s6880_s5 + $0xf0] sm:$0xff]  ;;  %v5714_v32 = vld [vmem:[%s6880_s5 + $0xf8] sm:$0xff] }
  0x93   :  { %7140 = vst [vmem:[#allocation276_spill] sm:$0xff] %v5709_v33  ;;  %7141 = vst [vmem:[#allocation277_spill] sm:$0xff] %v5714_v32 }
  0x94   :  { %748 = vsyncadd [#allocation9 + $0x2], 4096  ;;  %v5719_v49 = vld [vmem:[%s6881_s6] sm:$0xff]  ;;  %v5724_v48 = vld [vmem:[%s6881_s6 + $0x8] sm:$0xff] }
  0x95   :  { %7142 = vst [vmem:[#allocation278_spill] sm:$0xff] %v5719_v49  ;;  %7143 = vst [vmem:[#allocation279_spill] sm:$0xff] %v5724_v48  ;;  %v5729_v33 = vld [vmem:[%s6881_s6 + $0x10] sm:$0xff]  ;;  %v5734_v32 = vld [vmem:[%s6881_s6 + $0x18] sm:$0xff] }
  0x96   :  { %7144 = vst [vmem:[#allocation280_spill] sm:$0xff] %v5729_v33  ;;  %7145 = vst [vmem:[#allocation281_spill] sm:$0xff] %v5734_v32  ;;  %v5739_v40 = vld [vmem:[%s6881_s6 + $0x20] sm:$0xff]  ;;  %v5744_v49 = vld [vmem:[%s6881_s6 + $0x28] sm:$0xff] }
  0x97   :  { %7146 = vst [vmem:[#allocation282_spill] sm:$0xff] %v5739_v40  ;;  %7147 = vst [vmem:[#allocation283_spill] sm:$0xff] %v5744_v49  ;;  %v5749_v48 = vld [vmem:[%s6881_s6 + $0x30] sm:$0xff]  ;;  %v5754_v33 = vld [vmem:[%s6881_s6 + $0x38] sm:$0xff] }
  0x98   :  { %7148 = vst [vmem:[#allocation284_spill] sm:$0xff] %v5749_v48  ;;  %7149 = vst [vmem:[#allocation285_spill] sm:$0xff] %v5754_v33  ;;  %v5759_v32 = vld [vmem:[%s6881_s6 + $0x40] sm:$0xff]  ;;  %v5764_v40 = vld [vmem:[%s6881_s6 + $0x48] sm:$0xff] }
  0x99   :  { %7150 = vst [vmem:[#allocation286_spill] sm:$0xff] %v5759_v32  ;;  %7151 = vst [vmem:[#allocation287_spill] sm:$0xff] %v5764_v40  ;;  %v5769_v49 = vld [vmem:[%s6881_s6 + $0x50] sm:$0xff]  ;;  %v5774_v48 = vld [vmem:[%s6881_s6 + $0x58] sm:$0xff] }
  0x9a   :  { %7152 = vst [vmem:[#allocation288_spill] sm:$0xff] %v5769_v49  ;;  %7153 = vst [vmem:[#allocation289_spill] sm:$0xff] %v5774_v48  ;;  %v5779_v33 = vld [vmem:[%s6881_s6 + $0x60] sm:$0xff]  ;;  %v5784_v32 = vld [vmem:[%s6881_s6 + $0x68] sm:$0xff] }
  0x9b   :  { %7154 = vst [vmem:[#allocation290_spill] sm:$0xff] %v5779_v33  ;;  %7155 = vst [vmem:[#allocation291_spill] sm:$0xff] %v5784_v32  ;;  %v5789_v40 = vld [vmem:[%s6881_s6 + $0x70] sm:$0xff]  ;;  %v5794_v49 = vld [vmem:[%s6881_s6 + $0x78] sm:$0xff] }
  0x9c   :  { %7156 = vst [vmem:[#allocation292_spill] sm:$0xff] %v5789_v40  ;;  %7157 = vst [vmem:[#allocation293_spill] sm:$0xff] %v5794_v49  ;;  %v5799_v48 = vld [vmem:[%s6881_s6 + $0x80] sm:$0xff]  ;;  %v5804_v33 = vld [vmem:[%s6881_s6 + $0x88] sm:$0xff] }
  0x9d   :  { %7158 = vst [vmem:[#allocation294_spill] sm:$0xff] %v5799_v48  ;;  %7159 = vst [vmem:[#allocation295_spill] sm:$0xff] %v5804_v33  ;;  %v5809_v32 = vld [vmem:[%s6881_s6 + $0x90] sm:$0xff]  ;;  %v5814_v40 = vld [vmem:[%s6881_s6 + $0x98] sm:$0xff] }
  0x9e   :  { %7160 = vst [vmem:[#allocation296_spill] sm:$0xff] %v5809_v32  ;;  %7161 = vst [vmem:[#allocation297_spill] sm:$0xff] %v5814_v40  ;;  %v5819_v49 = vld [vmem:[%s6881_s6 + $0xa0] sm:$0xff]  ;;  %v5824_v48 = vld [vmem:[%s6881_s6 + $0xa8] sm:$0xff] }
  0x9f   :  { %7162 = vst [vmem:[#allocation298_spill] sm:$0xff] %v5819_v49  ;;  %7163 = vst [vmem:[#allocation299_spill] sm:$0xff] %v5824_v48  ;;  %v5829_v33 = vld [vmem:[%s6881_s6 + $0xb0] sm:$0xff]  ;;  %v5834_v32 = vld [vmem:[%s6881_s6 + $0xb8] sm:$0xff] }
  0xa0   :  { %7164 = vst [vmem:[#allocation300_spill] sm:$0xff] %v5829_v33  ;;  %7165 = vst [vmem:[#allocation301_spill] sm:$0xff] %v5834_v32  ;;  %v5839_v40 = vld [vmem:[%s6881_s6 + $0xc0] sm:$0xff]  ;;  %v5844_v49 = vld [vmem:[%s6881_s6 + $0xc8] sm:$0xff] }
  0xa1   :  { %7166 = vst [vmem:[#allocation302_spill] sm:$0xff] %v5839_v40  ;;  %7167 = vst [vmem:[#allocation303_spill] sm:$0xff] %v5844_v49  ;;  %v5849_v48 = vld [vmem:[%s6881_s6 + $0xd0] sm:$0xff]  ;;  %v5854_v33 = vld [vmem:[%s6881_s6 + $0xd8] sm:$0xff] }
  0xa2   :  { %7168 = vst [vmem:[#allocation304_spill] sm:$0xff] %v5849_v48  ;;  %7169 = vst [vmem:[#allocation305_spill] sm:$0xff] %v5854_v33  ;;  %v5859_v32 = vld [vmem:[%s6881_s6 + $0xe0] sm:$0xff]  ;;  %v5864_v40 = vld [vmem:[%s6881_s6 + $0xe8] sm:$0xff] }
  0xa3   :  { %7170 = vst [vmem:[#allocation306_spill] sm:$0xff] %v5859_v32  ;;  %7171 = vst [vmem:[#allocation307_spill] sm:$0xff] %v5864_v40  ;;  %v5869_v49 = vld [vmem:[%s6881_s6 + $0xf0] sm:$0xff]  ;;  %v5874_v48 = vld [vmem:[%s6881_s6 + $0xf8] sm:$0xff] }
  0xa4   :  { %7172 = vst [vmem:[#allocation308_spill] sm:$0xff] %v5869_v49  ;;  %7173 = vst [vmem:[#allocation309_spill] sm:$0xff] %v5874_v48  ;;  %v5879_v33 = vld [vmem:[%s6881_s6 + $0x100] sm:$0xff]  ;;  %v5884_v32 = vld [vmem:[%s6881_s6 + $0x108] sm:$0xff] }
  0xa5   :  { %7174 = vst [vmem:[#allocation310_spill] sm:$0xff] %v5879_v33  ;;  %7175 = vst [vmem:[#allocation311_spill] sm:$0xff] %v5884_v32  ;;  %v5889_v40 = vld [vmem:[%s6881_s6 + $0x110] sm:$0xff]  ;;  %v5894_v49 = vld [vmem:[%s6881_s6 + $0x118] sm:$0xff] }
  0xa6   :  { %7176 = vst [vmem:[#allocation312_spill] sm:$0xff] %v5889_v40  ;;  %7177 = vst [vmem:[#allocation313_spill] sm:$0xff] %v5894_v49  ;;  %v5899_v48 = vld [vmem:[%s6881_s6 + $0x120] sm:$0xff]  ;;  %v5904_v33 = vld [vmem:[%s6881_s6 + $0x128] sm:$0xff] }
  0xa7   :  { %7178 = vst [vmem:[#allocation314_spill] sm:$0xff] %v5899_v48  ;;  %7179 = vst [vmem:[#allocation315_spill] sm:$0xff] %v5904_v33  ;;  %v5909_v32 = vld [vmem:[%s6881_s6 + $0x130] sm:$0xff]  ;;  %v5914_v40 = vld [vmem:[%s6881_s6 + $0x138] sm:$0xff] }
  0xa8   :  { %7180 = vst [vmem:[#allocation316_spill] sm:$0xff] %v5909_v32  ;;  %7181 = vst [vmem:[#allocation317_spill] sm:$0xff] %v5914_v40  ;;  %v5919_v49 = vld [vmem:[%s6881_s6 + $0x140] sm:$0xff]  ;;  %v5924_v48 = vld [vmem:[%s6881_s6 + $0x148] sm:$0xff] }
  0xa9   :  { %7182 = vst [vmem:[#allocation318_spill] sm:$0xff] %v5919_v49  ;;  %7183 = vst [vmem:[#allocation319_spill] sm:$0xff] %v5924_v48  ;;  %v5929_v33 = vld [vmem:[%s6881_s6 + $0x150] sm:$0xff]  ;;  %v5934_v32 = vld [vmem:[%s6881_s6 + $0x158] sm:$0xff] }
  0xaa   :  { %7184 = vst [vmem:[#allocation320_spill] sm:$0xff] %v5929_v33  ;;  %7185 = vst [vmem:[#allocation321_spill] sm:$0xff] %v5934_v32  ;;  %v5939_v40 = vld [vmem:[%s6881_s6 + $0x160] sm:$0xff]  ;;  %v5944_v49 = vld [vmem:[%s6881_s6 + $0x168] sm:$0xff] }
  0xab   :  { %7186 = vst [vmem:[#allocation322_spill] sm:$0xff] %v5939_v40  ;;  %7187 = vst [vmem:[#allocation323_spill] sm:$0xff] %v5944_v49  ;;  %v5949_v48 = vld [vmem:[%s6881_s6 + $0x170] sm:$0xff]  ;;  %v5954_v33 = vld [vmem:[%s6881_s6 + $0x178] sm:$0xff] }
  0xac   :  { %7188 = vst [vmem:[#allocation324_spill] sm:$0xff] %v5949_v48  ;;  %7189 = vst [vmem:[#allocation325_spill] sm:$0xff] %v5954_v33  ;;  %v5959_v32 = vld [vmem:[%s6881_s6 + $0x180] sm:$0xff]  ;;  %v5964_v40 = vld [vmem:[%s6881_s6 + $0x188] sm:$0xff] }
  0xad   :  { %7190 = vst [vmem:[#allocation326_spill] sm:$0xff] %v5959_v32  ;;  %7191 = vst [vmem:[#allocation327_spill] sm:$0xff] %v5964_v40  ;;  %v5969_v49 = vld [vmem:[%s6881_s6 + $0x190] sm:$0xff]  ;;  %v5974_v48 = vld [vmem:[%s6881_s6 + $0x198] sm:$0xff] }
  0xae   :  { %7192 = vst [vmem:[#allocation328_spill] sm:$0xff] %v5969_v49  ;;  %7193 = vst [vmem:[#allocation329_spill] sm:$0xff] %v5974_v48  ;;  %v5979_v33 = vld [vmem:[%s6881_s6 + $0x1a0] sm:$0xff]  ;;  %v5984_v32 = vld [vmem:[%s6881_s6 + $0x1a8] sm:$0xff] }
  0xaf   :  { %7194 = vst [vmem:[#allocation330_spill] sm:$0xff] %v5979_v33  ;;  %7195 = vst [vmem:[#allocation331_spill] sm:$0xff] %v5984_v32  ;;  %v5989_v40 = vld [vmem:[%s6881_s6 + $0x1b0] sm:$0xff]  ;;  %v5994_v49 = vld [vmem:[%s6881_s6 + $0x1b8] sm:$0xff] }
  0xb0   :  { %7196 = vst [vmem:[#allocation332_spill] sm:$0xff] %v5989_v40  ;;  %7197 = vst [vmem:[#allocation333_spill] sm:$0xff] %v5994_v49  ;;  %v5999_v48 = vld [vmem:[%s6881_s6 + $0x1c0] sm:$0xff]  ;;  %v6004_v33 = vld [vmem:[%s6881_s6 + $0x1c8] sm:$0xff] }
  0xb1   :  { %7198 = vst [vmem:[#allocation334_spill] sm:$0xff] %v5999_v48  ;;  %7199 = vst [vmem:[#allocation335_spill] sm:$0xff] %v6004_v33  ;;  %v6009_v32 = vld [vmem:[%s6881_s6 + $0x1d0] sm:$0xff]  ;;  %v6014_v40 = vld [vmem:[%s6881_s6 + $0x1d8] sm:$0xff] }
  0xb2   :  { %7200 = vst [vmem:[#allocation336_spill] sm:$0xff] %v6009_v32  ;;  %7201 = vst [vmem:[#allocation337_spill] sm:$0xff] %v6014_v40  ;;  %v6019_v49 = vld [vmem:[%s6881_s6 + $0x1e0] sm:$0xff]  ;;  %v6024_v48 = vld [vmem:[%s6881_s6 + $0x1e8] sm:$0xff] }
  0xb3   :  { %7202 = vst [vmem:[#allocation338_spill] sm:$0xff] %v6019_v49  ;;  %7203 = vst [vmem:[#allocation339_spill] sm:$0xff] %v6024_v48  ;;  %v6029_v33 = vld [vmem:[%s6881_s6 + $0x1f0] sm:$0xff]  ;;  %v6034_v32 = vld [vmem:[%s6881_s6 + $0x1f8] sm:$0xff] }
  0xb4   :  { %7204 = vst [vmem:[#allocation340_spill] sm:$0xff] %v6029_v33  ;;  %7205 = vst [vmem:[#allocation341_spill] sm:$0xff] %v6034_v32 }
  0xb5   :  { %917 = vsyncadd [#allocation9 + $0x3], 8192  ;;  %v6039_v49 = vld [vmem:[%s6877_s2 + $0x1] ss:$0 sm:$0xff]  ;;  %v6044_v48 = vld [vmem:[%s6877_s2 + $0x2] ss:$0 sm:$0xff] }
  0xb6   :  { %7206 = vst [vmem:[#allocation342_spill] sm:$0xff] %v6039_v49  ;;  %7207 = vst [vmem:[#allocation343_spill] sm:$0xff] %v6044_v48  ;;  %v6049_v33 = vld [vmem:[%s6877_s2 + $0x3] sm:$0xf]  ;;  %v6054_v32 = vld [vmem:[%s6877_s2 + $0x7] ss:$0 sm:$0xff] }
  0xb7   :  { %7208 = vst [vmem:[#allocation344_spill] sm:$0xff] %v6049_v33  ;;  %7209 = vst [vmem:[#allocation345_spill] sm:$0xff] %v6054_v32  ;;  %v971_v40 = vld [vmem:[%s6876_s1 + $0x80] sm:$0xff]  ;;  %v972_v49 = vld [vmem:[%s6876_s1 + $0x88] sm:$0xff]  ;;  %vm1154_vm0 = vcmask 523264   ;;  %vm1165_vm1 = vcmask 1048064  }
  0xb8   :  { %v955_v48 = vld [vmem:[%s6876_s1] sm:$0xff]  ;;  %v956_v33 = vld [vmem:[%s6876_s1 + $0x8] sm:$0xff]  ;;  %v3702_v41 = vpack.c.bf16 %v972_v49, %v971_v40  ;;  %v973_v32 = vld [vmem:[%s6876_s1 + $0x90] sm:$0xff] }
  0xb9   :  { %v3704_v15 = vpack.c.bf16 %v956_v33, %v955_v48  ;;  %v974_v14 = vld [vmem:[%s6876_s1 + $0x98] sm:$0xff]  ;;  %v957_v50 = vld [vmem:[%s6876_s1 + $0x10] sm:$0xff]  ;;  %v975_v33 = vld [vmem:[%s6876_s1 + $0xa0] sm:$0xff] }
  0xba   :  { %v3706_v51 = vpack.c.bf16 %v974_v14, %v973_v32  ;;  %v958_v31 = vld [vmem:[%s6876_s1 + $0x18] sm:$0xff]  ;;  %v976_v40 = vld [vmem:[%s6876_s1 + $0xa8] sm:$0xff]  ;;  %3703 = vmatprep.subr.bf16.mxu0 %v3702_v41  ;;  %v959_v14 = vld [vmem:[%s6876_s1 + $0x20] sm:$0xff] }
  0xbb   :  { %3705 = vmatpush3.bf16.msra.mxu0 %v3704_v15  ;;  %v3708_v48 = vpack.c.bf16 %v958_v31, %v957_v50  ;;  %v3710_v49 = vpack.c.bf16 %v976_v40, %v975_v33  ;;  %v960_v32 = vld [vmem:[%s6876_s1 + $0x28] sm:$0xff]  ;;  %v977_v30 = vld [vmem:[%s6876_s1 + $0xb0] sm:$0xff]  ;;  %v978_v41 = vld [vmem:[%s6876_s1 + $0xb8] sm:$0xff] }
  0xbc   :  { %3707 = vmatprep.subr.bf16.mxu0 %v3706_v51  ;;  %v3712_v15 = vpack.c.bf16 %v960_v32, %v959_v14  ;;  %v3714_v31 = vpack.c.bf16 %v978_v41, %v977_v30  ;;  %v961_v50 = vld [vmem:[%s6876_s1 + $0x30] sm:$0xff]  ;;  %v962_v51 = vld [vmem:[%s6876_s1 + $0x38] sm:$0xff]  ;;  %v979_v33 = vld [vmem:[%s6876_s1 + $0xc0] sm:$0xff] }
  0xbd   :  { %v980_v40 = vld [vmem:[%s6876_s1 + $0xc8] sm:$0xff]  ;;  %v963_v14 = vld [vmem:[%s6876_s1 + $0x40] sm:$0xff]  ;;  %v981_v41 = vld [vmem:[%s6876_s1 + $0xd0] sm:$0xff] }
  0xbe   :  { %v924_v30 = vld [vmem:[%s6875_s0 + $0x8] sm:$0xff] }
  0xbf   :  { %3709 = vmatpush3.bf16.msra.mxu0 %v3708_v48  ;;  %1057 = vmatprep.mubr.f32.mxu0 %v924_v30  ;;  %v3716_v48 = vpack.c.bf16 %v962_v51, %v961_v50  ;;  %v964_v32 = vld [vmem:[%s6876_s1 + $0x48] sm:$0xff]  ;;  %v982_v30 = vld [vmem:[%s6876_s1 + $0xd8] sm:$0xff]  ;;  %v965_v50 = vld [vmem:[%s6876_s1 + $0x50] sm:$0xff] }
  0xc0   :  { %3711 = vmatprep.subr.bf16.mxu0 %v3710_v49  ;;  %v3718_v49 = vpack.c.bf16 %v980_v40, %v979_v33  ;;  %v966_v51 = vld [vmem:[%s6876_s1 + $0x58] sm:$0xff]  ;;  %v983_v33 = vld [vmem:[%s6876_s1 + $0xe0] sm:$0xff]  ;;  %v984_v40 = vld [vmem:[%s6876_s1 + $0xe8] sm:$0xff] }
  0xc3   :  { %3713 = vmatpush3.bf16.msra.mxu0 %v3712_v15  ;;  %v3720_v15 = vpack.c.bf16 %v964_v32, %v963_v14  ;;  %v967_v14 = vld [vmem:[%s6876_s1 + $0x60] sm:$0xff]  ;;  %v968_v32 = vld [vmem:[%s6876_s1 + $0x68] sm:$0xff] }
  0xc4   :  { %3715 = vmatprep.subr.bf16.mxu0 %v3714_v31  ;;  %v3722_v31 = vpack.c.bf16 %v982_v30, %v981_v41  ;;  %v985_v41 = vld [vmem:[%s6876_s1 + $0xf0] sm:$0xff]  ;;  %v986_v30 = vld [vmem:[%s6876_s1 + $0xf8] sm:$0xff] }
  0xc7   :  { %3717 = vmatpush3.bf16.msra.mxu0 %v3716_v48  ;;  %v3724_v48 = vpack.c.bf16 %v966_v51, %v965_v50  ;;  %v969_v50 = vld [vmem:[%s6876_s1 + $0x70] sm:$0xff]  ;;  %v970_v51 = vld [vmem:[%s6876_s1 + $0x78] sm:$0xff] }
  0xc8   :  { %3719 = vmatprep.subr.bf16.mxu0 %v3718_v49  ;;  %v3726_v49 = vpack.c.bf16 %v984_v40, %v983_v33  ;;  %v3732_v33 = vpack.c.bf16 %v970_v51, %v969_v50  ;;  %v923_v40 = vld [vmem:[%s6875_s0] sm:$0xff]  ;;  %v934_v50 = vld [vmem:[%s6875_s0 + $0x58] sm:$0xff]  ;;  %v933_v51 = vld [vmem:[%s6875_s0 + $0x50] sm:$0xff] }
  0xcb   :  { %3721 = vmatpush3.bf16.msra.mxu0 %v3720_v15  ;;  %v3728_v15 = vpack.c.bf16 %v968_v32, %v967_v14  ;;  %v928_v14 = vld [vmem:[%s6875_s0 + $0x28] sm:$0xff]  ;;  %v927_v32 = vld [vmem:[%s6875_s0 + $0x20] sm:$0xff] }
  0xcc   :  { %3723 = vmatprep.subr.bf16.mxu0 %v3722_v31  ;;  %v3730_v31 = vpack.c.bf16 %v986_v30, %v985_v41  ;;  %v930_v41 = vld [vmem:[%s6875_s0 + $0x38] sm:$0xff]  ;;  %v929_v30 = vld [vmem:[%s6875_s0 + $0x30] sm:$0xff] }
  0xcf   :  { %3725 = vmatpush3.bf16.msra.mxu0 %v3724_v48  ;;  %v926_v48 = vld [vmem:[%s6875_s0 + $0x18] sm:$0xff] }
  0xd0   :  { %3727 = vmatprep.subr.bf16.mxu0 %v3726_v49  ;;  %v925_v49 = vld [vmem:[%s6875_s0 + $0x10] sm:$0xff] }
  0xd3   :  { %3729 = vmatpush3.bf16.msra.mxu0 %v3728_v15  ;;  %v932_v15 = vld [vmem:[%s6875_s0 + $0x48] sm:$0xff] }
  0xd4   :  { %3731 = vmatprep.subr.bf16.mxu0 %v3730_v31  ;;  %v931_v31 = vld [vmem:[%s6875_s0 + $0x40] sm:$0xff] }
  0xd7   :  { %3733 = vmatpush3.bf16.msra.mxu0 %v3732_v33  ;;  %v936_v33 = vld [vmem:[%s6875_s0 + $0x68] sm:$0xff] }
  0xda   :  { %1058 = vmatmul.mubr.f32.vlgmr.msra.gmra.mrb[0].mxu0 %v923_v40  ;;  %v935_v40 = vld [vmem:[%s6875_s0 + $0x60] sm:$0xff] }
  0xdb   :  { %1062 = vmatprep.mubr.f32.mxu0 %v926_v48  ;;  %v938_v48 = vld [vmem:[%s6875_s0 + $0x78] sm:$0xff] }
  0xde   :  { %1063 = vmatmul.mubr.f32.gmra.mrb[2].mxu0 %v925_v49  ;;  %v937_v49 = vld [vmem:[%s6875_s0 + $0x70] sm:$0xff] }
  0xdf   :  { %1067 = vmatprep.mubr.f32.mxu0 %v928_v14  ;;  %v940_v14 = vld [vmem:[%s6875_s0 + $0x88] sm:$0xff] }
  0xe2   :  { %1068 = vmatmul.mubr.f32.gmra.mrb[4].mxu0 %v927_v32  ;;  %v939_v32 = vld [vmem:[%s6875_s0 + $0x80] sm:$0xff] }
  0xe3   :  { %1072 = vmatprep.mubr.f32.mxu0 %v930_v41  ;;  %v942_v41 = vld [vmem:[%s6875_s0 + $0x98] sm:$0xff] }
  0xe6   :  { %1073 = vmatmul.mubr.f32.gmra.mrb[6].mxu0 %v929_v30  ;;  %v941_v30 = vld [vmem:[%s6875_s0 + $0x90] sm:$0xff] }
  0xe7   :  { %1077 = vmatprep.mubr.f32.mxu0 %v932_v15  ;;  %v944_v15 = vld [vmem:[%s6875_s0 + $0xa8] sm:$0xff] }
  0xea   :  { %1078 = vmatmul.mubr.f32.gmra.mrb[8].mxu0 %v931_v31  ;;  %v943_v31 = vld [vmem:[%s6875_s0 + $0xa0] sm:$0xff] }
  0xeb   :  { %1082 = vmatprep.mubr.f32.mxu0 %v934_v50  ;;  %v946_v50 = vld [vmem:[%s6875_s0 + $0xb8] sm:$0xff] }
  0xee   :  { %1083 = vmatmul.mubr.f32.gmra.mrb[10].mxu0 %v933_v51  ;;  %v945_v51 = vld [vmem:[%s6875_s0 + $0xb0] sm:$0xff] }
  0xef   :  { %1087 = vmatprep.mubr.f32.mxu0 %v936_v33  ;;  %v948_v33 = vld [vmem:[%s6875_s0 + $0xc8] sm:$0xff] }
  0xf2   :  { %1088 = vmatmul.mubr.f32.gmra.mrb[12].mxu0 %v935_v40  ;;  %v947_v40 = vld [vmem:[%s6875_s0 + $0xc0] sm:$0xff] }
  0xf3   :  { %1092 = vmatprep.mubr.f32.mxu0 %v938_v48  ;;  %v950_v48 = vld [vmem:[%s6875_s0 + $0xd8] sm:$0xff] }
  0xf6   :  { %1093 = vmatmul.mubr.f32.gmra.mrb[14].mxu0 %v937_v49  ;;  %v949_v49 = vld [vmem:[%s6875_s0 + $0xd0] sm:$0xff] }
  0xf7   :  { %1097 = vmatprep.mubr.f32.mxu0 %v940_v14  ;;  %v952_v14 = vld [vmem:[%s6875_s0 + $0xe8] sm:$0xff] }
  0xfa   :  { %1098 = vmatmul.mubr.f32.gmra.mrb[16].mxu0 %v939_v32  ;;  %v951_v32 = vld [vmem:[%s6875_s0 + $0xe0] sm:$0xff] }
  0xfb   :  { %1102 = vmatprep.mubr.f32.mxu0 %v942_v41  ;;  %v954_v41 = vld [vmem:[%s6875_s0 + $0xf8] sm:$0xff] }
  0xfe   :  { %1103 = vmatmul.mubr.f32.gmra.mrb[18].mxu0 %v941_v30  ;;  %v953_v30 = vld [vmem:[%s6875_s0 + $0xf0] sm:$0xff]  ;;  %s4150_s0 = smov 64  }
  0xff   :  { %1107 = vmatprep.mubr.f32.mxu0 %v944_v15 }
 0x102   :  { %1108 = vmatmul.mubr.f32.gmra.mrb[20].mxu0 %v943_v31  ;;  %v6251_v31 = vld [vmem:[%s6877_s2] ss:$0 sm:$0xff] }
 0x103   :  { %1112 = vmatprep.mubr.f32.mxu0 %v946_v50 }
 0x106   :  { %1113 = vmatmul.mubr.f32.gmra.mrb[22].mxu0 %v945_v51 }
 0x107   :  { %1117 = vmatprep.mubr.f32.mxu0 %v948_v33 }
 0x10a   :  { %1118 = vmatmul.mubr.f32.gmra.mrb[24].mxu0 %v947_v40 }
 0x10b   :  { %1122 = vmatprep.mubr.f32.mxu0 %v950_v48 }
 0x10e   :  { %1123 = vmatmul.mubr.f32.gmra.mrb[26].mxu0 %v949_v49 }
 0x10f   :  { %1127 = vmatprep.mubr.f32.mxu0 %v952_v14 }
 0x112   :  { %1128 = vmatmul.mubr.f32.gmra.mrb[28].mxu0 %v951_v32 }
 0x113   :  { %1132 = vmatprep.mubr.f32.mxu0 %v954_v41 }
 0x116   :  { %1133 = vmatmul.mubr.f32.gmra.mrb[30].mxu0 %v953_v30 }
 0x1ad   :  { %v3228_v15 = vpop.f32.mrb[0].mxu0 }
 0x1ae   :  { %v3229_v50 = vpop.f32.mrb[1].mxu0 }
 0x1af   :  { %v3230_v51 = vadd.f32 %v3229_v50, %v3228_v15 }
 0x1b1   :  { %v1060_v33 = vadd.f32 %v3230_v51, %v6251_v31  ;;  %v3231_v40 = vpop.f32.mrb[2].mxu0 }
 0x1b2   :  { %v3232_v48 = vpop.f32.mrb[3].mxu0 }
 0x1b3   :  { %v1138_v49 = vmax.f32 %v1060_v33, 0.0  ;;  %v3233_v14 = vadd.f32 %v3232_v48, %v3231_v40 }
 0x1b5   :  { %v1065_v32 = vadd.f32 %v3233_v14, %v6251_v31  ;;  %v3234_v41 = vpop.f32.mrb[4].mxu0  ;;  %1155 = vst.msk [vmem:[#allocation2] sm:$0xff] %vm1154_vm0, %v1138_v49 }
 0x1b6   :  { %v3235_v30 = vpop.f32.mrb[5].mxu0 }
 0x1b7   :  { %v1139_v58 = vmax.f32 %v1065_v32, 0.0  ;;  %v3236_v59 = vadd.f32 %v3235_v30, %v3234_v41 }
 0x1b9   :  { %v3237_v13 = vpop.f32.mrb[6].mxu0  ;;  %v1070_v12 = vadd.f32 %v3236_v59, %v6251_v31  ;;  %1156 = vst.msk [vmem:[#allocation2 + $0x20] sm:$0xff] %vm1154_vm0, %v1139_v58 }
 0x1ba   :  { %v3238_v15 = vpop.f32.mrb[7].mxu0 }
 0x1bb   :  { %v3239_v50 = vadd.f32 %v3238_v15, %v3237_v13  ;;  %v1140_v51 = vmax.f32 %v1070_v12, 0.0 }
 0x1bd   :  { %v1075_v57 = vadd.f32 %v3239_v50, %v6251_v31  ;;  %v3240_v33 = vpop.f32.mrb[8].mxu0  ;;  %1159 = vrot.lane.b32.xlu0 %v1140_v51, %s4150_s0 }
 0x1be   :  { %v3241_v40 = vpop.f32.mrb[9].mxu0 }
 0x1bf   :  { %v1141_v48 = vmax.f32 %v1075_v57, 0.0  ;;  %v3242_v49 = vadd.f32 %v3241_v40, %v3240_v33 }
 0x1c1   :  { %v1080_v14 = vadd.f32 %v3242_v49, %v6251_v31  ;;  %v3243_v32 = vpop.f32.mrb[10].mxu0  ;;  %1161 = vrot.lane.b32.xlu0 %v1141_v48, %s4150_s0 }
 0x1c2   :  { %v3244_v59 = vpop.f32.mrb[11].mxu0 }
 0x1c3   :  { %v1142_v41 = vmax.f32 %v1080_v14, 0.0  ;;  %v3245_v58 = vadd.f32 %v3244_v59, %v3243_v32 }
 0x1c5   :  { %v1085_v13 = vadd.f32 %v3245_v58, %v6251_v31  ;;  %v3246_v12 = vpop.f32.mrb[12].mxu0  ;;  %1168 = vst.msk [vmem:[#allocation2 + $0x8] sm:$0xff] %vm1154_vm0, %v1142_v41 }
 0x1c6   :  { %v3247_v30 = vpop.f32.mrb[13].mxu0 }
 0x1c7   :  { %v1143_v15 = vmax.f32 %v1085_v13, 0.0  ;;  %v3248_v50 = vadd.f32 %v3247_v30, %v3246_v12 }
 0x1c9   :  { %v3249_v51 = vpop.f32.mrb[14].mxu0  ;;  %v1090_v57 = vadd.f32 %v3248_v50, %v6251_v31  ;;  %1169 = vst.msk [vmem:[#allocation2 + $0x28] sm:$0xff] %vm1154_vm0, %v1143_v15 }
 0x1ca   :  { %v3250_v33 = vpop.f32.mrb[15].mxu0 }
 0x1cb   :  { %v3251_v40 = vadd.f32 %v3250_v33, %v3249_v51  ;;  %v1144_v49 = vmax.f32 %v1090_v57, 0.0 }
 0x1cd   :  { %v1095_v48 = vadd.f32 %v3251_v40, %v6251_v31  ;;  %v3252_v14 = vpop.f32.mrb[16].mxu0  ;;  %1172 = vrot.lane.b32.xlu1 %v1144_v49, %s4150_s0 }
 0x1ce   :  { %v3253_v32 = vpop.f32.mrb[17].mxu0 }
 0x1cf   :  { %v1145_v59 = vmax.f32 %v1095_v48, 0.0  ;;  %v3254_v58 = vadd.f32 %v3253_v32, %v3252_v14 }
 0x1d1   :  { %v1100_v41 = vadd.f32 %v3254_v58, %v6251_v31  ;;  %v3255_v13 = vpop.f32.mrb[18].mxu0  ;;  %1174 = vrot.lane.b32.xlu1 %v1145_v59, %s4150_s0 }
 0x1d2   :  { %v3256_v12 = vpop.f32.mrb[19].mxu0 }
 0x1d3   :  { %v1146_v30 = vmax.f32 %v1100_v41, 0.0  ;;  %v3257_v50 = vadd.f32 %v3256_v12, %v3255_v13 }
 0x1d5   :  { %v1105_v15 = vadd.f32 %v3257_v50, %v6251_v31  ;;  %v3258_v51 = vpop.f32.mrb[20].mxu0  ;;  %1180 = vst.msk [vmem:[#allocation2 + $0x10] sm:$0xff] %vm1154_vm0, %v1146_v30 }
 0x1d6   :  { %v3259_v57 = vpop.f32.mrb[21].mxu0 }
 0x1d7   :  { %v1147_v33 = vmax.f32 %v1105_v15, 0.0  ;;  %v3260_v40 = vadd.f32 %v3259_v57, %v3258_v51 }
 0x1d9   :  { %v1110_v49 = vadd.f32 %v3260_v40, %v6251_v31  ;;  %v3261_v48 = vpop.f32.mrb[22].mxu0  ;;  %1181 = vst.msk [vmem:[#allocation2 + $0x30] sm:$0xff] %vm1154_vm0, %v1147_v33 }
 0x1da   :  { %v3262_v14 = vpop.f32.mrb[23].mxu0 }
 0x1db   :  { %v1148_v32 = vmax.f32 %v1110_v49, 0.0  ;;  %v3263_v58 = vadd.f32 %v3262_v14, %v3261_v48 }
 0x1dd   :  { %v1115_v59 = vadd.f32 %v3263_v58, %v6251_v31  ;;  %v3264_v41 = vpop.f32.mrb[24].mxu0  ;;  %1184 = vrot.lane.b32.xlu0 %v1148_v32, %s4150_s0 }
 0x1de   :  { %v3265_v13 = vpop.f32.mrb[25].mxu0 }
 0x1df   :  { %v1149_v12 = vmax.f32 %v1115_v59, 0.0  ;;  %v3266_v50 = vadd.f32 %v3265_v13, %v3264_v41 }
 0x1e1   :  { %v1120_v30 = vadd.f32 %v3266_v50, %v6251_v31  ;;  %v3267_v15 = vpop.f32.mrb[26].mxu0  ;;  %1186 = vrot.lane.b32.xlu1 %v1149_v12, %s4150_s0 }
 0x1e2   :  { %v3268_v51 = vpop.f32.mrb[27].mxu0 }
 0x1e3   :  { %v1150_v57 = vmax.f32 %v1120_v30, 0.0  ;;  %v3269_v40 = vadd.f32 %v3268_v51, %v3267_v15 }
 0x1e5   :  { %v1125_v33 = vadd.f32 %v3269_v40, %v6251_v31  ;;  %v3270_v49 = vpop.f32.mrb[28].mxu0  ;;  %1192 = vst.msk [vmem:[#allocation2 + $0x18] sm:$0xff] %vm1154_vm0, %v1150_v57  ;;  %v1205_v40 = vlaneseq }
 0x1e6   :  { %v3271_v48 = vpop.f32.mrb[29].mxu0 }
 0x1e7   :  { %v1151_v14 = vmax.f32 %v1125_v33, 0.0  ;;  %v3272_v58 = vadd.f32 %v3271_v48, %v3270_v49  ;;  %vm6290_vm2 = vcmp.lt.s32.totalorder %v1205_v40, 256 }
 0x1e9   :  { %v1130_v32 = vadd.f32 %v3272_v58, %v6251_v31  ;;  %v3273_v59 = vpop.f32.mrb[30].mxu0  ;;  %1193 = vst.msk [vmem:[#allocation2 + $0x38] sm:$0xff] %vm1154_vm0, %v1151_v14 }
 0x1ea   :  { %v3274_v41 = vpop.f32.mrb[31].mxu0 }
 0x1eb   :  { %v1152_v13 = vmax.f32 %v1130_v32, 0.0  ;;  %v3275_v50 = vadd.f32 %v3274_v41, %v3273_v59 }
 0x1ed   :  { %v1135_v12 = vadd.f32 %v3275_v50, %v6251_v31  ;;  %1196 = vrot.lane.b32.xlu0 %v1152_v13, %s4150_s0 }
 0x1ef   :  { %v1153_v30 = vmax.f32 %v1135_v12, 0.0 }
 0x1f1   :  { %1198 = vrot.lane.b32.xlu1 %v1153_v30, %s4150_s0 }
 0x22f   :  { %v1160_v15 = vpop.permute.xlu0 %1159 }
 0x230   :  { %1166 = vst.msk [vmem:[#allocation2] sm:$0xff] %vm1165_vm1, %v1160_v15 }
 0x233   :  { %v1162_v51 = vpop.permute.xlu0 %1161 }
 0x234   :  { %1167 = vst.msk [vmem:[#allocation2 + $0x20] sm:$0xff] %vm1165_vm1, %v1162_v51 }
 0x23f   :  { %v1173_v57 = vpop.permute.xlu1 %1172 }
 0x240   :  { %1178 = vst.msk [vmem:[#allocation2 + $0x8] sm:$0xff] %vm1165_vm1, %v1173_v57 }
 0x243   :  { %v1175_v33 = vpop.permute.xlu1 %1174 }
 0x244   :  { %1179 = vst.msk [vmem:[#allocation2 + $0x28] sm:$0xff] %vm1165_vm1, %v1175_v33 }
 0x247   :  { %v1204_v49 = vld [vmem:[#allocation2] ss:$8 sm:$0x3]  ;;  %v1212_v48 = vld [vmem:[#allocation2 + $0x1] ss:$8 sm:$0x3] }
 0x248   :  { %1209 = vst.msk [vmem:[#allocation3] ss:$8 sm:$0x3] %vm6290_vm2, %v1204_v49  ;;  %1214 = vst.msk [vmem:[#allocation3 + $0x10] ss:$8 sm:$0x3] %vm6290_vm2, %v1212_v48 }
 0x249   :  { %v1217_v14 = vld [vmem:[#allocation2 + $0x2] ss:$8 sm:$0x3]  ;;  %v1222_v58 = vld [vmem:[#allocation2 + $0x3] ss:$8 sm:$0x3] }
 0x24a   :  { %1219 = vst.msk [vmem:[#allocation3 + $0x20] ss:$8 sm:$0x3] %vm6290_vm2, %v1217_v14  ;;  %1224 = vst.msk [vmem:[#allocation3 + $0x30] ss:$8 sm:$0x3] %vm6290_vm2, %v1222_v58 }
 0x24b   :  { %v1266_v32 = vld [vmem:[#allocation2 + $0x2] ss:$8 sm:$0x3]  ;;  %v1270_v59 = vld [vmem:[#allocation2 + $0x3] ss:$8 sm:$0x3] }
 0x24c   :  { %1268 = vst.msk [vmem:[#allocation3 + $0x3] ss:$8 sm:$0x3] %vm6290_vm2, %v1266_v32  ;;  %1272 = vst.msk [vmem:[#allocation3 + $0x13] ss:$8 sm:$0x3] %vm6290_vm2, %v1270_v59 }
 0x24d   :  { %v1275_v41 = vld [vmem:[#allocation2 + $0x4] ss:$8 sm:$0x3]  ;;  %v1280_v13 = vld [vmem:[#allocation2 + $0x5] ss:$8 sm:$0x3] }
 0x24e   :  { %1277 = vst.msk [vmem:[#allocation3 + $0x23] ss:$8 sm:$0x3] %vm6290_vm2, %v1275_v41  ;;  %1282 = vst.msk [vmem:[#allocation3 + $0x33] ss:$8 sm:$0x3] %vm6290_vm2, %v1280_v13 }
 0x24f   :  { %v1320_v50 = vld [vmem:[#allocation2 + $0x4] ss:$8 sm:$0x3]  ;;  %v1324_v12 = vld [vmem:[#allocation2 + $0x5] ss:$8 sm:$0x3]  ;;  %v1185_v58 = vpop.permute.xlu0 %1184 }
 0x250   :  { %1322 = vst.msk [vmem:[#allocation3 + $0x6] ss:$8 sm:$0x3] %vm6290_vm2, %v1320_v50  ;;  %1326 = vst.msk [vmem:[#allocation3 + $0x16] ss:$8 sm:$0x3] %vm6290_vm2, %v1324_v12 }
 0x251   :  { %v1329_v30 = vld [vmem:[#allocation2 + $0x6] ss:$8 sm:$0x3]  ;;  %v1334_v15 = vld [vmem:[#allocation2 + $0x7] ss:$8 sm:$0x3] }
 0x252   :  { %1331 = vst.msk [vmem:[#allocation3 + $0x26] ss:$8 sm:$0x3] %vm6290_vm2, %v1329_v30  ;;  %1336 = vst.msk [vmem:[#allocation3 + $0x36] ss:$8 sm:$0x3] %vm6290_vm2, %v1334_v15 }
 0x253   :  { %v1375_v51 = vld [vmem:[#allocation2 + $0x20] ss:$8 sm:$0x3]  ;;  %v1380_v57 = vld [vmem:[#allocation2 + $0x21] ss:$8 sm:$0x3]  ;;  %v1187_v30 = vpop.permute.xlu1 %1186 }
 0x254   :  { %1377 = vst.msk [vmem:[#allocation3 + $0x41] ss:$8 sm:$0x3] %vm6290_vm2, %v1375_v51  ;;  %1382 = vst.msk [vmem:[#allocation3 + $0x51] ss:$8 sm:$0x3] %vm6290_vm2, %v1380_v57 }
 0x255   :  { %v1385_v33 = vld [vmem:[#allocation2 + $0x22] ss:$8 sm:$0x3]  ;;  %v1390_v49 = vld [vmem:[#allocation2 + $0x23] ss:$8 sm:$0x3] }
 0x256   :  { %1387 = vst.msk [vmem:[#allocation3 + $0x61] ss:$8 sm:$0x3] %vm6290_vm2, %v1385_v33  ;;  %1392 = vst.msk [vmem:[#allocation3 + $0x71] ss:$8 sm:$0x3] %vm6290_vm2, %v1390_v49 }
 0x257   :  { %v1434_v48 = vld [vmem:[#allocation2 + $0x22] ss:$8 sm:$0x3]  ;;  %v1438_v14 = vld [vmem:[#allocation2 + $0x23] ss:$8 sm:$0x3] }
 0x258   :  { %1436 = vst.msk [vmem:[#allocation3 + $0x44] ss:$8 sm:$0x3] %vm6290_vm2, %v1434_v48  ;;  %1440 = vst.msk [vmem:[#allocation3 + $0x54] ss:$8 sm:$0x3] %vm6290_vm2, %v1438_v14 }
 0x259   :  { %v1443_v32 = vld [vmem:[#allocation2 + $0x24] ss:$8 sm:$0x3]  ;;  %v1448_v59 = vld [vmem:[#allocation2 + $0x25] ss:$8 sm:$0x3] }
 0x25a   :  { %1190 = vst.msk [vmem:[#allocation2 + $0x10] sm:$0xff] %vm1165_vm1, %v1185_v58  ;;  %v1488_v41 = vld [vmem:[#allocation2 + $0x24] ss:$8 sm:$0x3]  ;;  %1191 = vst.msk [vmem:[#allocation2 + $0x30] sm:$0xff] %vm1165_vm1, %v1187_v30 }
 0x25b   :  { %1445 = vst.msk [vmem:[#allocation3 + $0x64] ss:$8 sm:$0x3] %vm6290_vm2, %v1443_v32  ;;  %1450 = vst.msk [vmem:[#allocation3 + $0x74] ss:$8 sm:$0x3] %vm6290_vm2, %v1448_v59 }
 0x25c   :  { %v1492_v13 = vld [vmem:[#allocation2 + $0x25] ss:$8 sm:$0x3]  ;;  %1490 = vst.msk [vmem:[#allocation3 + $0x47] ss:$8 sm:$0x3] %vm6290_vm2, %v1488_v41 }
 0x25d   :  { %1494 = vst.msk [vmem:[#allocation3 + $0x57] ss:$8 sm:$0x3] %vm6290_vm2, %v1492_v13  ;;  %v1497_v50 = vld [vmem:[#allocation2 + $0x26] ss:$8 sm:$0x3] }
 0x25e   :  { %v1502_v12 = vld [vmem:[#allocation2 + $0x27] ss:$8 sm:$0x3]  ;;  %1499 = vst.msk [vmem:[#allocation3 + $0x67] ss:$8 sm:$0x3] %vm6290_vm2, %v1497_v50 }
 0x25f   :  { %1504 = vst.msk [vmem:[#allocation3 + $0x77] ss:$8 sm:$0x3] %vm6290_vm2, %v1502_v12 }
 0x261   :  { %v1227_v15 = vld [vmem:[#allocation2 + $0x8] ss:$8 sm:$0x3]  ;;  %v1232_v51 = vld [vmem:[#allocation2 + $0x9] ss:$8 sm:$0x3] }
 0x262   :  { %1229 = vst.msk [vmem:[#allocation3 + $0x1] ss:$8 sm:$0x3] %vm6290_vm2, %v1227_v15  ;;  %1234 = vst.msk [vmem:[#allocation3 + $0x11] ss:$8 sm:$0x3] %vm6290_vm2, %v1232_v51 }
 0x263   :  { %v1237_v57 = vld [vmem:[#allocation2 + $0xa] ss:$8 sm:$0x3]  ;;  %v1242_v33 = vld [vmem:[#allocation2 + $0xb] ss:$8 sm:$0x3] }
 0x264   :  { %1239 = vst.msk [vmem:[#allocation3 + $0x21] ss:$8 sm:$0x3] %vm6290_vm2, %v1237_v57  ;;  %1244 = vst.msk [vmem:[#allocation3 + $0x31] ss:$8 sm:$0x3] %vm6290_vm2, %v1242_v33  ;;  %v1197_v33 = vpop.permute.xlu0 %1196 }
 0x265   :  { %v1284_v49 = vld [vmem:[#allocation2 + $0xa] ss:$8 sm:$0x3]  ;;  %v1288_v48 = vld [vmem:[#allocation2 + $0xb] ss:$8 sm:$0x3] }
 0x266   :  { %1286 = vst.msk [vmem:[#allocation3 + $0x4] ss:$8 sm:$0x3] %vm6290_vm2, %v1284_v49  ;;  %1290 = vst.msk [vmem:[#allocation3 + $0x14] ss:$8 sm:$0x3] %vm6290_vm2, %v1288_v48 }
 0x267   :  { %v1293_v14 = vld [vmem:[#allocation2 + $0xc] ss:$8 sm:$0x3]  ;;  %v1298_v58 = vld [vmem:[#allocation2 + $0xd] ss:$8 sm:$0x3] }
 0x268   :  { %1295 = vst.msk [vmem:[#allocation3 + $0x24] ss:$8 sm:$0x3] %vm6290_vm2, %v1293_v14  ;;  %1300 = vst.msk [vmem:[#allocation3 + $0x34] ss:$8 sm:$0x3] %vm6290_vm2, %v1298_v58 }
 0x269   :  { %v1338_v32 = vld [vmem:[#allocation2 + $0xc] ss:$8 sm:$0x3]  ;;  %v1342_v59 = vld [vmem:[#allocation2 + $0xd] ss:$8 sm:$0x3] }
 0x26a   :  { %1340 = vst.msk [vmem:[#allocation3 + $0x7] ss:$8 sm:$0x3] %vm6290_vm2, %v1338_v32  ;;  %1344 = vst.msk [vmem:[#allocation3 + $0x17] ss:$8 sm:$0x3] %vm6290_vm2, %v1342_v59 }
 0x26b   :  { %v1347_v41 = vld [vmem:[#allocation2 + $0xe] ss:$8 sm:$0x3]  ;;  %v1352_v13 = vld [vmem:[#allocation2 + $0xf] ss:$8 sm:$0x3] }
 0x26c   :  { %1349 = vst.msk [vmem:[#allocation3 + $0x27] ss:$8 sm:$0x3] %vm6290_vm2, %v1347_v41  ;;  %1354 = vst.msk [vmem:[#allocation3 + $0x37] ss:$8 sm:$0x3] %vm6290_vm2, %v1352_v13  ;;  %v1199_v41 = vpop.permute.xlu1 %1198 }
 0x26d   :  { %v1395_v50 = vld [vmem:[#allocation2 + $0x28] ss:$8 sm:$0x3]  ;;  %v1400_v12 = vld [vmem:[#allocation2 + $0x29] ss:$8 sm:$0x3] }
 0x26e   :  { %1397 = vst.msk [vmem:[#allocation3 + $0x42] ss:$8 sm:$0x3] %vm6290_vm2, %v1395_v50  ;;  %1402 = vst.msk [vmem:[#allocation3 + $0x52] ss:$8 sm:$0x3] %vm6290_vm2, %v1400_v12 }
 0x26f   :  { %v1405_v30 = vld [vmem:[#allocation2 + $0x2a] ss:$8 sm:$0x3]  ;;  %v1410_v15 = vld [vmem:[#allocation2 + $0x2b] ss:$8 sm:$0x3] }
 0x270   :  { %1407 = vst.msk [vmem:[#allocation3 + $0x62] ss:$8 sm:$0x3] %vm6290_vm2, %v1405_v30  ;;  %1412 = vst.msk [vmem:[#allocation3 + $0x72] ss:$8 sm:$0x3] %vm6290_vm2, %v1410_v15 }
 0x271   :  { %v1452_v51 = vld [vmem:[#allocation2 + $0x2a] ss:$8 sm:$0x3]  ;;  %v1456_v57 = vld [vmem:[#allocation2 + $0x2b] ss:$8 sm:$0x3] }
 0x272   :  { %1454 = vst.msk [vmem:[#allocation3 + $0x45] ss:$8 sm:$0x3] %vm6290_vm2, %v1452_v51  ;;  %1458 = vst.msk [vmem:[#allocation3 + $0x55] ss:$8 sm:$0x3] %vm6290_vm2, %v1456_v57 }
 0x273   :  { %v1461_v49 = vld [vmem:[#allocation2 + $0x2c] ss:$8 sm:$0x3]  ;;  %v1466_v48 = vld [vmem:[#allocation2 + $0x2d] ss:$8 sm:$0x3] }
 0x274   :  { %1202 = vst.msk [vmem:[#allocation2 + $0x18] sm:$0xff] %vm1165_vm1, %v1197_v33  ;;  %v1506_v14 = vld [vmem:[#allocation2 + $0x2c] ss:$8 sm:$0x3]  ;;  %1203 = vst.msk [vmem:[#allocation2 + $0x38] sm:$0xff] %vm1165_vm1, %v1199_v41 }
 0x275   :  { %1463 = vst.msk [vmem:[#allocation3 + $0x65] ss:$8 sm:$0x3] %vm6290_vm2, %v1461_v49  ;;  %1468 = vst.msk [vmem:[#allocation3 + $0x75] ss:$8 sm:$0x3] %vm6290_vm2, %v1466_v48 }
 0x276   :  { %v1510_v58 = vld [vmem:[#allocation2 + $0x2d] ss:$8 sm:$0x3]  ;;  %1508 = vst.msk [vmem:[#allocation3 + $0x80] ss:$8 sm:$0x3] %vm6290_vm2, %v1506_v14 }
 0x277   :  { %1512 = vst.msk [vmem:[#allocation3 + $0x90] ss:$8 sm:$0x3] %vm6290_vm2, %v1510_v58  ;;  %v1515_v32 = vld [vmem:[#allocation2 + $0x2e] ss:$8 sm:$0x3] }
 0x278   :  { %v1520_v59 = vld [vmem:[#allocation2 + $0x2f] ss:$8 sm:$0x3]  ;;  %1517 = vst.msk [vmem:[#allocation3 + $0xa0] ss:$8 sm:$0x3] %vm6290_vm2, %v1515_v32 }
 0x279   :  { %1522 = vst.msk [vmem:[#allocation3 + $0xb0] ss:$8 sm:$0x3] %vm6290_vm2, %v1520_v59 }
 0x27b   :  { %v1247_v13 = vld [vmem:[#allocation2 + $0x10] ss:$8 sm:$0x3]  ;;  %v1252_v50 = vld [vmem:[#allocation2 + $0x11] ss:$8 sm:$0x3] }
 0x27c   :  { %1249 = vst.msk [vmem:[#allocation3 + $0x2] ss:$8 sm:$0x3] %vm6290_vm2, %v1247_v13  ;;  %1254 = vst.msk [vmem:[#allocation3 + $0x12] ss:$8 sm:$0x3] %vm6290_vm2, %v1252_v50 }
 0x27d   :  { %v1257_v12 = vld [vmem:[#allocation2 + $0x12] ss:$8 sm:$0x3]  ;;  %v1262_v30 = vld [vmem:[#allocation2 + $0x13] ss:$8 sm:$0x3] }
 0x27e   :  { %1259 = vst.msk [vmem:[#allocation3 + $0x22] ss:$8 sm:$0x3] %vm6290_vm2, %v1257_v12  ;;  %1264 = vst.msk [vmem:[#allocation3 + $0x32] ss:$8 sm:$0x3] %vm6290_vm2, %v1262_v30 }
 0x27f   :  { %v1302_v15 = vld [vmem:[#allocation2 + $0x12] ss:$8 sm:$0x3]  ;;  %v1306_v51 = vld [vmem:[#allocation2 + $0x13] ss:$8 sm:$0x3] }
 0x280   :  { %1304 = vst.msk [vmem:[#allocation3 + $0x5] ss:$8 sm:$0x3] %vm6290_vm2, %v1302_v15  ;;  %1308 = vst.msk [vmem:[#allocation3 + $0x15] ss:$8 sm:$0x3] %vm6290_vm2, %v1306_v51 }
 0x281   :  { %v1311_v57 = vld [vmem:[#allocation2 + $0x14] ss:$8 sm:$0x3]  ;;  %v1316_v33 = vld [vmem:[#allocation2 + $0x15] ss:$8 sm:$0x3] }
 0x282   :  { %1313 = vst.msk [vmem:[#allocation3 + $0x25] ss:$8 sm:$0x3] %vm6290_vm2, %v1311_v57  ;;  %1318 = vst.msk [vmem:[#allocation3 + $0x35] ss:$8 sm:$0x3] %vm6290_vm2, %v1316_v33 }
 0x283   :  { %v1356_v49 = vld [vmem:[#allocation2 + $0x14] ss:$8 sm:$0x3]  ;;  %v1360_v48 = vld [vmem:[#allocation2 + $0x15] ss:$8 sm:$0x3] }
 0x284   :  { %1358 = vst.msk [vmem:[#allocation3 + $0x40] ss:$8 sm:$0x3] %vm6290_vm2, %v1356_v49  ;;  %1362 = vst.msk [vmem:[#allocation3 + $0x50] ss:$8 sm:$0x3] %vm6290_vm2, %v1360_v48  ;;  %v3734_v48 = vpack.c.bf16 %v4284_v17, %v4279_v16 }
 0x285   :  { %v1365_v14 = vld [vmem:[#allocation2 + $0x16] ss:$8 sm:$0x3]  ;;  %v1370_v58 = vld [vmem:[#allocation2 + $0x17] ss:$8 sm:$0x3] }
 0x286   :  { %1367 = vst.msk [vmem:[#allocation3 + $0x60] ss:$8 sm:$0x3] %vm6290_vm2, %v1365_v14  ;;  %1372 = vst.msk [vmem:[#allocation3 + $0x70] ss:$8 sm:$0x3] %vm6290_vm2, %v1370_v58  ;;  %v3736_v14 = vpack.c.bf16 %v4204_v1, %v4199_v0  ;;  %v3738_v58 = vpack.c.bf16 %v4294_v19, %v4289_v18 }
 0x287   :  { %v1415_v32 = vld [vmem:[#allocation2 + $0x30] ss:$8 sm:$0x3]  ;;  %v1420_v59 = vld [vmem:[#allocation2 + $0x31] ss:$8 sm:$0x3] }
 0x288   :  { %1417 = vst.msk [vmem:[#allocation3 + $0x43] ss:$8 sm:$0x3] %vm6290_vm2, %v1415_v32  ;;  %1422 = vst.msk [vmem:[#allocation3 + $0x53] ss:$8 sm:$0x3] %vm6290_vm2, %v1420_v59 }
 0x289   :  { %v1425_v41 = vld [vmem:[#allocation2 + $0x32] ss:$8 sm:$0x3]  ;;  %v1430_v13 = vld [vmem:[#allocation2 + $0x33] ss:$8 sm:$0x3] }
 0x28a   :  { %1427 = vst.msk [vmem:[#allocation3 + $0x63] ss:$8 sm:$0x3] %vm6290_vm2, %v1425_v41  ;;  %1432 = vst.msk [vmem:[#allocation3 + $0x73] ss:$8 sm:$0x3] %vm6290_vm2, %v1430_v13 }
 0x28b   :  { %v1470_v50 = vld [vmem:[#allocation2 + $0x32] ss:$8 sm:$0x3]  ;;  %v1474_v12 = vld [vmem:[#allocation2 + $0x33] ss:$8 sm:$0x3] }
 0x28c   :  { %1472 = vst.msk [vmem:[#allocation3 + $0x46] ss:$8 sm:$0x3] %vm6290_vm2, %v1470_v50  ;;  %1476 = vst.msk [vmem:[#allocation3 + $0x56] ss:$8 sm:$0x3] %vm6290_vm2, %v1474_v12 }
 0x28d   :  { %v1479_v30 = vld [vmem:[#allocation2 + $0x34] ss:$8 sm:$0x3]  ;;  %v1484_v15 = vld [vmem:[#allocation2 + $0x35] ss:$8 sm:$0x3] }
 0x28e   :  { %1481 = vst.msk [vmem:[#allocation3 + $0x66] ss:$8 sm:$0x3] %vm6290_vm2, %v1479_v30  ;;  %1486 = vst.msk [vmem:[#allocation3 + $0x76] ss:$8 sm:$0x3] %vm6290_vm2, %v1484_v15 }
 0x28f   :  { %v1524_v51 = vld [vmem:[#allocation2 + $0x34] ss:$8 sm:$0x3]  ;;  %v1528_v57 = vld [vmem:[#allocation2 + $0x35] ss:$8 sm:$0x3] }
 0x290   :  { %1526 = vst.msk [vmem:[#allocation3 + $0x81] ss:$8 sm:$0x3] %vm6290_vm2, %v1524_v51  ;;  %1530 = vst.msk [vmem:[#allocation3 + $0x91] ss:$8 sm:$0x3] %vm6290_vm2, %v1528_v57 }
 0x291   :  { %v1533_v33 = vld [vmem:[#allocation2 + $0x36] ss:$8 sm:$0x3]  ;;  %v1538_v49 = vld [vmem:[#allocation2 + $0x37] ss:$8 sm:$0x3] }
 0x292   :  { %1535 = vst.msk [vmem:[#allocation3 + $0xa1] ss:$8 sm:$0x3] %vm6290_vm2, %v1533_v33  ;;  %1540 = vst.msk [vmem:[#allocation3 + $0xb1] ss:$8 sm:$0x3] %vm6290_vm2, %v1538_v49 }
 0x293   :  { %4140 = dma.done.wait [#allocation9], 16384 }
 0x294   :  { %4141 = vsyncadd [#allocation9], 4294950912  ;;  %3735 = vmatprep.subr.bf16.mxu1 %v3734_v48  ;;  %v3740_v32 = vpack.c.bf16 %v4214_v3, %v4209_v2  ;;  %v3742_v31 = vpack.c.bf16 %v4304_v21, %v4299_v20  ;;  %v3798_v16 = vpack.c.bf16 %v4604_v38, %v4599_v39  ;;  %v3800_v0 = vpack.c.bf16 %v4524_v46, %v4519_v47  ;;  %v1546_v18 = vld [vmem:[#allocation3 + $0x8] sm:$0xff]  ;;  %v7218_v39 = vld [vmem:[#allocation26_spill] sm:$0xff] }
 0x295   :  { %3737 = vmatpush3.bf16.msra.mxu1 %v3736_v14  ;;  %v3802_v1 = vpack.c.bf16 %v4614_v54, %v4609_v55  ;;  %v3744_v17 = vpack.c.bf16 %v4224_v5, %v4219_v4  ;;  %v3804_v2 = vpack.c.bf16 %v4534_v62, %v4529_v45  ;;  %v3746_v3 = vpack.c.bf16 %v4314_v23, %v4309_v22  ;;  %v1550_v20 = vld [vmem:[#allocation3 + $0x28] sm:$0xff]  ;;  %v7223_v47 = vld [vmem:[#allocation61_spill] sm:$0xff]  ;;  %v7232_v12 = vld [vmem:[#allocation46_spill] sm:$0xff] }
 0x296   :  { %3739 = vmatprep.subr.bf16.mxu1 %v3738_v58  ;;  %3799 = vmatprep.subr.bf16.mxu0 %v3798_v16  ;;  %v3806_v19 = vpack.c.bf16 %v4624_v36, %v4619_v37  ;;  %v3748_v4 = vpack.c.bf16 %v4234_v7, %v4229_v6  ;;  %v3808_v5 = vpack.c.bf16 %v4544_v44, %v4539_v63  ;;  %v7212_v36 = vld [vmem:[#allocation65_spill] sm:$0xff]  ;;  %v7214_v37 = vld [vmem:[#allocation22_spill] sm:$0xff]  ;;  %v7216_v38 = vld [vmem:[#allocation60_spill] sm:$0xff] }
 0x297   :  { %3801 = vmatpush3.bf16.msra.mxu0 %v3800_v0  ;;  %1767 = vmatprep.mubr.f32.mxu1 %v1546_v18  ;;  %v3750_v21 = vpack.c.bf16 %v4324_v25, %v4319_v24  ;;  %v3810_v22 = vpack.c.bf16 %v4634_v52, %v4629_v53  ;;  %v3752_v23 = vpack.c.bf16 %v4244_v9, %v4239_v8  ;;  %v7220_v44 = vld [vmem:[#allocation67_spill] sm:$0xff]  ;;  %v7222_v45 = vld [vmem:[#allocation24_spill] sm:$0xff]  ;;  %v7224_v52 = vld [vmem:[#allocation62_spill] sm:$0xff] }
 0x298   :  { %3803 = vmatprep.subr.bf16.mxu0 %v3802_v1  ;;  %1927 = vmatprep.mubr.f32.mxu0 %v1550_v20  ;;  %v3812_v6 = vpack.c.bf16 %v4554_v60, %v4549_v61  ;;  %v3754_v7 = vpack.c.bf16 %v4334_v27, %v4329_v26  ;;  %v3814_v24 = vpack.c.bf16 %v4644_v34, %v4639_v35  ;;  %v7213_v27 = vld [vmem:[#allocation21_spill] sm:$0xff]  ;;  %v7215_v35 = vld [vmem:[#allocation59_spill] sm:$0xff]  ;;  %v7226_v55 = vld [vmem:[#allocation44_spill] sm:$0xff] }
 0x299   :  { %3741 = vmatpush3.bf16.msra.mxu1 %v3740_v32  ;;  %v3756_v25 = vpack.c.bf16 %v4254_v11, %v4249_v10  ;;  %v3816_v8 = vpack.c.bf16 %v4564_v42, %v4559_v43  ;;  %v3758_v9 = vpack.c.bf16 %v4344_v29, %v4339_v28  ;;  %v3818_v26 = vpack.c.bf16 %v7212_v36, %v4649_v56  ;;  %v7217_v11 = vld [vmem:[#allocation25_spill] sm:$0xff]  ;;  %v7219_v43 = vld [vmem:[#allocation66_spill] sm:$0xff]  ;;  %v7221_v29 = vld [vmem:[#allocation23_spill] sm:$0xff] }
 0x29a   :  { %3743 = vmatprep.subr.bf16.mxu1 %v3742_v31  ;;  %v3760_v34 = vpack.c.bf16 %v7214_v37, %v7213_v27  ;;  %v3820_v10 = vpack.c.bf16 %v7216_v38, %v7215_v35  ;;  %v3762_v42 = vpack.c.bf16 %v7218_v39, %v7217_v11  ;;  %v3822_v28 = vpack.c.bf16 %v7220_v44, %v7219_v43  ;;  %v7225_v54 = vld [vmem:[#allocation43_spill] sm:$0xff]  ;;  %v7227_v60 = vld [vmem:[#allocation68_spill] sm:$0xff]  ;;  %v7228_v61 = vld [vmem:[#allocation69_spill] sm:$0xff] }
 0x29b   :  { %3805 = vmatpush3.bf16.msra.mxu0 %v3804_v2  ;;  %v3764_v46 = vpack.c.bf16 %v7222_v45, %v7221_v29  ;;  %v3824_v53 = vpack.c.bf16 %v7224_v52, %v7223_v47  ;;  %v3766_v56 = vpack.c.bf16 %v7226_v55, %v7225_v54  ;;  %v3826_v62 = vpack.c.bf16 %v7228_v61, %v7227_v60  ;;  %v1545_v63 = vld [vmem:[#allocation3] sm:$0xff]  ;;  %v7230_v41 = vld [vmem:[#allocation28_spill] sm:$0xff]  ;;  %v7231_v50 = vld [vmem:[#allocation45_spill] sm:$0xff] }
 0x29c   :  { %3807 = vmatprep.subr.bf16.mxu0 %v3806_v19  ;;  %v7229_v59 = vld [vmem:[#allocation27_spill] sm:$0xff]  ;;  %v3770_v30 = vpack.c.bf16 %v7232_v12, %v7231_v50  ;;  %v7234_v57 = vld [vmem:[#allocation64_spill] sm:$0xff]  ;;  %v7235_v49 = vld [vmem:[#allocation29_spill] sm:$0xff] }
 0x29d   :  { %3745 = vmatpush3.bf16.msra.mxu1 %v3744_v17  ;;  %v3768_v13 = vpack.c.bf16 %v7230_v41, %v7229_v59  ;;  %v1554_v15 = vld [vmem:[#allocation3 + $0x48] sm:$0xff]  ;;  %v7236_v48 = vld [vmem:[#allocation30_spill] sm:$0xff]  ;;  %v7241_v20 = vld [vmem:[#allocation49_spill] sm:$0xff] }
 0x29e   :  { %3747 = vmatprep.subr.bf16.mxu1 %v3746_v3  ;;  %v7233_v51 = vld [vmem:[#allocation63_spill] sm:$0xff]  ;;  %v3772_v14 = vpack.c.bf16 %v7236_v48, %v7235_v49  ;;  %v7238_v31 = vld [vmem:[#allocation48_spill] sm:$0xff]  ;;  %v1561_v19 = vld [vmem:[#allocation3 + $0x80] sm:$0x3] }
 0x29f   :  { %3809 = vmatpush3.bf16.msra.mxu0 %v3808_v5  ;;  %v3828_v33 = vpack.c.bf16 %v7234_v57, %v7233_v51  ;;  %v1553_v58 = vld [vmem:[#allocation3 + $0x40] sm:$0xff]  ;;  %v1562_v0 = vld [vmem:[#allocation3 + $0x88] sm:$0x3]  ;;  %v7240_v2 = vld [vmem:[#allocation32_spill] sm:$0xff] }
 0x2a0   :  { %3811 = vmatprep.subr.bf16.mxu0 %v3810_v22  ;;  %v7237_v32 = vld [vmem:[#allocation47_spill] sm:$0xff]  ;;  %v1565_v36 = vld [vmem:[#allocation3 + $0xa0] sm:$0x3]  ;;  %v7248_v27 = vld [vmem:[#allocation36_spill] sm:$0xff] }
 0x2a1   :  { %3749 = vmatpush3.bf16.msra.mxu1 %v3748_v4  ;;  %v3774_v16 = vpack.c.bf16 %v7238_v31, %v7237_v32  ;;  %v1549_v1 = vld [vmem:[#allocation3 + $0x20] sm:$0xff]  ;;  %v1558_v17 = vld [vmem:[#allocation3 + $0x68] sm:$0xff]  ;;  %v7266_v12 = vld [vmem:[#allocation89_spill] sm:$0xff] }
 0x2a2   :  { %3751 = vmatprep.subr.bf16.mxu1 %v3750_v21  ;;  %v7239_v18 = vld [vmem:[#allocation31_spill] sm:$0xff]  ;;  %v7242_v4 = vld [vmem:[#allocation50_spill] sm:$0xff]  ;;  %v7254_v43 = vld [vmem:[#allocation56_spill] sm:$0xff] }
 0x2a3   :  { %3813 = vmatpush3.bf16.msra.mxu0 %v3812_v6  ;;  %v3776_v3 = vpack.c.bf16 %v7240_v2, %v7239_v18  ;;  %v3778_v5 = vpack.c.bf16 %v7242_v4, %v7241_v20  ;;  %v1548_v21 = vld [vmem:[#allocation3 + $0x18] sm:$0xff]  ;;  %v1557_v22 = vld [vmem:[#allocation3 + $0x60] sm:$0xff]  ;;  %v7256_v29 = vld [vmem:[#allocation40_spill] sm:$0xff] }
 0x2a4   :  { %3815 = vmatprep.subr.bf16.mxu0 %v3814_v24  ;;  %v7243_v6 = vld [vmem:[#allocation33_spill] sm:$0xff]  ;;  %v7250_v35 = vld [vmem:[#allocation54_spill] sm:$0xff]  ;;  %v7262_v60 = vld [vmem:[#allocation87_spill] sm:$0xff] }
 0x2a5   :  { %3753 = vmatpush3.bf16.msra.mxu1 %v3752_v23  ;;  %v1566_v23 = vld [vmem:[#allocation3 + $0xa8] sm:$0x3]  ;;  %v7252_v11 = vld [vmem:[#allocation38_spill] sm:$0xff]  ;;  %v7265_v50 = vld [vmem:[#allocation88_spill] sm:$0xff] }
 0x2a6   :  { %3755 = vmatprep.subr.bf16.mxu1 %v3754_v7  ;;  %v7244_v7 = vld [vmem:[#allocation34_spill] sm:$0xff]  ;;  %v7264_v59 = vld [vmem:[#allocation71_spill] sm:$0xff]  ;;  %v7267_v51 = vld [vmem:[#allocation72_spill] sm:$0xff] }
 0x2a7   :  { %3817 = vmatpush3.bf16.msra.mxu0 %v3816_v8  ;;  %v3780_v24 = vpack.c.bf16 %v7244_v7, %v7243_v6  ;;  %v7246_v8 = vld [vmem:[#allocation52_spill] sm:$0xff]  ;;  %v7258_v47 = vld [vmem:[#allocation58_spill] sm:$0xff]  ;;  %v7268_v57 = vld [vmem:[#allocation73_spill] sm:$0xff] }
 0x2a8   :  { %3819 = vmatprep.subr.bf16.mxu0 %v3818_v26  ;;  %v7247_v26 = vld [vmem:[#allocation35_spill] sm:$0xff]  ;;  %v7260_v54 = vld [vmem:[#allocation42_spill] sm:$0xff]  ;;  %v1564_v49 = vld [vmem:[#allocation3 + $0x98] sm:$0x3] }
 0x2a9   :  { %3757 = vmatpush3.bf16.msra.mxu1 %v3756_v25  ;;  %v7245_v25 = vld [vmem:[#allocation51_spill] sm:$0xff]  ;;  %v3784_v37 = vpack.c.bf16 %v7248_v27, %v7247_v26  ;;  %v7269_v48 = vld [vmem:[#allocation90_spill] sm:$0xff]  ;;  %v1563_v32 = vld [vmem:[#allocation3 + $0x90] sm:$0x3] }
 0x2aa   :  { %3759 = vmatprep.subr.bf16.mxu1 %v3758_v9  ;;  %v3782_v9 = vpack.c.bf16 %v7246_v8, %v7245_v25  ;;  %v7271_v31 = vld [vmem:[#allocation74_spill] sm:$0xff]  ;;  %v7281_v7 = vld [vmem:[#allocation96_spill] sm:$0xff]  ;;  %v7286_v27 = vld [vmem:[#allocation99_spill] sm:$0xff] }
 0x2ab   :  { %3821 = vmatpush3.bf16.msra.mxu0 %v3820_v10  ;;  %v7251_v10 = vld [vmem:[#allocation37_spill] sm:$0xff]  ;;  %v7277_v4 = vld [vmem:[#allocation94_spill] sm:$0xff]  ;;  %v7283_v8 = vld [vmem:[#allocation80_spill] sm:$0xff] }
 0x2ac   :  { %3823 = vmatprep.subr.bf16.mxu0 %v3822_v28  ;;  %v3788_v39 = vpack.c.bf16 %v7252_v11, %v7251_v10  ;;  %v7255_v28 = vld [vmem:[#allocation39_spill] sm:$0xff]  ;;  %v1552_v2 = vld [vmem:[#allocation3 + $0x38] sm:$0xff]  ;;  %v7289_v10 = vld [vmem:[#allocation100_spill] sm:$0xff] }
 0x2ad   :  { %3761 = vmatpush3.bf16.msra.mxu1 %v3760_v34  ;;  %v7249_v34 = vld [vmem:[#allocation53_spill] sm:$0xff]  ;;  %v3792_v45 = vpack.c.bf16 %v7256_v29, %v7255_v28  ;;  %v7285_v26 = vld [vmem:[#allocation98_spill] sm:$0xff] }
 0x2ae   :  { %3763 = vmatprep.subr.bf16.mxu1 %v3762_v42  ;;  %v3786_v38 = vpack.c.bf16 %v7250_v35, %v7249_v34  ;;  %v7253_v42 = vld [vmem:[#allocation55_spill] sm:$0xff]  ;;  %v7287_v34 = vld [vmem:[#allocation82_spill] sm:$0xff]  ;;  %v7290_v11 = vld [vmem:[#allocation101_spill] sm:$0xff] }
 0x2af   :  { %3825 = vmatpush3.bf16.msra.mxu0 %v3824_v53  ;;  %v3790_v44 = vpack.c.bf16 %v7254_v43, %v7253_v42  ;;  %v7259_v53 = vld [vmem:[#allocation41_spill] sm:$0xff]  ;;  %v7288_v35 = vld [vmem:[#allocation83_spill] sm:$0xff]  ;;  %v7291_v42 = vld [vmem:[#allocation84_spill] sm:$0xff] }
 0x2b0   :  { %3827 = vmatprep.subr.bf16.mxu0 %v3826_v62  ;;  %v3796_v55 = vpack.c.bf16 %v7260_v54, %v7259_v53  ;;  %v1547_v62 = vld [vmem:[#allocation3 + $0x10] sm:$0xff]  ;;  %v1560_v29 = vld [vmem:[#allocation3 + $0x78] sm:$0xff] }
 0x2b1   :  { %3765 = vmatpush3.bf16.msra.mxu1 %v3764_v46  ;;  %v7257_v46 = vld [vmem:[#allocation57_spill] sm:$0xff] }
 0x2b2   :  { %3767 = vmatprep.subr.bf16.mxu1 %v3766_v56  ;;  %v3794_v52 = vpack.c.bf16 %v7258_v47, %v7257_v46  ;;  %v7261_v56 = vld [vmem:[#allocation86_spill] sm:$0xff]  ;;  %v7292_v43 = vld [vmem:[#allocation85_spill] sm:$0xff]  ;;  %v1567_v47 = vld [vmem:[#allocation3 + $0xb0] sm:$0x3] }
 0x2b3   :  { %3829 = vmatpush3.bf16.msra.mxu0 %v3828_v33  ;;  %v3830_v61 = vpack.c.bf16 %v7262_v60, %v7261_v56  ;;  %v3836_v33 = vpack.c.bf16 %v7268_v57, %v7267_v51  ;;  %v1551_v28 = vld [vmem:[#allocation3 + $0x30] sm:$0xff]  ;;  %v1568_v46 = vld [vmem:[#allocation3 + $0xb8] sm:$0x3] }
 0x2b4   :  { %1768 = vmatmul.mubr.f32.vlgmr.msra.gmra.mrb[0].mxu1 %v1545_v63  ;;  %v7263_v63 = vld [vmem:[#allocation70_spill] sm:$0xff] }
 0x2b5   :  { %3769 = vmatpush3.bf16.msra.mxu1 %v3768_v13  ;;  %1772 = vmatprep.mubr.f32.mxu1 %v1554_v15  ;;  %v3832_v41 = vpack.c.bf16 %v7264_v59, %v7263_v63  ;;  %v1556_v13 = vld [vmem:[#allocation3 + $0x58] sm:$0xff]  ;;  %v1555_v15 = vld [vmem:[#allocation3 + $0x50] sm:$0xff] }
 0x2b6   :  { %3771 = vmatprep.subr.bf16.mxu1 %v3770_v30  ;;  %1928 = vmatmul.mubr.f32.vlgmr.msra.gmra.mrb[32].mxu0 %v1549_v1  ;;  %v3834_v30 = vpack.c.bf16 %v7266_v12, %v7265_v50  ;;  %v7273_v1 = vld [vmem:[#allocation92_spill] sm:$0xff] }
 0x2b7   :  { %1932 = vmatprep.mubr.f32.mxu0 %v1558_v17  ;;  %v7274_v17 = vld [vmem:[#allocation93_spill] sm:$0xff] }
 0x2b8   :  { %1773 = vmatmul.mubr.f32.gmra.mrb[2].mxu1 %v1553_v58  ;;  %v3842_v18 = vpack.c.bf16 %v7274_v17, %v7273_v1 }
 0x2b9   :  { %3773 = vmatpush3.bf16.msra.mxu1 %v3772_v14  ;;  %1777 = vmatprep.mubr.f32.mxu1 %v1562_v0  ;;  %v7270_v14 = vld [vmem:[#allocation91_spill] sm:$0xff] }
 0x2ba   :  { %3775 = vmatprep.subr.bf16.mxu1 %v3774_v16  ;;  %1933 = vmatmul.mubr.f32.gmra.mrb[34].mxu0 %v1557_v22  ;;  %v3838_v58 = vpack.c.bf16 %v7270_v14, %v7269_v48  ;;  %v7272_v16 = vld [vmem:[#allocation75_spill] sm:$0xff]  ;;  %v7279_v22 = vld [vmem:[#allocation78_spill] sm:$0xff] }
 0x2bb   :  { %1937 = vmatprep.mubr.f32.mxu0 %v1566_v23  ;;  %v3840_v0 = vpack.c.bf16 %v7272_v16, %v7271_v31  ;;  %v7280_v23 = vld [vmem:[#allocation79_spill] sm:$0xff]  ;;  %v7293_v48 = vld [vmem:[#allocation342_spill] sm:$0xff] }
 0x2bc   :  { %1778 = vmatmul.mubr.f32.gmra.mrb[4].mxu1 %v1561_v19  ;;  %v7276_v19 = vld [vmem:[#allocation77_spill] sm:$0xff]  ;;  %v3848_v6 = vpack.c.bf16 %v7280_v23, %v7279_v22  ;;  %v4151_v22 = vmov 1983009808  }
 0x2bd   :  { %3777 = vmatpush3.bf16.msra.mxu1 %v3776_v3  ;;  %1847 = vmatprep.mubr.f32.mxu1 %v1548_v21  ;;  %v7275_v3 = vld [vmem:[#allocation76_spill] sm:$0xff]  ;;  %v2029_v23 = vunpack.c.l.s4 %v4151_v22 }
 0x2be   :  { %3779 = vmatprep.subr.bf16.mxu1 %v3778_v5  ;;  %1938 = vmatmul.mubr.f32.gmra.mrb[36].mxu0 %v1565_v36  ;;  %v3844_v20 = vpack.c.bf16 %v7276_v19, %v7275_v3  ;;  %v7278_v5 = vld [vmem:[#allocation95_spill] sm:$0xff] }
 0x2bf   :  { %v3846_v21 = vpack.c.bf16 %v7278_v5, %v7277_v4 }
 0x2c1   :  { %3781 = vmatpush3.bf16.msra.mxu1 %v3780_v24  ;;  %v7282_v24 = vld [vmem:[#allocation97_spill] sm:$0xff] }
 0x2c2   :  { %3783 = vmatprep.subr.bf16.mxu1 %v3782_v9  ;;  %v3850_v25 = vpack.c.bf16 %v7282_v24, %v7281_v7  ;;  %v7284_v9 = vld [vmem:[#allocation81_spill] sm:$0xff]  ;;  %v2030_v7 = vunpack.c.0.s8 %v2029_v23  ;;  %v6574_v24 = vshrl.u32 %v1205_v40, 7 }
 0x2c3   :  { %v3852_v36 = vpack.c.bf16 %v7284_v9, %v7283_v8 }
 0x2c5   :  { %3785 = vmatpush3.bf16.msra.mxu1 %v3784_v37  ;;  %v3854_v37 = vpack.c.bf16 %v7286_v27, %v7285_v26 }
 0x2c6   :  { %3787 = vmatprep.subr.bf16.mxu1 %v3786_v38  ;;  %v3856_v38 = vpack.c.bf16 %v7288_v35, %v7287_v34 }
 0x2c9   :  { %3789 = vmatpush3.bf16.msra.mxu1 %v3788_v39  ;;  %v3858_v39 = vpack.c.bf16 %v7290_v11, %v7289_v10 }
 0x2ca   :  { %3791 = vmatprep.subr.bf16.mxu1 %v3790_v44  ;;  %v3860_v44 = vpack.c.bf16 %v7292_v43, %v7291_v42 }
 0x2cd   :  { %3793 = vmatpush3.bf16.msra.mxu1 %v3792_v45  ;;  %v1559_v45 = vld [vmem:[#allocation3 + $0x70] sm:$0xff] }
 0x2ce   :  { %3795 = vmatprep.subr.bf16.mxu1 %v3794_v52 }
 0x2d1   :  { %3797 = vmatpush3.bf16.msra.mxu1 %v3796_v55 }
 0x2d2   :  { %3831 = vmatprep.subr.bf16.mxu1 %v3830_v61 }
 0x2d4   :  { %1848 = vmatmul.mubr.f32.vlgmr.msra.gmra.mrb[6].mxu1 %v1547_v62 }
 0x2d5   :  { %3833 = vmatpush3.bf16.msra.mxu1 %v3832_v41  ;;  %1852 = vmatprep.mubr.f32.mxu1 %v1556_v13 }
 0x2d6   :  { %3835 = vmatprep.subr.bf16.mxu1 %v3834_v30 }
 0x2d8   :  { %1853 = vmatmul.mubr.f32.gmra.mrb[8].mxu1 %v1555_v15 }
 0x2d9   :  { %3837 = vmatpush3.bf16.msra.mxu1 %v3836_v33  ;;  %1857 = vmatprep.mubr.f32.mxu1 %v1564_v49 }
 0x2da   :  { %3839 = vmatprep.subr.bf16.mxu1 %v3838_v58 }
 0x2dc   :  { %1858 = vmatmul.mubr.f32.gmra.mrb[10].mxu1 %v1563_v32 }
 0x2dd   :  { %3841 = vmatpush3.bf16.msra.mxu1 %v3840_v0  ;;  %2007 = vmatprep.mubr.f32.mxu1 %v1552_v2 }
 0x2de   :  { %3843 = vmatprep.subr.bf16.mxu1 %v3842_v18 }
 0x2e1   :  { %3845 = vmatpush3.bf16.msra.mxu1 %v3844_v20 }
 0x2e2   :  { %3847 = vmatprep.subr.bf16.mxu1 %v3846_v21 }
 0x2e5   :  { %3849 = vmatpush3.bf16.msra.mxu1 %v3848_v6 }
 0x2e6   :  { %3851 = vmatprep.subr.bf16.mxu1 %v3850_v25 }
 0x2e9   :  { %3853 = vmatpush3.bf16.msra.mxu1 %v3852_v36  ;;  %v6577_v36 = vsub.s32 %v2030_v7, %v6574_v24 }
 0x2ea   :  { %3855 = vmatprep.subr.bf16.mxu1 %v3854_v37 }
 0x2ed   :  { %3857 = vmatpush3.bf16.msra.mxu1 %v3856_v38 }
 0x2ee   :  { %3859 = vmatprep.subr.bf16.mxu1 %v3858_v39 }
 0x2f1   :  { %3861 = vmatpush3.bf16.msra.mxu1 %v3860_v44 }
 0x2f4   :  { %2008 = vmatmul.mubr.f32.vlgmr.msra.gmra.mrb[12].mxu1 %v1551_v28 }
 0x2f5   :  { %2012 = vmatprep.mubr.f32.mxu1 %v1560_v29 }
 0x2f8   :  { %2013 = vmatmul.mubr.f32.gmra.mrb[14].mxu1 %v1559_v45 }
 0x2f9   :  { %2017 = vmatprep.mubr.f32.mxu1 %v1568_v46 }
 0x2fc   :  { %2018 = vmatmul.mubr.f32.gmra.mrb[16].mxu1 %v1567_v47 }
 0x387   :  { %v3308_v52 = vpop.f32.mrb[0].mxu1 }
 0x388   :  { %v3309_v53 = vpop.f32.mrb[1].mxu1 }
 0x389   :  { %v3310_v54 = vadd.f32 %v3309_v53, %v3308_v52  ;;  %v3390_v61 = vpop.f32.mrb[32].mxu0 }
 0x38a   :  { %v3391_v62 = vpop.f32.mrb[33].mxu0 }
 0x38b   :  { %v3311_v55 = vpop.f32.mrb[2].mxu1  ;;  %v3392_v59 = vadd.f32 %v3391_v62, %v3390_v61  ;;  %v1770_v14 = vadd.f32 %v3310_v54, %v7293_v48 }
 0x38c   :  { %v3312_v56 = vpop.f32.mrb[3].mxu1 }
 0x38d   :  { %v3313_v60 = vadd.f32 %v3312_v56, %v3311_v55  ;;  %v3393_v50 = vpop.f32.mrb[34].mxu0 }
 0x38e   :  { %v3394_v12 = vpop.f32.mrb[35].mxu0 }
 0x38f   :  { %v3314_v63 = vpop.f32.mrb[4].mxu1  ;;  %v3395_v30 = vadd.f32 %v3394_v12, %v3393_v50  ;;  %v1775_v0 = vadd.f32 %v3313_v60, %v7293_v48  ;;  %v7294_v12 = vld [vmem:[#allocation118_spill] sm:$0xff] }
 0x390   :  { %v3315_v41 = vpop.f32.mrb[5].mxu1 }
 0x391   :  { %v3316_v13 = vadd.f32 %v3315_v41, %v3314_v63  ;;  %v3396_v15 = vpop.f32.mrb[36].mxu0 }
 0x392   :  { %v3397_v51 = vpop.f32.mrb[37].mxu0 }
 0x393   :  { %v3398_v57 = vadd.f32 %v3397_v51, %v3396_v15  ;;  %v1780_v19 = vadd.f32 %v3316_v13, %v7293_v48  ;;  %v7296_v51 = vld [vmem:[#allocation102_spill] sm:$0xff]  ;;  %v7299_v48 = vld [vmem:[#allocation151_spill] sm:$0xff] }
 0x3a7   :  { %v3349_v33 = vpop.f32.mrb[6].mxu1 }
 0x3a8   :  { %v3350_v49 = vpop.f32.mrb[7].mxu1 }
 0x3a9   :  { %v3351_v58 = vadd.f32 %v3350_v49, %v3349_v33  ;;  %v7298_v49 = vld [vmem:[#allocation150_spill] sm:$0xff] }
 0x3ab   :  { %v1850_v32 = vadd.f32 %v3351_v58, %v1770_v14  ;;  %v3352_v31 = vpop.f32.mrb[8].mxu1  ;;  %v3894_v14 = vpack.c.bf16 %v7299_v48, %v7298_v49  ;;  %v7300_v58 = vld [vmem:[#allocation134_spill] sm:$0xff] }
 0x3ac   :  { %v3353_v16 = vpop.f32.mrb[9].mxu1 }
 0x3ad   :  { %v1930_v1 = vadd.f32 %v3392_v59, %v1850_v32  ;;  %v3354_v17 = vadd.f32 %v3353_v16, %v3352_v31  ;;  %v7301_v32 = vld [vmem:[#allocation135_spill] sm:$0xff] }
 0x3ae   :  { %v3896_v31 = vpack.c.bf16 %v7301_v32, %v7300_v58 }
 0x3af   :  { %v1855_v18 = vadd.f32 %v3354_v17, %v1775_v0  ;;  %v3355_v2 = vpop.f32.mrb[10].mxu1 }
 0x3b0   :  { %v3356_v3 = vpop.f32.mrb[11].mxu1 }
 0x3b1   :  { %v1935_v20 = vadd.f32 %v3395_v30, %v1855_v18  ;;  %v3357_v4 = vadd.f32 %v3356_v3, %v3355_v2  ;;  %v7295_v30 = vld [vmem:[#allocation119_spill] sm:$0xff] }
 0x3b2   :  { %v3862_v15 = vpack.c.bf16 %v7295_v30, %v7294_v12 }
 0x3b3   :  { %v1860_v5 = vadd.f32 %v3357_v4, %v1780_v19 }
 0x3b5   :  { %v1940_v21 = vadd.f32 %v3398_v57, %v1860_v5  ;;  %v7297_v57 = vld [vmem:[#allocation103_spill] sm:$0xff] }
 0x3b6   :  { %v3864_v33 = vpack.c.bf16 %v7297_v57, %v7296_v51 }
 0x3c7   :  { %v3431_v6 = vpop.f32.mrb[12].mxu1 }
 0x3c8   :  { %v3432_v25 = vpop.f32.mrb[13].mxu1 }
 0x3c9   :  { %v3433_v8 = vadd.f32 %v3432_v25, %v3431_v6 }
 0x3cb   :  { %v2010_v9 = vadd.f32 %v3433_v8, %v1930_v1  ;;  %v3434_v26 = vpop.f32.mrb[14].mxu1 }
 0x3cc   :  { %v3435_v27 = vpop.f32.mrb[15].mxu1 }
 0x3cd   :  { %v2023_v37 = vmax.f32 %v2010_v9, 0.0  ;;  %v3436_v34 = vadd.f32 %v3435_v27, %v3434_v26 }
 0x3cf   :  { %2026 = vst [vmem:[#allocation4] sm:$0x1] %v2023_v37  ;;  %v2034_v35 = vrot.slane %v2023_v37, %v6577_v36  ;;  %v2046_v38 = vcombine.high %v2023_v37, %v2023_v37  ;;  %v2015_v10 = vadd.f32 %v3436_v34, %v1935_v20  ;;  %v3437_v11 = vpop.f32.mrb[16].mxu1 }
 0x3d0   :  { %v3438_v39 = vpop.f32.mrb[17].mxu1 }
 0x3d1   :  { %v3176_v42 = vrot.slane %v2034_v35, 9  ;;  %v2039_v40 = vcombine.high %v2034_v35, %v2034_v35  ;;  %v2053_v43 = vrot.slane %v2046_v38, %v6577_v36  ;;  %3178 = vst.sshfl [vmem:[#allocation4 + $0x8] sm:$0x1 pattern:$0x76325410] %v2046_v38  ;;  %v2024_v44 = vmax.f32 %v2015_v10, 0.0 }
 0x3d2   :  { %v3439_v28 = vadd.f32 %v3438_v39, %v3437_v11 }
 0x3d3   :  { %2038 = vst [vmem:[#allocation4 + $0x2] sm:$0x1] %v3176_v42  ;;  %2041 = vst [vmem:[#allocation4 + $0x4] sm:$0x1] %v2039_v40  ;;  %v3177_v29 = vrot.slane %v2039_v40, 9  ;;  %v3179_v45 = vrot.slane %v2053_v43, 9  ;;  %v2060_v46 = vcombine.high %v2053_v43, %v2053_v43  ;;  %v2075_v47 = vrot.slane %v2024_v44, %v6577_v36 }
 0x3d4   :  { %2067 = vst [vmem:[#allocation4 + $0x10] sm:$0x1] %v2024_v44  ;;  %v2087_v52 = vcombine.high %v2024_v44, %v2024_v44  ;;  %v2020_v53 = vadd.f32 %v3439_v28, %v1940_v21 }
 0x3d5   :  { %2045 = vst [vmem:[#allocation4 + $0x6] sm:$0x1] %v3177_v29  ;;  %2059 = vst [vmem:[#allocation4 + $0xa] sm:$0x1] %v3179_v45  ;;  %v3180_v54 = vrot.slane %v2060_v46, 9  ;;  %v3181_v55 = vrot.slane %v2075_v47, 9  ;;  %v2080_v56 = vcombine.high %v2075_v47, %v2075_v47 }
 0x3d6   :  { %2062 = vst [vmem:[#allocation4 + $0xc] sm:$0x1] %v2060_v46  ;;  %v2094_v60 = vrot.slane %v2087_v52, %v6577_v36  ;;  %3183 = vst.sshfl [vmem:[#allocation4 + $0x7] sm:$0x1 pattern:$0x76325410] %v2087_v52 }
 0x3d7   :  { %v2025_v61 = vmax.f32 %v2020_v53, 0.0  ;;  %2066 = vst [vmem:[#allocation4 + $0xe] sm:$0x1] %v3180_v54  ;;  %2079 = vst [vmem:[#allocation4 + $0x1] sm:$0x1] %v3181_v55  ;;  %v3182_v62 = vrot.slane %v2080_v56, 9 }
 0x3d8   :  { %2082 = vst [vmem:[#allocation4 + $0x3] sm:$0x1] %v2080_v56  ;;  %v3184_v63 = vrot.slane %v2094_v60, 9  ;;  %v2101_v59 = vcombine.high %v2094_v60, %v2094_v60 }
 0x3d9   :  { %2108 = vst [vmem:[#allocation4 + $0xf] sm:$0x1] %v2025_v61  ;;  %v2116_v41 = vrot.slane %v2025_v61, %v6577_v36  ;;  %2086 = vst [vmem:[#allocation4 + $0x5] sm:$0x1] %v3182_v62 }
 0x3da   :  { %2100 = vst [vmem:[#allocation4 + $0x9] sm:$0x1] %v3184_v63  ;;  %2103 = vst [vmem:[#allocation4 + $0xb] sm:$0x1] %v2101_v59  ;;  %v3185_v13 = vrot.slane %v2101_v59, 9 }
 0x3db   :  { %v3186_v50 = vrot.slane %v2116_v41, 9 }
 0x3dc   :  { %2107 = vst [vmem:[#allocation4 + $0xd] sm:$0x1] %v3185_v13 }
 0x3dd   :  { %2120 = vst [vmem:[#allocation4 + $0x11] sm:$0x1] %v3186_v50 }
 0x3de   :  { %4142 = dma.done.wait [#allocation9 + $0x1], 18432 }
 0x3df   :  { %4143 = vsyncadd [#allocation9 + $0x1], 4294948864  ;;  %v7302_v16 = vld [vmem:[#allocation120_spill] sm:$0xff]  ;;  %v7303_v0 = vld [vmem:[#allocation121_spill] sm:$0xff]  ;;  %3863 = vmatprep.subr.bf16.mxu0 %v3862_v15  ;;  %3895 = vmatprep.subr.bf16.mxu1 %v3894_v14  ;;  %vm4153_vm3 = vmmov 0  }
 0x3e0   :  { %v3866_v1 = vpack.c.bf16 %v7303_v0, %v7302_v16  ;;  %v7304_v17 = vld [vmem:[#allocation152_spill] sm:$0xff]  ;;  %v7305_v18 = vld [vmem:[#allocation153_spill] sm:$0xff]  ;;  %3865 = vmatpush3.bf16.msra.mxu0 %v3864_v33  ;;  %3897 = vmatpush3.bf16.msra.mxu1 %v3896_v31  ;;  %v7310_v22 = vld [vmem:[#allocation122_spill] sm:$0xff] }
 0x3e1   :  { %v3898_v2 = vpack.c.bf16 %v7305_v18, %v7304_v17  ;;  %v7306_v3 = vld [vmem:[#allocation104_spill] sm:$0xff]  ;;  %v7307_v19 = vld [vmem:[#allocation105_spill] sm:$0xff]  ;;  %v7311_v23 = vld [vmem:[#allocation123_spill] sm:$0xff] }
 0x3e2   :  { %v3868_v20 = vpack.c.bf16 %v7307_v19, %v7306_v3  ;;  %v7308_v4 = vld [vmem:[#allocation136_spill] sm:$0xff]  ;;  %v7309_v5 = vld [vmem:[#allocation137_spill] sm:$0xff]  ;;  %3867 = vmatprep.subr.bf16.mxu0 %v3866_v1  ;;  %v3870_v6 = vpack.c.bf16 %v7311_v23, %v7310_v22  ;;  %v7312_v7 = vld [vmem:[#allocation154_spill] sm:$0xff] }
 0x3e3   :  { %v3900_v21 = vpack.c.bf16 %v7309_v5, %v7308_v4  ;;  %3899 = vmatprep.subr.bf16.mxu1 %v3898_v2  ;;  %v7313_v25 = vld [vmem:[#allocation155_spill] sm:$0xff]  ;;  %v7314_v9 = vld [vmem:[#allocation106_spill] sm:$0xff]  ;;  %v7318_v10 = vld [vmem:[#allocation124_spill] sm:$0xff] }
 0x3e4   :  { %v3902_v8 = vpack.c.bf16 %v7313_v25, %v7312_v7  ;;  %3869 = vmatpush3.bf16.msra.mxu0 %v3868_v20  ;;  %v7315_v26 = vld [vmem:[#allocation107_spill] sm:$0xff]  ;;  %v7316_v37 = vld [vmem:[#allocation138_spill] sm:$0xff]  ;;  %v7319_v11 = vld [vmem:[#allocation125_spill] sm:$0xff] }
 0x3e5   :  { %3901 = vmatpush3.bf16.msra.mxu1 %v3900_v21  ;;  %v3872_v27 = vpack.c.bf16 %v7315_v26, %v7314_v9  ;;  %v7317_v34 = vld [vmem:[#allocation139_spill] sm:$0xff]  ;;  %3871 = vmatprep.subr.bf16.mxu0 %v3870_v6  ;;  %v3874_v39 = vpack.c.bf16 %v7319_v11, %v7318_v10  ;;  %v7320_v42 = vld [vmem:[#allocation156_spill] sm:$0xff]  ;;  %v7321_v40 = vld [vmem:[#allocation157_spill] sm:$0xff] }
 0x3e6   :  { %v3904_v35 = vpack.c.bf16 %v7317_v34, %v7316_v37  ;;  %v2124_v38 = vld [vmem:[#allocation4] sm:$0xff]  ;;  %3903 = vmatprep.subr.bf16.mxu1 %v3902_v8  ;;  %v3906_v43 = vpack.c.bf16 %v7321_v40, %v7320_v42  ;;  %v7322_v29 = vld [vmem:[#allocation108_spill] sm:$0xff]  ;;  %v7323_v45 = vld [vmem:[#allocation109_spill] sm:$0xff] }
 0x3e7   :  { %v2287_v44 = vrot.slane %v2124_v38, %v6577_v36  ;;  %v2280_v28 = vcombine.high %v2124_v38, %v2124_v38  ;;  %v3876_v46 = vpack.c.bf16 %v7323_v45, %v7322_v29  ;;  %v7324_v47 = vld [vmem:[#allocation140_spill] sm:$0xff]  ;;  %v7325_v52 = vld [vmem:[#allocation141_spill] sm:$0xff]  ;;  %v7326_v56 = vld [vmem:[#allocation126_spill] sm:$0xff] }
 0x3e8   :  { %3873 = vmatpush3.bf16.msra.mxu0 %v3872_v27  ;;  %v3908_v53 = vpack.c.bf16 %v7325_v52, %v7324_v47  ;;  %v7327_v60 = vld [vmem:[#allocation127_spill] sm:$0xff]  ;;  %v7328_v62 = vld [vmem:[#allocation158_spill] sm:$0xff]  ;;  %v7334_v57 = vld [vmem:[#allocation128_spill] sm:$0xff] }
 0x3e9   :  { %3905 = vmatpush3.bf16.msra.mxu1 %v3904_v35  ;;  %v2295_v54 = vcombine.high %v2287_v44, %v2287_v44  ;;  %v2294_v55 = vrot.slane %v2280_v28, %v6577_v36  ;;  %3875 = vmatprep.subr.bf16.mxu0 %v3874_v39  ;;  %v3878_v61 = vpack.c.bf16 %v7327_v60, %v7326_v56  ;;  %v7329_v63 = vld [vmem:[#allocation159_spill] sm:$0xff]  ;;  %v7330_v13 = vld [vmem:[#allocation110_spill] sm:$0xff]  ;;  %v7335_v33 = vld [vmem:[#allocation129_spill] sm:$0xff] }
 0x3ea   :  { %3907 = vmatprep.subr.bf16.mxu1 %v3906_v43  ;;  %v3910_v59 = vpack.c.bf16 %v7329_v63, %v7328_v62  ;;  %v7331_v50 = vld [vmem:[#allocation111_spill] sm:$0xff]  ;;  %v7332_v30 = vld [vmem:[#allocation142_spill] sm:$0xff]  ;;  %v3882_v49 = vpack.c.bf16 %v7335_v33, %v7334_v57  ;;  %v7336_v48 = vld [vmem:[#allocation160_spill] sm:$0xff] }
 0x3eb   :  { %2394 = vmatprep.mubr.f32.mxu0 %v2295_v54  ;;  %v2296_v41 = vcombine.high %v2294_v55, %v2294_v55  ;;  %v3880_v12 = vpack.c.bf16 %v7331_v50, %v7330_v13  ;;  %v7333_v15 = vld [vmem:[#allocation143_spill] sm:$0xff]  ;;  %v7337_v14 = vld [vmem:[#allocation161_spill] sm:$0xff]  ;;  %v7338_v32 = vld [vmem:[#allocation112_spill] sm:$0xff] }
 0x3ec   :  { %3877 = vmatpush3.bf16.msra.mxu0 %v3876_v46  ;;  %v3912_v51 = vpack.c.bf16 %v7333_v15, %v7332_v30  ;;  %v3914_v58 = vpack.c.bf16 %v7337_v14, %v7336_v48  ;;  %v7339_v31 = vld [vmem:[#allocation113_spill] sm:$0xff]  ;;  %v7340_v0 = vld [vmem:[#allocation144_spill] sm:$0xff]  ;;  %v7342_v18 = vld [vmem:[#allocation130_spill] sm:$0xff] }
 0x3ed   :  { %3909 = vmatpush3.bf16.msra.mxu1 %v3908_v53  ;;  %3879 = vmatprep.subr.bf16.mxu0 %v3878_v61  ;;  %v3884_v16 = vpack.c.bf16 %v7339_v31, %v7338_v32  ;;  %v7341_v1 = vld [vmem:[#allocation145_spill] sm:$0xff]  ;;  %v7343_v2 = vld [vmem:[#allocation131_spill] sm:$0xff]  ;;  %v7344_v19 = vld [vmem:[#allocation162_spill] sm:$0xff] }
 0x3ee   :  { %3911 = vmatprep.subr.bf16.mxu1 %v3910_v59  ;;  %2464 = vmatprep.mubr.f32.mxu1 %v2296_v41  ;;  %v3916_v17 = vpack.c.bf16 %v7341_v1, %v7340_v0  ;;  %v3886_v3 = vpack.c.bf16 %v7343_v2, %v7342_v18  ;;  %v7345_v20 = vld [vmem:[#allocation163_spill] sm:$0xff]  ;;  %v7346_v21 = vld [vmem:[#allocation114_spill] sm:$0xff]  ;;  %v7350_v8 = vld [vmem:[#allocation132_spill] sm:$0xff] }
 0x3ef   :  { %v3918_v4 = vpack.c.bf16 %v7345_v20, %v7344_v19  ;;  %v2125_v5 = vld [vmem:[#allocation4 + $0x8] sm:$0xff]  ;;  %v7348_v6 = vld [vmem:[#allocation146_spill] sm:$0xff]  ;;  %v7351_v9 = vld [vmem:[#allocation133_spill] sm:$0xff] }
 0x3f0   :  { %3881 = vmatpush3.bf16.msra.mxu0 %v3880_v12  ;;  %v7347_v22 = vld [vmem:[#allocation115_spill] sm:$0xff]  ;;  %v3890_v26 = vpack.c.bf16 %v7351_v9, %v7350_v8  ;;  %v7352_v27 = vld [vmem:[#allocation164_spill] sm:$0xff]  ;;  %v7353_v37 = vld [vmem:[#allocation165_spill] sm:$0xff]  ;;  %v2297_v35 = vcombine.high %v2125_v5, %v2125_v5  ;;  %v6655_v52 = vrot.slane %v2125_v5, %v6577_v36 }
 0x3f1   :  { %3913 = vmatpush3.bf16.msra.mxu1 %v3912_v51  ;;  %3883 = vmatprep.subr.bf16.mxu0 %v3882_v49  ;;  %v3888_v23 = vpack.c.bf16 %v7347_v22, %v7346_v21  ;;  %v7349_v7 = vld [vmem:[#allocation147_spill] sm:$0xff]  ;;  %v3922_v34 = vpack.c.bf16 %v7353_v37, %v7352_v27  ;;  %v7354_v38 = vld [vmem:[#allocation116_spill] sm:$0xff]  ;;  %v7355_v10 = vld [vmem:[#allocation117_spill] sm:$0xff] }
 0x3f2   :  { %3915 = vmatprep.subr.bf16.mxu1 %v3914_v58  ;;  %v3920_v25 = vpack.c.bf16 %v7349_v7, %v7348_v6  ;;  %v3892_v11 = vpack.c.bf16 %v7355_v10, %v7354_v38  ;;  %v7356_v39 = vld [vmem:[#allocation148_spill] sm:$0xff]  ;;  %v7357_v42 = vld [vmem:[#allocation149_spill] sm:$0xff]  ;;  %v7358_v43 = vld [vmem:[#allocation182_spill] sm:$0xff]  ;;  %v6658_v53 = vrot.slane %v2297_v35, %v6577_v36  ;;  %v2312_v36 = vcombine.high %v6655_v52, %v6655_v52 }
 0x3f3   :  { %v3924_v40 = vpack.c.bf16 %v7357_v42, %v7356_v39  ;;  %v7359_v28 = vld [vmem:[#allocation183_spill] sm:$0xff]  ;;  %v7360_v45 = vld [vmem:[#allocation214_spill] sm:$0xff]  ;;  %v7366_v59 = vld [vmem:[#allocation184_spill] sm:$0xff] }
 0x3f4   :  { %3885 = vmatpush3.bf16.msra.mxu0 %v3884_v16  ;;  %v3926_v29 = vpack.c.bf16 %v7359_v28, %v7358_v43  ;;  %v7361_v46 = vld [vmem:[#allocation215_spill] sm:$0xff]  ;;  %v7362_v54 = vld [vmem:[#allocation166_spill] sm:$0xff]  ;;  %v7367_v41 = vld [vmem:[#allocation185_spill] sm:$0xff]  ;;  %v2313_v15 = vcombine.high %v6658_v53, %v6658_v53 }
 0x3f5   :  { %3917 = vmatpush3.bf16.msra.mxu1 %v3916_v17  ;;  %3887 = vmatprep.subr.bf16.mxu0 %v3886_v3  ;;  %v3958_v47 = vpack.c.bf16 %v7361_v46, %v7360_v45  ;;  %v7363_v56 = vld [vmem:[#allocation167_spill] sm:$0xff]  ;;  %v7364_v61 = vld [vmem:[#allocation198_spill] sm:$0xff]  ;;  %v3930_v13 = vpack.c.bf16 %v7367_v41, %v7366_v59  ;;  %v7368_v50 = vld [vmem:[#allocation216_spill] sm:$0xff] }
 0x3f6   :  { %3919 = vmatprep.subr.bf16.mxu1 %v3918_v4  ;;  %v3928_v60 = vpack.c.bf16 %v7363_v56, %v7362_v54  ;;  %v7365_v62 = vld [vmem:[#allocation199_spill] sm:$0xff]  ;;  %v7369_v12 = vld [vmem:[#allocation217_spill] sm:$0xff]  ;;  %v7370_v51 = vld [vmem:[#allocation168_spill] sm:$0xff] }
 0x3f7   :  { %v3960_v63 = vpack.c.bf16 %v7365_v62, %v7364_v61  ;;  %v3962_v30 = vpack.c.bf16 %v7369_v12, %v7368_v50  ;;  %v7371_v57 = vld [vmem:[#allocation169_spill] sm:$0xff]  ;;  %v7372_v49 = vld [vmem:[#allocation200_spill] sm:$0xff]  ;;  %v7374_v58 = vld [vmem:[#allocation186_spill] sm:$0xff] }
 0x3f8   :  { %3889 = vmatpush3.bf16.msra.mxu0 %v3888_v23  ;;  %v3932_v33 = vpack.c.bf16 %v7371_v57, %v7370_v51  ;;  %v7373_v48 = vld [vmem:[#allocation201_spill] sm:$0xff]  ;;  %v7375_v32 = vld [vmem:[#allocation187_spill] sm:$0xff]  ;;  %v7376_v16 = vld [vmem:[#allocation218_spill] sm:$0xff] }
 0x3f9   :  { %3921 = vmatpush3.bf16.msra.mxu1 %v3920_v25  ;;  %3891 = vmatprep.subr.bf16.mxu0 %v3890_v26  ;;  %v3964_v14 = vpack.c.bf16 %v7373_v48, %v7372_v49  ;;  %v3934_v31 = vpack.c.bf16 %v7375_v32, %v7374_v58  ;;  %v7377_v0 = vld [vmem:[#allocation219_spill] sm:$0xff]  ;;  %v7380_v18 = vld [vmem:[#allocation202_spill] sm:$0xff]  ;;  %v7382_v19 = vld [vmem:[#allocation188_spill] sm:$0xff] }
 0x3fa   :  { %3923 = vmatprep.subr.bf16.mxu1 %v3922_v34  ;;  %v3966_v1 = vpack.c.bf16 %v7377_v0, %v7376_v16  ;;  %v7381_v2 = vld [vmem:[#allocation203_spill] sm:$0xff]  ;;  %v7383_v20 = vld [vmem:[#allocation189_spill] sm:$0xff]  ;;  %v7384_v5 = vld [vmem:[#allocation220_spill] sm:$0xff] }
 0x3fb   :  { %v3968_v3 = vpack.c.bf16 %v7381_v2, %v7380_v18  ;;  %v3938_v4 = vpack.c.bf16 %v7383_v20, %v7382_v19  ;;  %v7385_v21 = vld [vmem:[#allocation221_spill] sm:$0xff]  ;;  %v7386_v23 = vld [vmem:[#allocation172_spill] sm:$0xff]  ;;  %v7390_v26 = vld [vmem:[#allocation190_spill] sm:$0xff] }
 0x3fc   :  { %3893 = vmatpush3.bf16.msra.mxu0 %v3892_v11  ;;  %v3970_v22 = vpack.c.bf16 %v7385_v21, %v7384_v5  ;;  %v7387_v6 = vld [vmem:[#allocation173_spill] sm:$0xff]  ;;  %v7388_v25 = vld [vmem:[#allocation204_spill] sm:$0xff]  ;;  %v7391_v27 = vld [vmem:[#allocation191_spill] sm:$0xff] }
 0x3fd   :  { %3925 = vmatpush3.bf16.msra.mxu1 %v3924_v40  ;;  %3927 = vmatprep.subr.bf16.mxu0 %v3926_v29  ;;  %v3940_v7 = vpack.c.bf16 %v7387_v6, %v7386_v23  ;;  %v7389_v8 = vld [vmem:[#allocation205_spill] sm:$0xff]  ;;  %v3942_v37 = vpack.c.bf16 %v7391_v27, %v7390_v26  ;;  %v7392_v34 = vld [vmem:[#allocation222_spill] sm:$0xff]  ;;  %v7393_v35 = vld [vmem:[#allocation223_spill] sm:$0xff]  ;;  %v4154_v23 = vmov 0.0  }
 0x3fe   :  { %3959 = vmatprep.subr.bf16.mxu1 %v3958_v47  ;;  %v3972_v9 = vpack.c.bf16 %v7389_v8, %v7388_v25  ;;  %v3974_v38 = vpack.c.bf16 %v7393_v35, %v7392_v34  ;;  %v7394_v10 = vld [vmem:[#allocation174_spill] sm:$0xff]  ;;  %v7395_v11 = vld [vmem:[#allocation175_spill] sm:$0xff]  ;;  %v7398_v28 = vld [vmem:[#allocation192_spill] sm:$0xff] }
 0x3ff   :  { %2395 = vmatmul.mubr.f32.vlgmr.msra.gmra.mrb[38].mxu0 %v2287_v44  ;;  %v7378_v44 = vld [vmem:[#allocation170_spill] sm:$0xff]  ;;  %v3944_v39 = vpack.c.bf16 %v7395_v11, %v7394_v10  ;;  %v7397_v40 = vld [vmem:[#allocation207_spill] sm:$0xff]  ;;  %v7399_v29 = vld [vmem:[#allocation193_spill] sm:$0xff] }
 0x400   :  { %2465 = vmatmul.mubr.f32.vlgmr.msra.gmra.mrb[18].mxu1 %v2294_v55  ;;  %3929 = vmatpush3.bf16.msra.mxu0 %v3928_v60  ;;  %v7379_v55 = vld [vmem:[#allocation171_spill] sm:$0xff]  ;;  %v7396_v42 = vld [vmem:[#allocation206_spill] sm:$0xff]  ;;  %v3946_v45 = vpack.c.bf16 %v7399_v29, %v7398_v28  ;;  %v7400_v46 = vld [vmem:[#allocation224_spill] sm:$0xff] }
 0x401   :  { %3961 = vmatpush3.bf16.msra.mxu1 %v3960_v63  ;;  %3931 = vmatprep.subr.bf16.mxu0 %v3930_v13  ;;  %v3936_v17 = vpack.c.bf16 %v7379_v55, %v7378_v44  ;;  %v3976_v43 = vpack.c.bf16 %v7397_v40, %v7396_v42  ;;  %v7401_v47 = vld [vmem:[#allocation225_spill] sm:$0xff]  ;;  %v7402_v56 = vld [vmem:[#allocation176_spill] sm:$0xff]  ;;  %v7406_v41 = vld [vmem:[#allocation194_spill] sm:$0xff] }
 0x402   :  { %3963 = vmatprep.subr.bf16.mxu1 %v3962_v30  ;;  %2534 = vmatprep.mubr.f32.mxu0 %v2312_v36  ;;  %v3978_v54 = vpack.c.bf16 %v7401_v47, %v7400_v46  ;;  %v7403_v60 = vld [vmem:[#allocation177_spill] sm:$0xff]  ;;  %v7404_v62 = vld [vmem:[#allocation208_spill] sm:$0xff]  ;;  %v7407_v13 = vld [vmem:[#allocation195_spill] sm:$0xff] }
 0x403   :  { %2604 = vmatprep.mubr.f32.mxu1 %v2313_v15  ;;  %v3948_v61 = vpack.c.bf16 %v7403_v60, %v7402_v56  ;;  %v7405_v63 = vld [vmem:[#allocation209_spill] sm:$0xff]  ;;  %v3950_v50 = vpack.c.bf16 %v7407_v13, %v7406_v41  ;;  %v7408_v12 = vld [vmem:[#allocation226_spill] sm:$0xff]  ;;  %v7409_v30 = vld [vmem:[#allocation227_spill] sm:$0xff] }
 0x404   :  { %3933 = vmatpush3.bf16.msra.mxu0 %v3932_v33  ;;  %v3980_v59 = vpack.c.bf16 %v7405_v63, %v7404_v62  ;;  %v3982_v36 = vpack.c.bf16 %v7409_v30, %v7408_v12  ;;  %v7410_v15 = vld [vmem:[#allocation178_spill] sm:$0xff]  ;;  %v7411_v51 = vld [vmem:[#allocation179_spill] sm:$0xff]  ;;  %v7415_v58 = vld [vmem:[#allocation197_spill] sm:$0xff] }
 0x405   :  { %3965 = vmatpush3.bf16.msra.mxu1 %v3964_v14  ;;  %3935 = vmatprep.subr.bf16.mxu0 %v3934_v31  ;;  %v3952_v57 = vpack.c.bf16 %v7411_v51, %v7410_v15  ;;  %v7412_v33 = vld [vmem:[#allocation210_spill] sm:$0xff]  ;;  %v7413_v49 = vld [vmem:[#allocation211_spill] sm:$0xff]  ;;  %v7414_v14 = vld [vmem:[#allocation196_spill] sm:$0xff] }
 0x406   :  { %3967 = vmatprep.subr.bf16.mxu1 %v3966_v1  ;;  %v3984_v48 = vpack.c.bf16 %v7413_v49, %v7412_v33  ;;  %v3954_v32 = vpack.c.bf16 %v7415_v58, %v7414_v14  ;;  %v7416_v31 = vld [vmem:[#allocation228_spill] sm:$0xff]  ;;  %v7417_v16 = vld [vmem:[#allocation229_spill] sm:$0xff]  ;;  %v7423_v19 = vld [vmem:[#allocation231_spill] sm:$0xff] }
 0x407   :  { %v3986_v0 = vpack.c.bf16 %v7417_v16, %v7416_v31  ;;  %v7418_v1 = vld [vmem:[#allocation180_spill] sm:$0xff]  ;;  %v7419_v44 = vld [vmem:[#allocation181_spill] sm:$0xff]  ;;  %v7426_v6 = vld [vmem:[#allocation234_spill] sm:$0xff] }
 0x408   :  { %3937 = vmatpush3.bf16.msra.mxu0 %v3936_v17  ;;  %v3956_v55 = vpack.c.bf16 %v7419_v44, %v7418_v1  ;;  %v7420_v17 = vld [vmem:[#allocation212_spill] sm:$0xff]  ;;  %v7421_v18 = vld [vmem:[#allocation213_spill] sm:$0xff]  ;;  %v7431_v26 = vld [vmem:[#allocation239_spill] sm:$0xff] }
 0x409   :  { %3969 = vmatpush3.bf16.msra.mxu1 %v3968_v3  ;;  %3939 = vmatprep.subr.bf16.mxu0 %v3938_v4  ;;  %v3988_v2 = vpack.c.bf16 %v7421_v18, %v7420_v17  ;;  %v7422_v3 = vld [vmem:[#allocation230_spill] sm:$0xff]  ;;  %v4152_v4 = vmov 0.0|0.0   ;;  %v7424_v5 = vld [vmem:[#allocation232_spill] sm:$0xff]  ;;  %v7425_v21 = vld [vmem:[#allocation233_spill] sm:$0xff] }
 0x40a   :  { %3971 = vmatprep.subr.bf16.mxu1 %v3970_v22  ;;  %v3991_v20 = vpack.c.bf16 %v7423_v19, %v7422_v3  ;;  %v3994_v22 = vpack.c.bf16 %v7425_v21, %v7424_v5  ;;  %v7428_v8 = vld [vmem:[#allocation236_spill] sm:$0xff]  ;;  %v7433_v34 = vld [vmem:[#allocation241_spill] sm:$0xff]  ;;  %v7435_v10 = vld [vmem:[#allocation243_spill] sm:$0xff] }
 0x40b   :  { %v7437_v42 = vld [vmem:[#allocation245_spill] sm:$0xff]  ;;  %v7438_v56 = vld [vmem:[#allocation343_spill] sm:$0xff]  ;;  %v7441_v14 = vld [vmem:[#allocation246_spill] sm:$0xff] }
 0x40c   :  { %3941 = vmatpush3.bf16.msra.mxu0 %v3940_v7  ;;  %v7427_v7 = vld [vmem:[#allocation235_spill] sm:$0xff]  ;;  %v7442_v58 = vld [vmem:[#allocation250_spill] sm:$0xff] }
 0x40d   :  { %3973 = vmatpush3.bf16.msra.mxu1 %v3972_v9  ;;  %3943 = vmatprep.subr.bf16.mxu0 %v3942_v37  ;;  %v3997_v25 = vpack.c.bf16 %v7427_v7, %v7426_v6  ;;  %v7429_v9 = vld [vmem:[#allocation237_spill] sm:$0xff]  ;;  %v7432_v37 = vld [vmem:[#allocation240_spill] sm:$0xff]  ;;  %v7439_v33 = vld [vmem:[#allocation247_spill] sm:$0xff] }
 0x40e   :  { %3975 = vmatprep.subr.bf16.mxu1 %v3974_v38  ;;  %v4006_v35 = vpack.c.bf16 %v7433_v34, %v7432_v37  ;;  %v7434_v38 = vld [vmem:[#allocation242_spill] sm:$0xff]  ;;  %v7440_v49 = vld [vmem:[#allocation251_spill] sm:$0xff] }
 0x40f   :  { %v4009_v11 = vpack.c.bf16 %v7435_v10, %v7434_v38  ;;  %v7443_v31 = vld [vmem:[#allocation255_spill] sm:$0xff] }
 0x410   :  { %3945 = vmatpush3.bf16.msra.mxu0 %v3944_v39  ;;  %v7436_v39 = vld [vmem:[#allocation244_spill] sm:$0xff]  ;;  %v7444_v16 = vld [vmem:[#allocation259_spill] sm:$0xff] }
 0x411   :  { %3977 = vmatpush3.bf16.msra.mxu1 %v3976_v43  ;;  %3947 = vmatprep.subr.bf16.mxu0 %v3946_v45  ;;  %v4012_v40 = vpack.c.bf16 %v7437_v42, %v7436_v39  ;;  %v3188_v43 = vld.sshfl [vmem:[#allocation4 + $0x10] sm:$0x3 pattern:$0x76325410] }
 0x412   :  { %3979 = vmatprep.subr.bf16.mxu1 %v3978_v54 }
 0x414   :  { %3949 = vmatpush3.bf16.msra.mxu0 %v3948_v61 }
 0x415   :  { %3981 = vmatpush3.bf16.msra.mxu1 %v3980_v59  ;;  %3951 = vmatprep.subr.bf16.mxu0 %v3950_v50 }
 0x416   :  { %3983 = vmatprep.subr.bf16.mxu1 %v3982_v36 }
 0x418   :  { %3953 = vmatpush3.bf16.msra.mxu0 %v3952_v57 }
 0x419   :  { %3985 = vmatpush3.bf16.msra.mxu1 %v3984_v48  ;;  %3955 = vmatprep.subr.bf16.mxu0 %v3954_v32  ;;  %v4014_v48 = vpack.c.bf16 %v7440_v49, %v7439_v33  ;;  %v4016_v32 = vpack.c.bf16 %v7442_v58, %v7441_v14 }
 0x41a   :  { %3987 = vmatprep.subr.bf16.mxu1 %v3986_v0  ;;  %v4018_v0 = vpack.c.bf16 %v7444_v16, %v7443_v31 }
 0x41c   :  { %3957 = vmatpush3.bf16.msra.mxu0 %v3956_v55 }
 0x41d   :  { %3989 = vmatpush3.bf16.msra.mxu1 %v3988_v2  ;;  %3990 = vmatprep.subr.bf16.mxu0 %v4152_v4 }
 0x41f   :  { %2535 = vmatmul.mubr.f32.vlgmr.msra.gmra.mrb[40].mxu0 %v6655_v52  ;;  %v4000_v52 = vpack.c.bf16 %v7429_v9, %v7428_v8 }
 0x420   :  { %2605 = vmatmul.mubr.f32.vlgmr.msra.gmra.mrb[20].mxu1 %v6658_v53  ;;  %3992 = vmatpush3.bf16.msra.mxu0 %v3991_v20  ;;  %v7430_v53 = vld [vmem:[#allocation238_spill] sm:$0xff] }
 0x421   :  { %3699 = vmatprep.mubr.msk.f32.mxu0 %vm4153_vm3, %v4154_v23  ;;  %3993 = vmatprep.subr.bf16.mxu0 %v4152_v4  ;;  %v4003_v27 = vpack.c.bf16 %v7431_v26, %v7430_v53 }
 0x422   :  { %2805 = vmatprep.mubr.f32.mxu1 %v4154_v23 }
 0x424   :  { %3995 = vmatpush3.bf16.msra.mxu0 %v3994_v22 }
 0x425   :  { %3996 = vmatprep.subr.bf16.mxu0 %v4152_v4 }
 0x428   :  { %3998 = vmatpush3.bf16.msra.mxu0 %v3997_v25 }
 0x429   :  { %3999 = vmatprep.subr.bf16.mxu0 %v4152_v4 }
 0x42c   :  { %4001 = vmatpush3.bf16.msra.mxu0 %v4000_v52 }
 0x42d   :  { %4002 = vmatprep.subr.bf16.mxu0 %v4152_v4 }
 0x430   :  { %4004 = vmatpush3.bf16.msra.mxu0 %v4003_v27 }
 0x431   :  { %4005 = vmatprep.subr.bf16.mxu0 %v4152_v4 }
 0x434   :  { %4007 = vmatpush3.bf16.msra.mxu0 %v4006_v35 }
 0x435   :  { %4008 = vmatprep.subr.bf16.mxu0 %v4152_v4 }
 0x438   :  { %4010 = vmatpush3.bf16.msra.mxu0 %v4009_v11 }
 0x439   :  { %4011 = vmatprep.subr.bf16.mxu0 %v4152_v4 }
 0x43c   :  { %4013 = vmatpush3.bf16.msra.mxu0 %v4012_v40 }
 0x43f   :  { %3700 = vmatmul.mubr.f32.vlgmr.msra.gmra.mrb[42].mxu0 %v3188_v43 }
 0x4d2   :  { %v3472_v28 = vpop.f32.mrb[38].mxu0 }
 0x4d3   :  { %v3507_v29 = vpop.f32.mrb[18].mxu1  ;;  %v3473_v45 = vpop.f32.mrb[39].mxu0 }
 0x4d4   :  { %v3508_v46 = vpop.f32.mrb[19].mxu1  ;;  %v3474_v47 = vadd.f32 %v3473_v45, %v3472_v28 }
 0x4d5   :  { %v3509_v54 = vadd.f32 %v3508_v46, %v3507_v29 }
 0x4d6   :  { %v2397_v60 = vadd.f32 %v3474_v47, %v7438_v56 }
 0x4d8   :  { %v2467_v61 = vadd.f32 %v3509_v54, %v2397_v60 }
 0x4f2   :  { %v3542_v62 = vpop.f32.mrb[40].mxu0 }
 0x4f3   :  { %v3577_v63 = vpop.f32.mrb[20].mxu1  ;;  %v3543_v59 = vpop.f32.mrb[41].mxu0 }
 0x4f4   :  { %v3578_v41 = vpop.f32.mrb[21].mxu1  ;;  %v3544_v13 = vadd.f32 %v3543_v59, %v3542_v62 }
 0x4f5   :  { %v3579_v50 = vadd.f32 %v3578_v41, %v3577_v63 }
 0x4f6   :  { %v2537_v12 = vadd.f32 %v3544_v13, %v2467_v61 }
 0x4f8   :  { %v2607_v30 = vadd.f32 %v3579_v50, %v2537_v12 }
 0x512   :  { %v2676_v36 = vpop.f32.mrb[42].mxu0 }
 0x513   :  { %v2677_v15 = vadd.f32 %v2676_v36, %v2607_v30  ;;  %v3701_v51 = vpop.f32.mrb[43].mxu0 }
 0x515   :  { %v2680_v57 = vmax.f32 %v2677_v15, 0.0 }
 0x516   :  { %4144 = dma.done.wait [#allocation9 + $0x2], 4096 }
 0x517   :  { %4145 = vsyncadd [#allocation9 + $0x2], 4294963200  ;;  %4015 = vmatprep.subr.bf16.mxu1 %v4014_v48  ;;  %v7445_v1 = vld [vmem:[#allocation254_spill] sm:$0xff]  ;;  %v7447_v17 = vld [vmem:[#allocation263_spill] sm:$0xff]  ;;  %v2724_v60 = vsub.s32 1, %v6574_v24  ;;  %v2728_v36 = vsub.s32 2, %v6574_v24 }
 0x518   :  { %4017 = vmatpush1.bf16.msra.mxu1 %v4016_v32  ;;  %v7446_v44 = vld [vmem:[#allocation258_spill] sm:$0xff]  ;;  %v7448_v18 = vld [vmem:[#allocation267_spill] sm:$0xff]  ;;  %v7455_v25 = vld [vmem:[#allocation249_spill] sm:$0xff]  ;;  %v2732_v15 = vsub.s32 3, %v6574_v24 }
 0x519   :  { %v4020_v55 = vpack.c.bf16 %v7446_v44, %v7445_v1  ;;  %4019 = vmatprep.subr.bf16.mxu1 %v4018_v0  ;;  %v4022_v2 = vpack.c.bf16 %v7448_v18, %v7447_v17  ;;  %v7449_v3 = vld [vmem:[#allocation262_spill] sm:$0xff]  ;;  %v7451_v4 = vld [vmem:[#allocation271_spill] sm:$0xff]  ;;  %v7456_v8 = vld [vmem:[#allocation253_spill] sm:$0xff] }
 0x51a   :  { %v7450_v19 = vld [vmem:[#allocation266_spill] sm:$0xff]  ;;  %v7452_v5 = vld [vmem:[#allocation275_spill] sm:$0xff]  ;;  %v4030_v9 = vpack.c.bf16 %v7456_v8, %v7455_v25  ;;  %v7457_v52 = vld [vmem:[#allocation248_spill] sm:$0xff] }
 0x51b   :  { %v4024_v20 = vpack.c.bf16 %v7450_v19, %v7449_v3  ;;  %v4026_v21 = vpack.c.bf16 %v7452_v5, %v7451_v4  ;;  %v7453_v22 = vld [vmem:[#allocation270_spill] sm:$0xff]  ;;  %v7458_v53 = vld [vmem:[#allocation252_spill] sm:$0xff]  ;;  %v7459_v27 = vld [vmem:[#allocation257_spill] sm:$0xff] }
 0x51c   :  { %4021 = vmatpush1.bf16.msra.mxu1 %v4020_v55  ;;  %v7454_v6 = vld [vmem:[#allocation274_spill] sm:$0xff]  ;;  %v4032_v26 = vpack.c.bf16 %v7458_v53, %v7457_v52  ;;  %v7460_v37 = vld [vmem:[#allocation261_spill] sm:$0xff]  ;;  %v7461_v35 = vld [vmem:[#allocation256_spill] sm:$0xff] }
 0x51d   :  { %4023 = vmatprep.subr.bf16.mxu1 %v4022_v2  ;;  %v4028_v7 = vpack.c.bf16 %v7454_v6, %v7453_v22  ;;  %v4034_v34 = vpack.c.bf16 %v7460_v37, %v7459_v27  ;;  %v7462_v38 = vld [vmem:[#allocation260_spill] sm:$0xff]  ;;  %v7463_v11 = vld [vmem:[#allocation265_spill] sm:$0xff]  ;;  %v7472_v31 = vld [vmem:[#allocation294_spill] sm:$0xff] }
 0x51e   :  { %v4036_v10 = vpack.c.bf16 %v7462_v38, %v7461_v35  ;;  %v7464_v39 = vld [vmem:[#allocation269_spill] sm:$0xff]  ;;  %v7465_v40 = vld [vmem:[#allocation264_spill] sm:$0xff]  ;;  %v7473_v16 = vld [vmem:[#allocation295_spill] sm:$0xff] }
 0x51f   :  { %v4038_v42 = vpack.c.bf16 %v7464_v39, %v7463_v11  ;;  %v7466_v43 = vld [vmem:[#allocation268_spill] sm:$0xff]  ;;  %v7467_v29 = vld [vmem:[#allocation273_spill] sm:$0xff]  ;;  %v4046_v0 = vpack.c.bf16 %v7473_v16, %v7472_v31  ;;  %v7474_v1 = vld [vmem:[#allocation278_spill] sm:$0xff] }
 0x520   :  { %4025 = vmatpush1.bf16.msra.mxu1 %v4024_v20  ;;  %v4040_v28 = vpack.c.bf16 %v7466_v43, %v7465_v40  ;;  %v7468_v45 = vld [vmem:[#allocation277_spill] sm:$0xff]  ;;  %v7469_v47 = vld [vmem:[#allocation272_spill] sm:$0xff]  ;;  %v7475_v44 = vld [vmem:[#allocation279_spill] sm:$0xff] }
 0x521   :  { %4027 = vmatprep.subr.bf16.mxu1 %v4026_v21  ;;  %v4042_v46 = vpack.c.bf16 %v7468_v45, %v7467_v29  ;;  %v7470_v54 = vld [vmem:[#allocation276_spill] sm:$0xff]  ;;  %v4048_v55 = vpack.c.bf16 %v7475_v44, %v7474_v1  ;;  %v7476_v17 = vld [vmem:[#allocation326_spill] sm:$0xff]  ;;  %v7479_v3 = vld [vmem:[#allocation311_spill] sm:$0xff] }
 0x522   :  { %v4044_v56 = vpack.c.bf16 %v7470_v54, %v7469_v47  ;;  %v7471_v61 = vld [vmem:[#allocation344_spill] sm:$0xff]  ;;  %v7478_v2 = vld [vmem:[#allocation310_spill] sm:$0xff] }
 0x523   :  { %v2725_v63 = vrot.slane %v7471_v61, %v2724_v60  ;;  %v2729_v51 = vrot.slane %v7471_v61, %v2728_v36  ;;  %v4080_v19 = vpack.c.bf16 %v7479_v3, %v7478_v2 }
 0x524   :  { %4029 = vmatpush1.bf16.msra.mxu1 %v4028_v7 }
 0x525   :  { %4031 = vmatprep.subr.bf16.mxu1 %v4030_v9 }
 0x527   :  { %3189 = vmatmul.mubr.msk.f32.vlgmr.msra.gmra.mrb[22].mxu1 %vm1154_vm0, %v2680_v57 }
 0x528   :  { %4033 = vmatpush1.bf16.msra.mxu1 %v4032_v26  ;;  %2876 = vmatprep.mubr.f32.mxu1 %v4154_v23  ;;  %v2720_v23 = vsub.s32 0, %v6574_v24  ;;  %v7477_v24 = vld [vmem:[#allocation327_spill] sm:$0xff] }
 0x529   :  { %4035 = vmatprep.subr.bf16.mxu1 %v4034_v34  ;;  %v4078_v18 = vpack.c.bf16 %v7477_v24, %v7476_v17 }
 0x52a   :  { %v2721_v62 = vrot.slane %v7471_v61, %v2720_v23 }
 0x52c   :  { %4037 = vmatpush1.bf16.msra.mxu1 %v4036_v10 }
 0x52d   :  { %4039 = vmatprep.subr.bf16.mxu1 %v4038_v42 }
 0x530   :  { %4041 = vmatpush1.bf16.msra.mxu1 %v4040_v28 }
 0x531   :  { %4043 = vmatprep.subr.bf16.mxu1 %v4042_v46 }
 0x534   :  { %4045 = vmatpush1.bf16.msra.mxu1 %v4044_v56 }
 0x537   :  { %3190 = vmatmul.mubr.msk.f32.vlgmr.msra.gmra.mrb[24].mxu1 %vm1154_vm0, %v2680_v57  ;;  %v2733_v57 = vrot.slane %v7471_v61, %v2732_v15 }
 0x5fa   :  { %v2807_v59 = vpop.f32.mrb[22].mxu1 }
 0x5fb   :  { %v6784_v41 = vadd.f32 %v2807_v59, %v2721_v62  ;;  %v2809_v13 = vpop.f32.mrb[23].mxu1 }
 0x5fc   :  { %v2810_v50 = vadd.f32 %v2809_v13, %v2725_v63 }
 0x5fd   :  { %v2883_v12 = vmax.f32 %v6784_v41, 0.0 }
 0x5fe   :  { %v2884_v30 = vmax.f32 %v2810_v50, 0.0 }
 0x600   :  { %3024 = vmatprep.mubr.f32.mxu0 %v2884_v30 }
 0x60a   :  { %v2878_v33 = vpop.f32.mrb[24].mxu1 }
 0x60b   :  { %v6791_v49 = vadd.f32 %v2878_v33, %v2729_v51  ;;  %v2880_v48 = vpop.f32.mrb[25].mxu1 }
 0x60c   :  { %v2881_v14 = vadd.f32 %v2880_v48, %v2733_v57 }
 0x60d   :  { %v2885_v58 = vmax.f32 %v6791_v49, 0.0 }
 0x60e   :  { %v2886_v32 = vmax.f32 %v2881_v14, 0.0 }
 0x60f   :  { %4146 = dma.done.wait [#allocation9 + $0x3], 8192 }
 0x610   :  { %4147 = vsyncadd [#allocation9 + $0x3], 4294959104  ;;  %v7480_v20 = vld [vmem:[#allocation296_spill] sm:$0xff]  ;;  %v7481_v4 = vld [vmem:[#allocation297_spill] sm:$0xff]  ;;  %3094 = vmatprep.mubr.f32.mxu1 %v2886_v32  ;;  %4047 = vmatprep.subr.bf16.mxu0 %v4046_v0  ;;  %s4155_s2 = smov [#allocation10]  }
 0x611   :  { %v4050_v5 = vpack.c.bf16 %v7481_v4, %v7480_v20  ;;  %v7482_v21 = vld [vmem:[#allocation328_spill] sm:$0xff]  ;;  %v7483_v22 = vld [vmem:[#allocation329_spill] sm:$0xff]  ;;  %4079 = vmatprep.subr.bf16.mxu1 %v4078_v18  ;;  %4049 = vmatpush3.bf16.msra.mxu0 %v4048_v55  ;;  %v7488_v26 = vld [vmem:[#allocation298_spill] sm:$0xff]  ;;  %s3107_s14 = sshll.u32 %s4155_s2, 4  ;;  %s3108_s14 = int_to_ptr.vmem [resolvable:$true] %s3107_s14 }
 0x612   :  { %v4082_v6 = vpack.c.bf16 %v7483_v22, %v7482_v21  ;;  %4081 = vmatpush3.bf16.msra.mxu1 %v4080_v19  ;;  %v7484_v7 = vld [vmem:[#allocation280_spill] sm:$0xff]  ;;  %v7485_v25 = vld [vmem:[#allocation281_spill] sm:$0xff]  ;;  %v7489_v27 = vld [vmem:[#allocation299_spill] sm:$0xff]  ;;  %s4118_s15 = scalar_lea.vmem %s3108_s14, 32  ;;  %p4123_p1 = scmp.lt.s32.totalorder %s3108_s14, %s3108_s14 }
 0x613   :  { %v4052_v8 = vpack.c.bf16 %v7485_v25, %v7484_v7  ;;  %v7486_v9 = vld [vmem:[#allocation312_spill] sm:$0xff]  ;;  %v7487_v52 = vld [vmem:[#allocation313_spill] sm:$0xff]  ;;  %4051 = vmatprep.subr.bf16.mxu0 %v4050_v5  ;;  %v4054_v37 = vpack.c.bf16 %v7489_v27, %v7488_v26  ;;  %v7490_v34 = vld [vmem:[#allocation330_spill] sm:$0xff]  ;;  %p4119_p0 = scmp.ne.s32.totalorder %s3108_s14, %s4118_s15  ;;  %p4124_p2 = scmp.lt.s32.totalorder %s4118_s15, %s4118_s15 }
 0x614   :  { %v4084_v53 = vpack.c.bf16 %v7487_v52, %v7486_v9  ;;  %4083 = vmatprep.subr.bf16.mxu1 %v4082_v6  ;;  %v7491_v35 = vld [vmem:[#allocation331_spill] sm:$0xff]  ;;  %v7492_v10 = vld [vmem:[#allocation282_spill] sm:$0xff]  ;;  %v7496_v28 = vld [vmem:[#allocation300_spill] sm:$0xff] }
 0x615   :  { %v4086_v38 = vpack.c.bf16 %v7491_v35, %v7490_v34  ;;  %4053 = vmatpush3.bf16.msra.mxu0 %v4052_v8  ;;  %v7493_v11 = vld [vmem:[#allocation283_spill] sm:$0xff]  ;;  %v7494_v42 = vld [vmem:[#allocation314_spill] sm:$0xff]  ;;  %v7497_v29 = vld [vmem:[#allocation301_spill] sm:$0xff]  ;;  %p4125_p3 = por %p4124_p2, %p4123_p1 }
 0x616   :  { %4085 = vmatpush3.bf16.msra.mxu1 %v4084_v53  ;;  %v4056_v39 = vpack.c.bf16 %v7493_v11, %v7492_v10  ;;  %v7495_v40 = vld [vmem:[#allocation315_spill] sm:$0xff]  ;;  %4055 = vmatprep.subr.bf16.mxu0 %v4054_v37  ;;  %v4058_v45 = vpack.c.bf16 %v7497_v29, %v7496_v28  ;;  %v7498_v46 = vld [vmem:[#allocation332_spill] sm:$0xff]  ;;  %v7499_v47 = vld [vmem:[#allocation333_spill] sm:$0xff] }
 0x617   :  { %v4088_v43 = vpack.c.bf16 %v7495_v40, %v7494_v42  ;;  %4087 = vmatprep.subr.bf16.mxu1 %v4086_v38  ;;  %v4090_v54 = vpack.c.bf16 %v7499_v47, %v7498_v46  ;;  %v7500_v56 = vld [vmem:[#allocation284_spill] sm:$0xff]  ;;  %v7501_v23 = vld [vmem:[#allocation285_spill] sm:$0xff]  ;;  %v7504_v59 = vld [vmem:[#allocation302_spill] sm:$0xff]  ;;  %p4126_p4 = pnand %p4125_p3, %p4119_p0 }
 0x618   :  { %v4060_v60 = vpack.c.bf16 %v7501_v23, %v7500_v56  ;;  %v7502_v61 = vld [vmem:[#allocation316_spill] sm:$0xff]  ;;  %v7503_v62 = vld [vmem:[#allocation317_spill] sm:$0xff]  ;;  %v7505_v13 = vld [vmem:[#allocation303_spill] sm:$0xff] }
 0x619   :  { %4057 = vmatpush3.bf16.msra.mxu0 %v4056_v39  ;;  %v4092_v63 = vpack.c.bf16 %v7503_v62, %v7502_v61  ;;  %v4062_v50 = vpack.c.bf16 %v7505_v13, %v7504_v59  ;;  %v7506_v30 = vld [vmem:[#allocation334_spill] sm:$0xff]  ;;  %v7507_v36 = vld [vmem:[#allocation335_spill] sm:$0xff]  ;;  %v7512_v31 = vld [vmem:[#allocation304_spill] sm:$0xff] }
 0x61a   :  { %4089 = vmatpush3.bf16.msra.mxu1 %v4088_v43  ;;  %4059 = vmatprep.subr.bf16.mxu0 %v4058_v45  ;;  %v4094_v15 = vpack.c.bf16 %v7507_v36, %v7506_v30  ;;  %v7508_v51 = vld [vmem:[#allocation286_spill] sm:$0xff]  ;;  %v7509_v57 = vld [vmem:[#allocation287_spill] sm:$0xff]  ;;  %v7513_v16 = vld [vmem:[#allocation305_spill] sm:$0xff] }
 0x61b   :  { %4091 = vmatprep.subr.bf16.mxu1 %v4090_v54  ;;  %v4064_v33 = vpack.c.bf16 %v7509_v57, %v7508_v51  ;;  %v7510_v48 = vld [vmem:[#allocation318_spill] sm:$0xff]  ;;  %v7511_v14 = vld [vmem:[#allocation319_spill] sm:$0xff]  ;;  %v4066_v0 = vpack.c.bf16 %v7513_v16, %v7512_v31  ;;  %v7514_v1 = vld [vmem:[#allocation336_spill] sm:$0xff] }
 0x61c   :  { %v4096_v32 = vpack.c.bf16 %v7511_v14, %v7510_v48  ;;  %v7515_v44 = vld [vmem:[#allocation337_spill] sm:$0xff]  ;;  %v7516_v17 = vld [vmem:[#allocation288_spill] sm:$0xff]  ;;  %v7520_v20 = vld [vmem:[#allocation306_spill] sm:$0xff] }
 0x61d   :  { %4061 = vmatpush3.bf16.msra.mxu0 %v4060_v60  ;;  %v4098_v55 = vpack.c.bf16 %v7515_v44, %v7514_v1  ;;  %v7517_v24 = vld [vmem:[#allocation289_spill] sm:$0xff]  ;;  %v7518_v2 = vld [vmem:[#allocation320_spill] sm:$0xff]  ;;  %v7521_v4 = vld [vmem:[#allocation307_spill] sm:$0xff] }
 0x61e   :  { %4093 = vmatpush3.bf16.msra.mxu1 %v4092_v63  ;;  %4063 = vmatprep.subr.bf16.mxu0 %v4062_v50  ;;  %v4068_v18 = vpack.c.bf16 %v7517_v24, %v7516_v17  ;;  %v7519_v3 = vld [vmem:[#allocation321_spill] sm:$0xff]  ;;  %v4070_v5 = vpack.c.bf16 %v7521_v4, %v7520_v20  ;;  %v7522_v21 = vld [vmem:[#allocation338_spill] sm:$0xff]  ;;  %v7523_v22 = vld [vmem:[#allocation339_spill] sm:$0xff] }
 0x61f   :  { %4095 = vmatprep.subr.bf16.mxu1 %v4094_v15  ;;  %v4100_v19 = vpack.c.bf16 %v7519_v3, %v7518_v2  ;;  %v4102_v6 = vpack.c.bf16 %v7523_v22, %v7522_v21  ;;  %v7524_v7 = vld [vmem:[#allocation290_spill] sm:$0xff]  ;;  %v7525_v25 = vld [vmem:[#allocation291_spill] sm:$0xff]  ;;  %v7528_v26 = vld [vmem:[#allocation308_spill] sm:$0xff] }
 0x620   :  { %v4072_v8 = vpack.c.bf16 %v7525_v25, %v7524_v7  ;;  %v7526_v9 = vld [vmem:[#allocation322_spill] sm:$0xff]  ;;  %v7527_v52 = vld [vmem:[#allocation323_spill] sm:$0xff]  ;;  %v7529_v27 = vld [vmem:[#allocation309_spill] sm:$0xff] }
 0x621   :  { %4065 = vmatpush3.bf16.msra.mxu0 %v4064_v33  ;;  %v4104_v53 = vpack.c.bf16 %v7527_v52, %v7526_v9  ;;  %v4074_v37 = vpack.c.bf16 %v7529_v27, %v7528_v26  ;;  %v7530_v34 = vld [vmem:[#allocation340_spill] sm:$0xff]  ;;  %v7531_v35 = vld [vmem:[#allocation341_spill] sm:$0xff] }
 0x622   :  { %4097 = vmatpush3.bf16.msra.mxu1 %v4096_v32  ;;  %4067 = vmatprep.subr.bf16.mxu0 %v4066_v0  ;;  %v4106_v38 = vpack.c.bf16 %v7531_v35, %v7530_v34  ;;  %v7532_v10 = vld [vmem:[#allocation292_spill] sm:$0xff]  ;;  %v7533_v11 = vld [vmem:[#allocation293_spill] sm:$0xff] }
 0x623   :  { %4099 = vmatprep.subr.bf16.mxu1 %v4098_v55  ;;  %v4076_v39 = vpack.c.bf16 %v7533_v11, %v7532_v10  ;;  %v7534_v42 = vld [vmem:[#allocation324_spill] sm:$0xff]  ;;  %v7535_v40 = vld [vmem:[#allocation325_spill] sm:$0xff] }
 0x624   :  { %v4108_v43 = vpack.c.bf16 %v7535_v40, %v7534_v42  ;;  %v7536_v56 = vld [vmem:[#allocation345_spill] sm:$0xff] }
 0x625   :  { %4069 = vmatpush3.bf16.msra.mxu0 %v4068_v18 }
 0x626   :  { %4101 = vmatpush3.bf16.msra.mxu1 %v4100_v19  ;;  %4071 = vmatprep.subr.bf16.mxu0 %v4070_v5 }
 0x627   :  { %4103 = vmatprep.subr.bf16.mxu1 %v4102_v6 }
 0x629   :  { %4073 = vmatpush3.bf16.msra.mxu0 %v4072_v8 }
 0x62a   :  { %4105 = vmatpush3.bf16.msra.mxu1 %v4104_v53  ;;  %4075 = vmatprep.subr.bf16.mxu0 %v4074_v37 }
 0x62b   :  { %4107 = vmatprep.subr.bf16.mxu1 %v4106_v38 }
 0x62d   :  { %4077 = vmatpush3.bf16.msra.mxu0 %v4076_v39 }
 0x62e   :  { %4109 = vmatpush3.bf16.msra.mxu1 %v4108_v43 }
 0x630   :  { %3025 = vmatmul.mubr.f32.vlgmr.msra.gmra.mrb[44].mxu0 %v2883_v12 }
 0x631   :  { %3095 = vmatmul.mubr.f32.vlgmr.msra.gmra.mrb[26].mxu1 %v2885_v58 }
 0x703   :  { %v3629_v28 = vpop.f32.mrb[44].mxu0 }
 0x704   :  { %v3664_v29 = vpop.f32.mrb[26].mxu1  ;;  %v3630_v45 = vpop.f32.mrb[45].mxu0 }
 0x705   :  { %v3665_v46 = vpop.f32.mrb[27].mxu1  ;;  %v3631_v47 = vadd.f32 %v3630_v45, %v3629_v28 }
 0x706   :  { %v3666_v54 = vadd.f32 %v3665_v46, %v3664_v29 }
 0x707   :  { %v3027_v23 = vadd.f32 %v3631_v47, %v7536_v56 }
 0x709   :  { %v3097_v60 = vadd.f32 %v3666_v54, %v3027_v23 }
 0x70b   :  { %3100 = vst [vmem:[#allocation10] sm:$0x3] %v3097_v60 }
 0x70c   :  { %4129 = shalt.err (!%p4126_p4)
}
 0x70d   :  { %s4130_s18 = scalar_lea.hbm %s6882_s7, 32 }
 0x70e   :  { %p4131_p5 = scmp.ne.s32.totalorder %s6882_s7, %s4130_s18  ;;  %p4134_p6 = scmp.lt.u32.totalorder %s4130_s18, %s6882_s7 }
 0x710   :  { %p4136_p7 = pnand %p4134_p6, %p4131_p5 }
 0x712   :  { %4139 = shalt.err (!%p4136_p7)
}
 0x713   :  { %3110 = dma.vmem_to_hbm [thread:$0]  %s3108_s14, 32, %s6882_s7, [#allocation11]  }
 0x714   :  { %4148 = dma.done.wait [#allocation11], 32  }
 0x715   :  { %4149 = vsyncadd [#allocation11], 4294967264 }
 0x716   :  { %3114 = vsyncpa [#allocation11], 1 }
 0x717   :  { %3115 = vsyncmov [#allocation9] }
 0x71a   :  { %s3116_s5 = vpop.sfrf %3115 }
 0x71b   :  { %p3192_p8 = scmp.ne.s32.totalorder %s3116_s5, 0 }
 0x71d   :  { %3120 = shalt.err (%p3192_p8)  }
 0x71e   :  { %3122 = vsyncmov [#allocation9 + $0x1] }
 0x721   :  { %s3123_s24 = vpop.sfrf %3122 }
 0x722   :  { %p3193_p9 = scmp.ne.s32.totalorder %s3123_s24, 0 }
 0x724   :  { %3127 = shalt.err (%p3193_p9)  }
 0x725   :  { %3129 = vsyncmov [#allocation9 + $0x2] }
 0x728   :  { %s3130_s25 = vpop.sfrf %3129 }
 0x729   :  { %p3194_p10 = scmp.ne.s32.totalorder %s3130_s25, 0 }
 0x72b   :  { %3134 = shalt.err (%p3194_p10)  }
 0x72c   :  { %3136 = vsyncmov [#allocation9 + $0x3] }
 0x72f   :  { %s3137_s26 = vpop.sfrf %3136 }
 0x730   :  { %p3195_p11 = scmp.ne.s32.totalorder %s3137_s26, 0 }
 0x732   :  { %3141 = shalt.err (%p3195_p11)  }

</bundles_post_ra>
